<compile_context>
chip_gen: v6e
topology: v6e:2x2x1
jax: 0.10.0
libtpu: 0.0.40
codegen_flags: <defaults>
</compile_context>

<pallas_src>
import math

import numpy as np
import jax
import jax.numpy as jnp
from jax.experimental import pallas as pl
from jax.experimental.pallas import tpu as pltpu

# ----------------------------- hyper-parameters ------------------------------
BATCH = 2
IN_CH = 3
IMG = 32
PATCH = 8
HIDDEN = 32            # encoder.config.hidden_size
NHEADS = 4
HEAD_DIM = HIDDEN // NHEADS
NLAYERS = 2
INTERMEDIATE = 64
UPSCALE = 8            # nn.Upsample(scale_factor=8)
LN_EPS = 1e-12         # HF ViT layer_norm_eps

GRID = IMG // PATCH            # 4x4 patch grid
NPATCH = GRID * GRID           # 16 patches
S_VALID = NPATCH + 1           # 17 tokens incl. CLS
SP = 24                        # padded sequence length (multiple of 8 sublanes)
PATCH_DIM = IN_CH * PATCH * PATCH   # 192
HO = WO = GRID * UPSCALE       # 32x32 output map
ATTN_SCALE = 1.0 / math.sqrt(HEAD_DIM)


# ------------------- bilinear-upsample constants (numpy, trace-time) ---------
def _bilinear_matrix(in_size, out_size):
    """Row-interpolation matrix for bilinear, align_corners=False (PyTorch)."""
    dst = np.arange(out_size, dtype=np.float64)
    src = np.maximum((dst + 0.5) * (in_size / out_size) - 0.5, 0.0)
    i0 = np.minimum(np.floor(src).astype(np.int64), in_size - 1)
    i1 = np.minimum(i0 + 1, in_size - 1)
    lam = (src - i0).astype(np.float32)
    mat = np.zeros((out_size, in_size), np.float32)
    mat[np.arange(out_size), i0] += 1.0 - lam
    mat[np.arange(out_size), i1] += lam
    return mat


_AH = _bilinear_matrix(GRID, HO)       # (HO, GRID)
_AW = _bilinear_matrix(GRID, WO)       # (WO, GRID)
# up[y, x] = sum_p U[y, p] * seg[p] * VT[p, x], p indexes the padded token row;
# token row r = 1 + (i*GRID + j) maps to grid cell (i, j); CLS / pad rows -> 0.
_U = np.zeros((HO, SP), np.float32)
_VT = np.zeros((SP, WO), np.float32)
for _p in range(NPATCH):
    _U[:, 1 + _p] = _AH[:, _p // GRID]
    _VT[1 + _p, :] = _AW[:, _p % GRID]
U_CONST = jnp.asarray(_U)
VT_CONST = jnp.asarray(_VT)


# ------------------------------ fused model kernel ---------------------------
def _layernorm(x, g, b):
    mean = jnp.mean(x, axis=-1, keepdims=True)
    var = jnp.mean(jnp.square(x - mean), axis=-1, keepdims=True)
    return (x - mean) * jax.lax.rsqrt(var + LN_EPS) * g + b


def _model_kernel(patches_ref, base_ref, pw_ref, pb_ref,
                  ln1g_ref, ln1b_ref, wqkv_ref, bqkv_ref, wo_ref, bo_ref,
                  ln2g_ref, ln2b_ref, w1_ref, b1_ref, w2_ref, b2_ref,
                  lnfg_ref, lnfb_ref, segw_ref, segb_ref, u_ref, vt_ref,
                  o_ref):
    f32 = jnp.float32

    # --- patch embedding (rows 1..NPATCH hold patches, rows 0 / >=S_VALID are 0) ---
    emb = jnp.dot(patches_ref[0], pw_ref[...], preferred_element_type=f32)   # (SP, H)
    row = jax.lax.broadcasted_iota(jnp.int32, (SP, 1), 0)
    patch_rows = jnp.logical_and(row >= 1, row < S_VALID).astype(f32)        # (SP, 1)
    h = base_ref[...] + emb + patch_rows * pb_ref[...]                       # (SP, H)

    # key mask: only the S_VALID real tokens may be attended to.
    col = jax.lax.broadcasted_iota(jnp.int32, (1, SP), 1)
    key_mask = col < S_VALID                                                 # (1, SP)

    # --- transformer encoder layers (pre-norm ViT) ---
    for l in range(NLAYERS):
        xn = _layernorm(h, ln1g_ref[l], ln1b_ref[l])
        qkv = jnp.dot(xn, wqkv_ref[l], preferred_element_type=f32) + bqkv_ref[l]  # (SP, 3H)

        ctx = []
        for hd in range(NHEADS):
            lo = hd * HEAD_DIM
            q = qkv[:, lo:lo + HEAD_DIM]                                     # (SP, dh)
            k = qkv[:, HIDDEN + lo:HIDDEN + lo + HEAD_DIM]
            v = qkv[:, 2 * HIDDEN + lo:2 * HIDDEN + lo + HEAD_DIM]
            s = jax.lax.dot_general(q, k, (((1,), (1,)), ((), ())),
                                    preferred_element_type=f32) * ATTN_SCALE  # (SP, SP)
            s = jnp.where(key_mask, s, -1e30)
            s = s - jnp.max(s, axis=-1, keepdims=True)
            p = jnp.exp(s)
            p = p * pl.reciprocal(jnp.sum(p, axis=-1, keepdims=True), approx=True)
            ctx.append(jnp.dot(p, v, preferred_element_type=f32))            # (SP, dh)
        attn = jnp.concatenate(ctx, axis=-1)                                 # (SP, H)
        attn = jnp.dot(attn, wo_ref[l], preferred_element_type=f32) + bo_ref[l]
        h = h + attn

        xn2 = _layernorm(h, ln2g_ref[l], ln2b_ref[l])
        # TODO(synk): HF ViT default is exact (erf) GELU; tanh approximation is
        # used here for guaranteed Mosaic lowering (~1e-3 divergence).
        m = jax.nn.gelu(jnp.dot(xn2, w1_ref[l], preferred_element_type=f32) + b1_ref[l],
                        approximate=True)
        m = jnp.dot(m, w2_ref[l], preferred_element_type=f32) + b2_ref[l]
        h = h + m

    # --- final encoder layernorm ---
    h = _layernorm(h, lnfg_ref[...], lnfb_ref[...])                          # (SP, H)

    # --- fused seg head: 1x1 conv (dot with seg_w) + bilinear x8 upsample ---
    # seg[r] = h[r] . w + b  (pad / CLS rows are zeroed by U / VT columns/rows)
    seg = jnp.sum(h * segw_ref[...], axis=-1, keepdims=True) + segb_ref[...]  # (SP, 1)
    up = jnp.dot(u_ref[...], seg * vt_ref[...], preferred_element_type=f32)   # (HO, WO)
    o_ref[0, 0] = up


def _full_spec(a):
    nd = a.ndim
    return pl.BlockSpec(a.shape, lambda i, _nd=nd: (0,) * _nd)


@jax.jit
def segmentation_model_forward(pixel_values, params):
    b, c, hh, ww = pixel_values.shape
    hp, wp = hh // PATCH, ww // PATCH

    # patchify (Conv2d k=stride=PATCH == im2col + matmul); tiny XLA transpose under jit.
    # TODO(synk): could be pulled into the kernel via an (b,hp,wp) Element BlockSpec,
    # but at 12 KiB the XLA transpose is negligible and avoids extra grid steps.
    patches = pixel_values.reshape(b, c, hp, PATCH, wp, PATCH)
    patches = patches.transpose(0, 2, 4, 1, 3, 5).reshape(b, hp * wp, c * PATCH * PATCH)
    # pad to SP token rows: row 0 reserved for CLS, rows >= S_VALID are padding.
    patches = jnp.pad(patches, ((0, 0), (1, SP - 1 - NPATCH), (0, 0)))

    # CLS token + positional embedding, padded to SP rows.
    # TODO(synk): ViTMAE's fixed sin-cos pos-embed and random masking are replaced by
    # a synthetic learned pos_embed and mask_ratio=0 (deterministic inference).
    cls_row = params["cls_token"].reshape(1, HIDDEN)
    pos = params["pos_embed"].reshape(S_VALID, HIDDEN)
    base = jnp.concatenate(
        [cls_row + pos[:1], pos[1:],
         jnp.zeros((SP - S_VALID, HIDDEN), jnp.float32)], axis=0)            # (SP, H)

    L = NLAYERS
    args = (
        patches,                                         # (B, SP, 192)
        base,                                            # (SP, H)
        params["patch_w"],                               # (192, H)
        params["patch_b"].reshape(1, HIDDEN),
        params["ln1_g"].reshape(L, 1, HIDDEN),
        params["ln1_b"].reshape(L, 1, HIDDEN),
        params["wqkv"],                                  # (L, H, 3H)
        params["bqkv"].reshape(L, 1, 3 * HIDDEN),
        params["wo"],                                    # (L, H, H)
        params["bo"].reshape(L, 1, HIDDEN),
        params["ln2_g"].reshape(L, 1, HIDDEN),
        params["ln2_b"].reshape(L, 1, HIDDEN),
        params["w1"],                                    # (L, H, I)
        params["b1"].reshape(L, 1, INTERMEDIATE),
        params["w2"],                                    # (L, I, H)
        params["b2"].reshape(L, 1, HIDDEN),
        params["lnf_g"].reshape(1, HIDDEN),
        params["lnf_b"].reshape(1, HIDDEN),
        params["seg_w"].reshape(1, HIDDEN),              # Conv2d(H,1,k=1) weight
        params["seg_b"].reshape(1, 1),
        U_CONST,                                         # (HO, SP)
        VT_CONST,                                        # (SP, WO)
    )

    in_specs = [pl.BlockSpec((1, SP, PATCH_DIM), lambda i: (i, 0, 0))]
    in_specs += [_full_spec(a) for a in args[1:]]

    return pl.pallas_call(
        _model_kernel,
        grid=(b,),
        in_specs=in_specs,
        out_specs=pl.BlockSpec((1, 1, HO, WO), lambda i: (i, 0, 0, 0)),
        out_shape=jax.ShapeDtypeStruct((b, 1, HO, WO), jnp.float32),
        compiler_params=pltpu.CompilerParams(dimension_semantics=("parallel",)),
    )(*args)


# --------------------------------- parameters --------------------------------
def init_params(key):
    def nrm(k, shape, scale=0.02):
        return scale * jax.random.normal(k, shape, jnp.float32)

    keys = iter(jax.random.split(key, 16))
    return {
        "patch_w": nrm(next(keys), (PATCH_DIM, HIDDEN)),
        "patch_b": jnp.zeros((HIDDEN,), jnp.float32),
        "cls_token": nrm(next(keys), (1, 1, HIDDEN)),
        "pos_embed": nrm(next(keys), (1, S_VALID, HIDDEN)),
        "ln1_g": jnp.ones((NLAYERS, HIDDEN), jnp.float32),
        "ln1_b": jnp.zeros((NLAYERS, HIDDEN), jnp.float32),
        "wqkv": nrm(next(keys), (NLAYERS, HIDDEN, 3 * HIDDEN)),
        "bqkv": jnp.zeros((NLAYERS, 3 * HIDDEN), jnp.float32),
        "wo": nrm(next(keys), (NLAYERS, HIDDEN, HIDDEN)),
        "bo": jnp.zeros((NLAYERS, HIDDEN), jnp.float32),
        "ln2_g": jnp.ones((NLAYERS, HIDDEN), jnp.float32),
        "ln2_b": jnp.zeros((NLAYERS, HIDDEN), jnp.float32),
        "w1": nrm(next(keys), (NLAYERS, HIDDEN, INTERMEDIATE)),
        "b1": jnp.zeros((NLAYERS, INTERMEDIATE), jnp.float32),
        "w2": nrm(next(keys), (NLAYERS, INTERMEDIATE, HIDDEN)),
        "b2": jnp.zeros((NLAYERS, HIDDEN), jnp.float32),
        "lnf_g": jnp.ones((HIDDEN,), jnp.float32),
        "lnf_b": jnp.zeros((HIDDEN,), jnp.float32),
        "seg_w": nrm(next(keys), (HIDDEN, 1)),
        "seg_b": jnp.zeros((1,), jnp.float32),
    }


# ------------------------------------ main ------------------------------------
if __name__ == "__main__":
    key = jax.random.PRNGKey(0)
    pkey, xkey = jax.random.split(key)
    params = init_params(pkey)
    pixel_values = jax.random.normal(xkey, (BATCH, IN_CH, IMG, IMG), jnp.float32)

    out = segmentation_model_forward(pixel_values, params)
    out = jax.block_until_ready(out)

    expected = (BATCH, 1, (IMG // PATCH) * UPSCALE, (IMG // PATCH) * UPSCALE)
    assert out.shape == expected, (out.shape, expected)
    assert bool(jnp.all(jnp.isfinite(out)))
    print("KERNEL_OK")
</pallas_src>

<mosaic_0001>
module attributes {stable_mosaic.version = 11 : i64} {
  func.func @_model_kernel(%arg0: i32, %arg1: memref<1x24x192xf32, #tpu.memory_space<vmem>>, %arg2: memref<24x32xf32, #tpu.memory_space<vmem>>, %arg3: memref<192x32xf32, #tpu.memory_space<vmem>>, %arg4: memref<1x32xf32, #tpu.memory_space<vmem>>, %arg5: memref<2x1x32xf32, #tpu.memory_space<vmem>>, %arg6: memref<2x1x32xf32, #tpu.memory_space<vmem>>, %arg7: memref<2x32x96xf32, #tpu.memory_space<vmem>>, %arg8: memref<2x1x96xf32, #tpu.memory_space<vmem>>, %arg9: memref<2x32x32xf32, #tpu.memory_space<vmem>>, %arg10: memref<2x1x32xf32, #tpu.memory_space<vmem>>, %arg11: memref<2x1x32xf32, #tpu.memory_space<vmem>>, %arg12: memref<2x1x32xf32, #tpu.memory_space<vmem>>, %arg13: memref<2x32x64xf32, #tpu.memory_space<vmem>>, %arg14: memref<2x1x64xf32, #tpu.memory_space<vmem>>, %arg15: memref<2x64x32xf32, #tpu.memory_space<vmem>>, %arg16: memref<2x1x32xf32, #tpu.memory_space<vmem>>, %arg17: memref<1x32xf32, #tpu.memory_space<vmem>>, %arg18: memref<1x32xf32, #tpu.memory_space<vmem>>, %arg19: memref<1x32xf32, #tpu.memory_space<vmem>>, %arg20: memref<1x1xf32, #tpu.memory_space<vmem>>, %arg21: memref<32x24xf32, #tpu.memory_space<vmem>>, %arg22: memref<24x32xf32, #tpu.memory_space<vmem>>, %arg23: memref<1x1x32x32xf32, #tpu.memory_space<vmem>>) attributes {dimension_semantics = [#tpu.dimension_semantics<parallel>], iteration_bounds = array<i64: 2>, scalar_prefetch = 0 : i64, scratch_operands = 0 : i64, tpu.core_type = #tpu.core_type<tc>, window_params = [{transform_indices = @transform_0, window_bounds = array<i64: 1, 24, 192>}, {pipeline_mode = #tpu.pipeline_mode<synchronous>, transform_indices = @transform_1, window_bounds = array<i64: 24, 32>}, {pipeline_mode = #tpu.pipeline_mode<synchronous>, transform_indices = @transform_2, window_bounds = array<i64: 192, 32>}, {pipeline_mode = #tpu.pipeline_mode<synchronous>, transform_indices = @transform_3, window_bounds = array<i64: 1, 32>}, {pipeline_mode = #tpu.pipeline_mode<synchronous>, transform_indices = @transform_4, window_bounds = array<i64: 2, 1, 32>}, {pipeline_mode = #tpu.pipeline_mode<synchronous>, transform_indices = @transform_5, window_bounds = array<i64: 2, 1, 32>}, {pipeline_mode = #tpu.pipeline_mode<synchronous>, transform_indices = @transform_6, window_bounds = array<i64: 2, 32, 96>}, {pipeline_mode = #tpu.pipeline_mode<synchronous>, transform_indices = @transform_7, window_bounds = array<i64: 2, 1, 96>}, {pipeline_mode = #tpu.pipeline_mode<synchronous>, transform_indices = @transform_8, window_bounds = array<i64: 2, 32, 32>}, {pipeline_mode = #tpu.pipeline_mode<synchronous>, transform_indices = @transform_9, window_bounds = array<i64: 2, 1, 32>}, {pipeline_mode = #tpu.pipeline_mode<synchronous>, transform_indices = @transform_10, window_bounds = array<i64: 2, 1, 32>}, {pipeline_mode = #tpu.pipeline_mode<synchronous>, transform_indices = @transform_11, window_bounds = array<i64: 2, 1, 32>}, {pipeline_mode = #tpu.pipeline_mode<synchronous>, transform_indices = @transform_12, window_bounds = array<i64: 2, 32, 64>}, {pipeline_mode = #tpu.pipeline_mode<synchronous>, transform_indices = @transform_13, window_bounds = array<i64: 2, 1, 64>}, {pipeline_mode = #tpu.pipeline_mode<synchronous>, transform_indices = @transform_14, window_bounds = array<i64: 2, 64, 32>}, {pipeline_mode = #tpu.pipeline_mode<synchronous>, transform_indices = @transform_15, window_bounds = array<i64: 2, 1, 32>}, {pipeline_mode = #tpu.pipeline_mode<synchronous>, transform_indices = @transform_16, window_bounds = array<i64: 1, 32>}, {pipeline_mode = #tpu.pipeline_mode<synchronous>, transform_indices = @transform_17, window_bounds = array<i64: 1, 32>}, {pipeline_mode = #tpu.pipeline_mode<synchronous>, transform_indices = @transform_18, window_bounds = array<i64: 1, 32>}, {pipeline_mode = #tpu.pipeline_mode<synchronous>, transform_indices = @transform_19, window_bounds = array<i64: 1, 1>}, {pipeline_mode = #tpu.pipeline_mode<synchronous>, transform_indices = @transform_20, window_bounds = array<i64: 32, 24>}, {pipeline_mode = #tpu.pipeline_mode<synchronous>, transform_indices = @transform_21, window_bounds = array<i64: 24, 32>}, {transform_indices = @transform_22, window_bounds = array<i64: 1, 1, 32, 32>}]} {
    %c0 = arith.constant 0 : index
    %c0_0 = arith.constant 0 : index
    %c0_1 = arith.constant 0 : index
    %0 = vector.load %arg1[%c0, %c0_0, %c0_1] : memref<1x24x192xf32, #tpu.memory_space<vmem>>, vector<1x24x192xf32>
    %1 = vector.shape_cast %0 : vector<1x24x192xf32> to vector<24x192xf32>
    %c0_2 = arith.constant 0 : index
    %c0_3 = arith.constant 0 : index
    %2 = vector.load %arg3[%c0_2, %c0_3] : memref<192x32xf32, #tpu.memory_space<vmem>>, vector<192x32xf32>
    %cst = arith.constant dense<0.000000e+00> : vector<24x32xf32>
    %3 = tpu.matmul %1, %2, %cst {dimension_numbers = #tpu.dot_dimension_numbers<[1], [0], [0], [1], [0, 0, 1, 1], [], []>} : vector<24x192xf32>, vector<192x32xf32>, vector<24x32xf32> -> vector<24x32xf32>
    %4 = tpu.iota {dimensions = array<i32: 0>} : vector<24x1xi32>
    %c1_i32 = arith.constant 1 : i32
    %5 = vector.broadcast %c1_i32 : i32 to vector<24x1xi32>
    %6 = arith.cmpi sge, %4, %5 : vector<24x1xi32>
    %c17_i32 = arith.constant 17 : i32
    %7 = vector.broadcast %c17_i32 : i32 to vector<24x1xi32>
    %8 = arith.cmpi slt, %4, %7 : vector<24x1xi32>
    %9 = arith.andi %6, %8 : vector<24x1xi1>
    %10 = arith.extui %9 : vector<24x1xi1> to vector<24x1xi32>
    %11 = arith.sitofp %10 : vector<24x1xi32> to vector<24x1xf32>
    %c0_4 = arith.constant 0 : index
    %c0_5 = arith.constant 0 : index
    %12 = vector.load %arg2[%c0_4, %c0_5] : memref<24x32xf32, #tpu.memory_space<vmem>>, vector<24x32xf32>
    %13 = arith.addf %12, %3 : vector<24x32xf32>
    %c0_6 = arith.constant 0 : index
    %c0_7 = arith.constant 0 : index
    %14 = vector.load %arg4[%c0_6, %c0_7] : memref<1x32xf32, #tpu.memory_space<vmem>>, vector<1x32xf32>
    %15 = vector.broadcast %11 : vector<24x1xf32> to vector<24x32xf32>
    %16 = vector.broadcast %14 : vector<1x32xf32> to vector<24x32xf32>
    %17 = arith.mulf %15, %16 : vector<24x32xf32>
    %18 = arith.addf %13, %17 : vector<24x32xf32>
    %19 = tpu.iota {dimensions = array<i32: 1>} : vector<1x24xi32>
    %c17_i32_8 = arith.constant 17 : i32
    %20 = vector.broadcast %c17_i32_8 : i32 to vector<1x24xi32>
    %21 = arith.cmpi slt, %19, %20 : vector<1x24xi32>
    %c0_9 = arith.constant 0 : index
    %c0_10 = arith.constant 0 : index
    %c0_11 = arith.constant 0 : index
    %22 = vector.load %arg5[%c0_9, %c0_10, %c0_11] : memref<2x1x32xf32, #tpu.memory_space<vmem>>, vector<1x1x32xf32>
    %23 = vector.shape_cast %22 : vector<1x1x32xf32> to vector<1x32xf32>
    %c0_12 = arith.constant 0 : index
    %c0_13 = arith.constant 0 : index
    %c0_14 = arith.constant 0 : index
    %24 = vector.load %arg6[%c0_12, %c0_13, %c0_14] : memref<2x1x32xf32, #tpu.memory_space<vmem>>, vector<1x1x32xf32>
    %25 = vector.shape_cast %24 : vector<1x1x32xf32> to vector<1x32xf32>
    %cst_15 = arith.constant dense<0.000000e+00> : vector<24xf32>
    %26 = vector.multi_reduction <add>, %18, %cst_15 [1] : vector<24x32xf32> to vector<24xf32>
    %27 = vector.shape_cast %26 : vector<24xf32> to vector<24x1xf32>
    %cst_16 = arith.constant 3.200000e+01 : f32
    %28 = vector.broadcast %cst_16 : f32 to vector<24x1xf32>
    %29 = arith.divf %27, %28 : vector<24x1xf32>
    %30 = vector.broadcast %29 : vector<24x1xf32> to vector<24x32xf32>
    %31 = arith.subf %18, %30 : vector<24x32xf32>
    %32 = arith.mulf %31, %31 : vector<24x32xf32>
    %cst_17 = arith.constant dense<0.000000e+00> : vector<24xf32>
    %33 = vector.multi_reduction <add>, %32, %cst_17 [1] : vector<24x32xf32> to vector<24xf32>
    %34 = vector.shape_cast %33 : vector<24xf32> to vector<24x1xf32>
    %cst_18 = arith.constant 3.200000e+01 : f32
    %35 = vector.broadcast %cst_18 : f32 to vector<24x1xf32>
    %36 = arith.divf %34, %35 : vector<24x1xf32>
    %37 = vector.broadcast %29 : vector<24x1xf32> to vector<24x32xf32>
    %38 = arith.subf %18, %37 : vector<24x32xf32>
    %cst_19 = arith.constant 9.99999996E-13 : f32
    %39 = vector.broadcast %cst_19 : f32 to vector<24x1xf32>
    %40 = arith.addf %36, %39 : vector<24x1xf32>
    %41 = math.rsqrt %40 : vector<24x1xf32>
    %42 = vector.broadcast %41 : vector<24x1xf32> to vector<24x32xf32>
    %43 = arith.mulf %38, %42 : vector<24x32xf32>
    %44 = vector.broadcast %23 : vector<1x32xf32> to vector<24x32xf32>
    %45 = arith.mulf %43, %44 : vector<24x32xf32>
    %46 = vector.broadcast %25 : vector<1x32xf32> to vector<24x32xf32>
    %47 = arith.addf %45, %46 : vector<24x32xf32>
    %c0_20 = arith.constant 0 : index
    %c0_21 = arith.constant 0 : index
    %c0_22 = arith.constant 0 : index
    %48 = vector.load %arg7[%c0_20, %c0_21, %c0_22] : memref<2x32x96xf32, #tpu.memory_space<vmem>>, vector<1x32x96xf32>
    %49 = vector.shape_cast %48 : vector<1x32x96xf32> to vector<32x96xf32>
    %cst_23 = arith.constant dense<0.000000e+00> : vector<24x96xf32>
    %50 = tpu.matmul %47, %49, %cst_23 {dimension_numbers = #tpu.dot_dimension_numbers<[1], [0], [0], [1], [0, 0, 1, 1], [], []>} : vector<24x32xf32>, vector<32x96xf32>, vector<24x96xf32> -> vector<24x96xf32>
    %c0_24 = arith.constant 0 : index
    %c0_25 = arith.constant 0 : index
    %c0_26 = arith.constant 0 : index
    %51 = vector.load %arg8[%c0_24, %c0_25, %c0_26] : memref<2x1x96xf32, #tpu.memory_space<vmem>>, vector<1x1x96xf32>
    %52 = vector.shape_cast %51 : vector<1x1x96xf32> to vector<1x96xf32>
    %53 = vector.broadcast %52 : vector<1x96xf32> to vector<24x96xf32>
    %54 = arith.addf %50, %53 : vector<24x96xf32>
    %55 = vector.extract_strided_slice %54 {offsets = [0, 0], sizes = [24, 8], strides = [1, 1]} : vector<24x96xf32> to vector<24x8xf32>
    %56 = vector.extract_strided_slice %54 {offsets = [0, 32], sizes = [24, 8], strides = [1, 1]} : vector<24x96xf32> to vector<24x8xf32>
    %57 = vector.extract_strided_slice %54 {offsets = [0, 64], sizes = [24, 8], strides = [1, 1]} : vector<24x96xf32> to vector<24x8xf32>
    %cst_27 = arith.constant dense<0.000000e+00> : vector<24x24xf32>
    %58 = tpu.matmul %55, %56, %cst_27 {dimension_numbers = #tpu.dot_dimension_numbers<[1], [1], [0], [0], [0, 0, 1, 0], [], []>} : vector<24x8xf32>, vector<24x8xf32>, vector<24x24xf32> -> vector<24x24xf32>
    %cst_28 = arith.constant 0.353553385 : f32
    %59 = vector.broadcast %cst_28 : f32 to vector<24x24xf32>
    %60 = arith.mulf %58, %59 : vector<24x24xf32>
    %cst_29 = arith.constant -1.000000e+30 : f32
    %61 = vector.shape_cast %21 : vector<1x24xi1> to vector<1x24xi1>
    %62 = vector.broadcast %61 : vector<1x24xi1> to vector<24x24xi1>
    %63 = vector.broadcast %cst_29 : f32 to vector<24x24xf32>
    %64 = arith.select %62, %60, %63 : vector<24x24xi1>, vector<24x24xf32>
    %cst_30 = arith.constant dense<0xFF800000> : vector<24xf32>
    %65 = vector.multi_reduction <maximumf>, %64, %cst_30 [1] : vector<24x24xf32> to vector<24xf32>
    %66 = vector.shape_cast %65 : vector<24xf32> to vector<24x1xf32>
    %67 = vector.broadcast %66 : vector<24x1xf32> to vector<24x24xf32>
    %68 = arith.subf %64, %67 : vector<24x24xf32>
    %69 = math.exp %68 : vector<24x24xf32>
    %cst_31 = arith.constant dense<0.000000e+00> : vector<24xf32>
    %70 = vector.multi_reduction <add>, %69, %cst_31 [1] : vector<24x24xf32> to vector<24xf32>
    %71 = vector.shape_cast %70 : vector<24xf32> to vector<24x1xf32>
    %72 = tpu.reciprocal %71 {approx = true} : vector<24x1xf32> -> vector<24x1xf32>
    %73 = vector.broadcast %72 : vector<24x1xf32> to vector<24x24xf32>
    %74 = arith.mulf %69, %73 : vector<24x24xf32>
    %cst_32 = arith.constant dense<0.000000e+00> : vector<24x8xf32>
    %75 = tpu.matmul %74, %57, %cst_32 {dimension_numbers = #tpu.dot_dimension_numbers<[1], [0], [0], [1], [0, 0, 1, 1], [], []>} : vector<24x24xf32>, vector<24x8xf32>, vector<24x8xf32> -> vector<24x8xf32>
    %76 = vector.extract_strided_slice %54 {offsets = [0, 8], sizes = [24, 8], strides = [1, 1]} : vector<24x96xf32> to vector<24x8xf32>
    %77 = vector.extract_strided_slice %54 {offsets = [0, 40], sizes = [24, 8], strides = [1, 1]} : vector<24x96xf32> to vector<24x8xf32>
    %78 = vector.extract_strided_slice %54 {offsets = [0, 72], sizes = [24, 8], strides = [1, 1]} : vector<24x96xf32> to vector<24x8xf32>
    %cst_33 = arith.constant dense<0.000000e+00> : vector<24x24xf32>
    %79 = tpu.matmul %76, %77, %cst_33 {dimension_numbers = #tpu.dot_dimension_numbers<[1], [1], [0], [0], [0, 0, 1, 0], [], []>} : vector<24x8xf32>, vector<24x8xf32>, vector<24x24xf32> -> vector<24x24xf32>
    %cst_34 = arith.constant 0.353553385 : f32
    %80 = vector.broadcast %cst_34 : f32 to vector<24x24xf32>
    %81 = arith.mulf %79, %80 : vector<24x24xf32>
    %cst_35 = arith.constant -1.000000e+30 : f32
    %82 = vector.shape_cast %21 : vector<1x24xi1> to vector<1x24xi1>
    %83 = vector.broadcast %82 : vector<1x24xi1> to vector<24x24xi1>
    %84 = vector.broadcast %cst_35 : f32 to vector<24x24xf32>
    %85 = arith.select %83, %81, %84 : vector<24x24xi1>, vector<24x24xf32>
    %cst_36 = arith.constant dense<0xFF800000> : vector<24xf32>
    %86 = vector.multi_reduction <maximumf>, %85, %cst_36 [1] : vector<24x24xf32> to vector<24xf32>
    %87 = vector.shape_cast %86 : vector<24xf32> to vector<24x1xf32>
    %88 = vector.broadcast %87 : vector<24x1xf32> to vector<24x24xf32>
    %89 = arith.subf %85, %88 : vector<24x24xf32>
    %90 = math.exp %89 : vector<24x24xf32>
    %cst_37 = arith.constant dense<0.000000e+00> : vector<24xf32>
    %91 = vector.multi_reduction <add>, %90, %cst_37 [1] : vector<24x24xf32> to vector<24xf32>
    %92 = vector.shape_cast %91 : vector<24xf32> to vector<24x1xf32>
    %93 = tpu.reciprocal %92 {approx = true} : vector<24x1xf32> -> vector<24x1xf32>
    %94 = vector.broadcast %93 : vector<24x1xf32> to vector<24x24xf32>
    %95 = arith.mulf %90, %94 : vector<24x24xf32>
    %cst_38 = arith.constant dense<0.000000e+00> : vector<24x8xf32>
    %96 = tpu.matmul %95, %78, %cst_38 {dimension_numbers = #tpu.dot_dimension_numbers<[1], [0], [0], [1], [0, 0, 1, 1], [], []>} : vector<24x24xf32>, vector<24x8xf32>, vector<24x8xf32> -> vector<24x8xf32>
    %97 = vector.extract_strided_slice %54 {offsets = [0, 16], sizes = [24, 8], strides = [1, 1]} : vector<24x96xf32> to vector<24x8xf32>
    %98 = vector.extract_strided_slice %54 {offsets = [0, 48], sizes = [24, 8], strides = [1, 1]} : vector<24x96xf32> to vector<24x8xf32>
    %99 = vector.extract_strided_slice %54 {offsets = [0, 80], sizes = [24, 8], strides = [1, 1]} : vector<24x96xf32> to vector<24x8xf32>
    %cst_39 = arith.constant dense<0.000000e+00> : vector<24x24xf32>
    %100 = tpu.matmul %97, %98, %cst_39 {dimension_numbers = #tpu.dot_dimension_numbers<[1], [1], [0], [0], [0, 0, 1, 0], [], []>} : vector<24x8xf32>, vector<24x8xf32>, vector<24x24xf32> -> vector<24x24xf32>
    %cst_40 = arith.constant 0.353553385 : f32
    %101 = vector.broadcast %cst_40 : f32 to vector<24x24xf32>
    %102 = arith.mulf %100, %101 : vector<24x24xf32>
    %cst_41 = arith.constant -1.000000e+30 : f32
    %103 = vector.shape_cast %21 : vector<1x24xi1> to vector<1x24xi1>
    %104 = vector.broadcast %103 : vector<1x24xi1> to vector<24x24xi1>
    %105 = vector.broadcast %cst_41 : f32 to vector<24x24xf32>
    %106 = arith.select %104, %102, %105 : vector<24x24xi1>, vector<24x24xf32>
    %cst_42 = arith.constant dense<0xFF800000> : vector<24xf32>
    %107 = vector.multi_reduction <maximumf>, %106, %cst_42 [1] : vector<24x24xf32> to vector<24xf32>
    %108 = vector.shape_cast %107 : vector<24xf32> to vector<24x1xf32>
    %109 = vector.broadcast %108 : vector<24x1xf32> to vector<24x24xf32>
    %110 = arith.subf %106, %109 : vector<24x24xf32>
    %111 = math.exp %110 : vector<24x24xf32>
    %cst_43 = arith.constant dense<0.000000e+00> : vector<24xf32>
    %112 = vector.multi_reduction <add>, %111, %cst_43 [1] : vector<24x24xf32> to vector<24xf32>
    %113 = vector.shape_cast %112 : vector<24xf32> to vector<24x1xf32>
    %114 = tpu.reciprocal %113 {approx = true} : vector<24x1xf32> -> vector<24x1xf32>
    %115 = vector.broadcast %114 : vector<24x1xf32> to vector<24x24xf32>
    %116 = arith.mulf %111, %115 : vector<24x24xf32>
    %cst_44 = arith.constant dense<0.000000e+00> : vector<24x8xf32>
    %117 = tpu.matmul %116, %99, %cst_44 {dimension_numbers = #tpu.dot_dimension_numbers<[1], [0], [0], [1], [0, 0, 1, 1], [], []>} : vector<24x24xf32>, vector<24x8xf32>, vector<24x8xf32> -> vector<24x8xf32>
    %118 = vector.extract_strided_slice %54 {offsets = [0, 24], sizes = [24, 8], strides = [1, 1]} : vector<24x96xf32> to vector<24x8xf32>
    %119 = vector.extract_strided_slice %54 {offsets = [0, 56], sizes = [24, 8], strides = [1, 1]} : vector<24x96xf32> to vector<24x8xf32>
    %120 = vector.extract_strided_slice %54 {offsets = [0, 88], sizes = [24, 8], strides = [1, 1]} : vector<24x96xf32> to vector<24x8xf32>
    %cst_45 = arith.constant dense<0.000000e+00> : vector<24x24xf32>
    %121 = tpu.matmul %118, %119, %cst_45 {dimension_numbers = #tpu.dot_dimension_numbers<[1], [1], [0], [0], [0, 0, 1, 0], [], []>} : vector<24x8xf32>, vector<24x8xf32>, vector<24x24xf32> -> vector<24x24xf32>
    %cst_46 = arith.constant 0.353553385 : f32
    %122 = vector.broadcast %cst_46 : f32 to vector<24x24xf32>
    %123 = arith.mulf %121, %122 : vector<24x24xf32>
    %cst_47 = arith.constant -1.000000e+30 : f32
    %124 = vector.shape_cast %21 : vector<1x24xi1> to vector<1x24xi1>
    %125 = vector.broadcast %124 : vector<1x24xi1> to vector<24x24xi1>
    %126 = vector.broadcast %cst_47 : f32 to vector<24x24xf32>
    %127 = arith.select %125, %123, %126 : vector<24x24xi1>, vector<24x24xf32>
    %cst_48 = arith.constant dense<0xFF800000> : vector<24xf32>
    %128 = vector.multi_reduction <maximumf>, %127, %cst_48 [1] : vector<24x24xf32> to vector<24xf32>
    %129 = vector.shape_cast %128 : vector<24xf32> to vector<24x1xf32>
    %130 = vector.broadcast %129 : vector<24x1xf32> to vector<24x24xf32>
    %131 = arith.subf %127, %130 : vector<24x24xf32>
    %132 = math.exp %131 : vector<24x24xf32>
    %cst_49 = arith.constant dense<0.000000e+00> : vector<24xf32>
    %133 = vector.multi_reduction <add>, %132, %cst_49 [1] : vector<24x24xf32> to vector<24xf32>
    %134 = vector.shape_cast %133 : vector<24xf32> to vector<24x1xf32>
    %135 = tpu.reciprocal %134 {approx = true} : vector<24x1xf32> -> vector<24x1xf32>
    %136 = vector.broadcast %135 : vector<24x1xf32> to vector<24x24xf32>
    %137 = arith.mulf %132, %136 : vector<24x24xf32>
    %cst_50 = arith.constant dense<0.000000e+00> : vector<24x8xf32>
    %138 = tpu.matmul %137, %120, %cst_50 {dimension_numbers = #tpu.dot_dimension_numbers<[1], [0], [0], [1], [0, 0, 1, 1], [], []>} : vector<24x24xf32>, vector<24x8xf32>, vector<24x8xf32> -> vector<24x8xf32>
    %139 = tpu.concatenate %75, %96, %117, %138 in 1 : vector<24x8xf32>, vector<24x8xf32>, vector<24x8xf32>, vector<24x8xf32> -> vector<24x32xf32>
    %c0_51 = arith.constant 0 : index
    %c0_52 = arith.constant 0 : index
    %c0_53 = arith.constant 0 : index
    %140 = vector.load %arg9[%c0_51, %c0_52, %c0_53] : memref<2x32x32xf32, #tpu.memory_space<vmem>>, vector<1x32x32xf32>
    %141 = vector.shape_cast %140 : vector<1x32x32xf32> to vector<32x32xf32>
    %cst_54 = arith.constant dense<0.000000e+00> : vector<24x32xf32>
    %142 = tpu.matmul %139, %141, %cst_54 {dimension_numbers = #tpu.dot_dimension_numbers<[1], [0], [0], [1], [0, 0, 1, 1], [], []>} : vector<24x32xf32>, vector<32x32xf32>, vector<24x32xf32> -> vector<24x32xf32>
    %c0_55 = arith.constant 0 : index
    %c0_56 = arith.constant 0 : index
    %c0_57 = arith.constant 0 : index
    %143 = vector.load %arg10[%c0_55, %c0_56, %c0_57] : memref<2x1x32xf32, #tpu.memory_space<vmem>>, vector<1x1x32xf32>
    %144 = vector.shape_cast %143 : vector<1x1x32xf32> to vector<1x32xf32>
    %145 = vector.broadcast %144 : vector<1x32xf32> to vector<24x32xf32>
    %146 = arith.addf %142, %145 : vector<24x32xf32>
    %147 = arith.addf %18, %146 : vector<24x32xf32>
    %c0_58 = arith.constant 0 : index
    %c0_59 = arith.constant 0 : index
    %c0_60 = arith.constant 0 : index
    %148 = vector.load %arg11[%c0_58, %c0_59, %c0_60] : memref<2x1x32xf32, #tpu.memory_space<vmem>>, vector<1x1x32xf32>
    %149 = vector.shape_cast %148 : vector<1x1x32xf32> to vector<1x32xf32>
    %c0_61 = arith.constant 0 : index
    %c0_62 = arith.constant 0 : index
    %c0_63 = arith.constant 0 : index
    %150 = vector.load %arg12[%c0_61, %c0_62, %c0_63] : memref<2x1x32xf32, #tpu.memory_space<vmem>>, vector<1x1x32xf32>
    %151 = vector.shape_cast %150 : vector<1x1x32xf32> to vector<1x32xf32>
    %cst_64 = arith.constant dense<0.000000e+00> : vector<24xf32>
    %152 = vector.multi_reduction <add>, %147, %cst_64 [1] : vector<24x32xf32> to vector<24xf32>
    %153 = vector.shape_cast %152 : vector<24xf32> to vector<24x1xf32>
    %cst_65 = arith.constant 3.200000e+01 : f32
    %154 = vector.broadcast %cst_65 : f32 to vector<24x1xf32>
    %155 = arith.divf %153, %154 : vector<24x1xf32>
    %156 = vector.broadcast %155 : vector<24x1xf32> to vector<24x32xf32>
    %157 = arith.subf %147, %156 : vector<24x32xf32>
    %158 = arith.mulf %157, %157 : vector<24x32xf32>
    %cst_66 = arith.constant dense<0.000000e+00> : vector<24xf32>
    %159 = vector.multi_reduction <add>, %158, %cst_66 [1] : vector<24x32xf32> to vector<24xf32>
    %160 = vector.shape_cast %159 : vector<24xf32> to vector<24x1xf32>
    %cst_67 = arith.constant 3.200000e+01 : f32
    %161 = vector.broadcast %cst_67 : f32 to vector<24x1xf32>
    %162 = arith.divf %160, %161 : vector<24x1xf32>
    %163 = vector.broadcast %155 : vector<24x1xf32> to vector<24x32xf32>
    %164 = arith.subf %147, %163 : vector<24x32xf32>
    %cst_68 = arith.constant 9.99999996E-13 : f32
    %165 = vector.broadcast %cst_68 : f32 to vector<24x1xf32>
    %166 = arith.addf %162, %165 : vector<24x1xf32>
    %167 = math.rsqrt %166 : vector<24x1xf32>
    %168 = vector.broadcast %167 : vector<24x1xf32> to vector<24x32xf32>
    %169 = arith.mulf %164, %168 : vector<24x32xf32>
    %170 = vector.broadcast %149 : vector<1x32xf32> to vector<24x32xf32>
    %171 = arith.mulf %169, %170 : vector<24x32xf32>
    %172 = vector.broadcast %151 : vector<1x32xf32> to vector<24x32xf32>
    %173 = arith.addf %171, %172 : vector<24x32xf32>
    %c0_69 = arith.constant 0 : index
    %c0_70 = arith.constant 0 : index
    %c0_71 = arith.constant 0 : index
    %174 = vector.load %arg13[%c0_69, %c0_70, %c0_71] : memref<2x32x64xf32, #tpu.memory_space<vmem>>, vector<1x32x64xf32>
    %175 = vector.shape_cast %174 : vector<1x32x64xf32> to vector<32x64xf32>
    %cst_72 = arith.constant dense<0.000000e+00> : vector<24x64xf32>
    %176 = tpu.matmul %173, %175, %cst_72 {dimension_numbers = #tpu.dot_dimension_numbers<[1], [0], [0], [1], [0, 0, 1, 1], [], []>} : vector<24x32xf32>, vector<32x64xf32>, vector<24x64xf32> -> vector<24x64xf32>
    %c0_73 = arith.constant 0 : index
    %c0_74 = arith.constant 0 : index
    %c0_75 = arith.constant 0 : index
    %177 = vector.load %arg14[%c0_73, %c0_74, %c0_75] : memref<2x1x64xf32, #tpu.memory_space<vmem>>, vector<1x1x64xf32>
    %178 = vector.shape_cast %177 : vector<1x1x64xf32> to vector<1x64xf32>
    %179 = vector.broadcast %178 : vector<1x64xf32> to vector<24x64xf32>
    %180 = arith.addf %176, %179 : vector<24x64xf32>
    %181 = arith.mulf %180, %180 : vector<24x64xf32>
    %182 = arith.mulf %180, %181 : vector<24x64xf32>
    %cst_76 = arith.constant 4.471500e-02 : f32
    %183 = vector.broadcast %cst_76 : f32 to vector<24x64xf32>
    %184 = arith.mulf %183, %182 : vector<24x64xf32>
    %185 = arith.addf %180, %184 : vector<24x64xf32>
    %cst_77 = arith.constant 0.797884583 : f32
    %186 = vector.broadcast %cst_77 : f32 to vector<24x64xf32>
    %187 = arith.mulf %186, %185 : vector<24x64xf32>
    %188 = math.tanh %187 : vector<24x64xf32>
    %cst_78 = arith.constant 1.000000e+00 : f32
    %189 = vector.broadcast %cst_78 : f32 to vector<24x64xf32>
    %190 = arith.addf %189, %188 : vector<24x64xf32>
    %cst_79 = arith.constant 5.000000e-01 : f32
    %191 = vector.broadcast %cst_79 : f32 to vector<24x64xf32>
    %192 = arith.mulf %191, %190 : vector<24x64xf32>
    %193 = arith.mulf %180, %192 : vector<24x64xf32>
    %c0_80 = arith.constant 0 : index
    %c0_81 = arith.constant 0 : index
    %c0_82 = arith.constant 0 : index
    %194 = vector.load %arg15[%c0_80, %c0_81, %c0_82] : memref<2x64x32xf32, #tpu.memory_space<vmem>>, vector<1x64x32xf32>
    %195 = vector.shape_cast %194 : vector<1x64x32xf32> to vector<64x32xf32>
    %cst_83 = arith.constant dense<0.000000e+00> : vector<24x32xf32>
    %196 = tpu.matmul %193, %195, %cst_83 {dimension_numbers = #tpu.dot_dimension_numbers<[1], [0], [0], [1], [0, 0, 1, 1], [], []>} : vector<24x64xf32>, vector<64x32xf32>, vector<24x32xf32> -> vector<24x32xf32>
    %c0_84 = arith.constant 0 : index
    %c0_85 = arith.constant 0 : index
    %c0_86 = arith.constant 0 : index
    %197 = vector.load %arg16[%c0_84, %c0_85, %c0_86] : memref<2x1x32xf32, #tpu.memory_space<vmem>>, vector<1x1x32xf32>
    %198 = vector.shape_cast %197 : vector<1x1x32xf32> to vector<1x32xf32>
    %199 = vector.broadcast %198 : vector<1x32xf32> to vector<24x32xf32>
    %200 = arith.addf %196, %199 : vector<24x32xf32>
    %201 = arith.addf %147, %200 : vector<24x32xf32>
    %c1 = arith.constant 1 : index
    %c0_87 = arith.constant 0 : index
    %c0_88 = arith.constant 0 : index
    %202 = vector.load %arg5[%c1, %c0_87, %c0_88] : memref<2x1x32xf32, #tpu.memory_space<vmem>>, vector<1x1x32xf32>
    %203 = vector.shape_cast %202 : vector<1x1x32xf32> to vector<1x32xf32>
    %c1_89 = arith.constant 1 : index
    %c0_90 = arith.constant 0 : index
    %c0_91 = arith.constant 0 : index
    %204 = vector.load %arg6[%c1_89, %c0_90, %c0_91] : memref<2x1x32xf32, #tpu.memory_space<vmem>>, vector<1x1x32xf32>
    %205 = vector.shape_cast %204 : vector<1x1x32xf32> to vector<1x32xf32>
    %cst_92 = arith.constant dense<0.000000e+00> : vector<24xf32>
    %206 = vector.multi_reduction <add>, %201, %cst_92 [1] : vector<24x32xf32> to vector<24xf32>
    %207 = vector.shape_cast %206 : vector<24xf32> to vector<24x1xf32>
    %cst_93 = arith.constant 3.200000e+01 : f32
    %208 = vector.broadcast %cst_93 : f32 to vector<24x1xf32>
    %209 = arith.divf %207, %208 : vector<24x1xf32>
    %210 = vector.broadcast %209 : vector<24x1xf32> to vector<24x32xf32>
    %211 = arith.subf %201, %210 : vector<24x32xf32>
    %212 = arith.mulf %211, %211 : vector<24x32xf32>
    %cst_94 = arith.constant dense<0.000000e+00> : vector<24xf32>
    %213 = vector.multi_reduction <add>, %212, %cst_94 [1] : vector<24x32xf32> to vector<24xf32>
    %214 = vector.shape_cast %213 : vector<24xf32> to vector<24x1xf32>
    %cst_95 = arith.constant 3.200000e+01 : f32
    %215 = vector.broadcast %cst_95 : f32 to vector<24x1xf32>
    %216 = arith.divf %214, %215 : vector<24x1xf32>
    %217 = vector.broadcast %209 : vector<24x1xf32> to vector<24x32xf32>
    %218 = arith.subf %201, %217 : vector<24x32xf32>
    %cst_96 = arith.constant 9.99999996E-13 : f32
    %219 = vector.broadcast %cst_96 : f32 to vector<24x1xf32>
    %220 = arith.addf %216, %219 : vector<24x1xf32>
    %221 = math.rsqrt %220 : vector<24x1xf32>
    %222 = vector.broadcast %221 : vector<24x1xf32> to vector<24x32xf32>
    %223 = arith.mulf %218, %222 : vector<24x32xf32>
    %224 = vector.broadcast %203 : vector<1x32xf32> to vector<24x32xf32>
    %225 = arith.mulf %223, %224 : vector<24x32xf32>
    %226 = vector.broadcast %205 : vector<1x32xf32> to vector<24x32xf32>
    %227 = arith.addf %225, %226 : vector<24x32xf32>
    %c1_97 = arith.constant 1 : index
    %c0_98 = arith.constant 0 : index
    %c0_99 = arith.constant 0 : index
    %228 = vector.load %arg7[%c1_97, %c0_98, %c0_99] : memref<2x32x96xf32, #tpu.memory_space<vmem>>, vector<1x32x96xf32>
    %229 = vector.shape_cast %228 : vector<1x32x96xf32> to vector<32x96xf32>
    %cst_100 = arith.constant dense<0.000000e+00> : vector<24x96xf32>
    %230 = tpu.matmul %227, %229, %cst_100 {dimension_numbers = #tpu.dot_dimension_numbers<[1], [0], [0], [1], [0, 0, 1, 1], [], []>} : vector<24x32xf32>, vector<32x96xf32>, vector<24x96xf32> -> vector<24x96xf32>
    %c1_101 = arith.constant 1 : index
    %c0_102 = arith.constant 0 : index
    %c0_103 = arith.constant 0 : index
    %231 = vector.load %arg8[%c1_101, %c0_102, %c0_103] : memref<2x1x96xf32, #tpu.memory_space<vmem>>, vector<1x1x96xf32>
    %232 = vector.shape_cast %231 : vector<1x1x96xf32> to vector<1x96xf32>
    %233 = vector.broadcast %232 : vector<1x96xf32> to vector<24x96xf32>
    %234 = arith.addf %230, %233 : vector<24x96xf32>
    %235 = vector.extract_strided_slice %234 {offsets = [0, 0], sizes = [24, 8], strides = [1, 1]} : vector<24x96xf32> to vector<24x8xf32>
    %236 = vector.extract_strided_slice %234 {offsets = [0, 32], sizes = [24, 8], strides = [1, 1]} : vector<24x96xf32> to vector<24x8xf32>
    %237 = vector.extract_strided_slice %234 {offsets = [0, 64], sizes = [24, 8], strides = [1, 1]} : vector<24x96xf32> to vector<24x8xf32>
    %cst_104 = arith.constant dense<0.000000e+00> : vector<24x24xf32>
    %238 = tpu.matmul %235, %236, %cst_104 {dimension_numbers = #tpu.dot_dimension_numbers<[1], [1], [0], [0], [0, 0, 1, 0], [], []>} : vector<24x8xf32>, vector<24x8xf32>, vector<24x24xf32> -> vector<24x24xf32>
    %cst_105 = arith.constant 0.353553385 : f32
    %239 = vector.broadcast %cst_105 : f32 to vector<24x24xf32>
    %240 = arith.mulf %238, %239 : vector<24x24xf32>
    %cst_106 = arith.constant -1.000000e+30 : f32
    %241 = vector.shape_cast %21 : vector<1x24xi1> to vector<1x24xi1>
    %242 = vector.broadcast %241 : vector<1x24xi1> to vector<24x24xi1>
    %243 = vector.broadcast %cst_106 : f32 to vector<24x24xf32>
    %244 = arith.select %242, %240, %243 : vector<24x24xi1>, vector<24x24xf32>
    %cst_107 = arith.constant dense<0xFF800000> : vector<24xf32>
    %245 = vector.multi_reduction <maximumf>, %244, %cst_107 [1] : vector<24x24xf32> to vector<24xf32>
    %246 = vector.shape_cast %245 : vector<24xf32> to vector<24x1xf32>
    %247 = vector.broadcast %246 : vector<24x1xf32> to vector<24x24xf32>
    %248 = arith.subf %244, %247 : vector<24x24xf32>
    %249 = math.exp %248 : vector<24x24xf32>
    %cst_108 = arith.constant dense<0.000000e+00> : vector<24xf32>
    %250 = vector.multi_reduction <add>, %249, %cst_108 [1] : vector<24x24xf32> to vector<24xf32>
    %251 = vector.shape_cast %250 : vector<24xf32> to vector<24x1xf32>
    %252 = tpu.reciprocal %251 {approx = true} : vector<24x1xf32> -> vector<24x1xf32>
    %253 = vector.broadcast %252 : vector<24x1xf32> to vector<24x24xf32>
    %254 = arith.mulf %249, %253 : vector<24x24xf32>
    %cst_109 = arith.constant dense<0.000000e+00> : vector<24x8xf32>
    %255 = tpu.matmul %254, %237, %cst_109 {dimension_numbers = #tpu.dot_dimension_numbers<[1], [0], [0], [1], [0, 0, 1, 1], [], []>} : vector<24x24xf32>, vector<24x8xf32>, vector<24x8xf32> -> vector<24x8xf32>
    %256 = vector.extract_strided_slice %234 {offsets = [0, 8], sizes = [24, 8], strides = [1, 1]} : vector<24x96xf32> to vector<24x8xf32>
    %257 = vector.extract_strided_slice %234 {offsets = [0, 40], sizes = [24, 8], strides = [1, 1]} : vector<24x96xf32> to vector<24x8xf32>
    %258 = vector.extract_strided_slice %234 {offsets = [0, 72], sizes = [24, 8], strides = [1, 1]} : vector<24x96xf32> to vector<24x8xf32>
    %cst_110 = arith.constant dense<0.000000e+00> : vector<24x24xf32>
    %259 = tpu.matmul %256, %257, %cst_110 {dimension_numbers = #tpu.dot_dimension_numbers<[1], [1], [0], [0], [0, 0, 1, 0], [], []>} : vector<24x8xf32>, vector<24x8xf32>, vector<24x24xf32> -> vector<24x24xf32>
    %cst_111 = arith.constant 0.353553385 : f32
    %260 = vector.broadcast %cst_111 : f32 to vector<24x24xf32>
    %261 = arith.mulf %259, %260 : vector<24x24xf32>
    %cst_112 = arith.constant -1.000000e+30 : f32
    %262 = vector.shape_cast %21 : vector<1x24xi1> to vector<1x24xi1>
    %263 = vector.broadcast %262 : vector<1x24xi1> to vector<24x24xi1>
    %264 = vector.broadcast %cst_112 : f32 to vector<24x24xf32>
    %265 = arith.select %263, %261, %264 : vector<24x24xi1>, vector<24x24xf32>
    %cst_113 = arith.constant dense<0xFF800000> : vector<24xf32>
    %266 = vector.multi_reduction <maximumf>, %265, %cst_113 [1] : vector<24x24xf32> to vector<24xf32>
    %267 = vector.shape_cast %266 : vector<24xf32> to vector<24x1xf32>
    %268 = vector.broadcast %267 : vector<24x1xf32> to vector<24x24xf32>
    %269 = arith.subf %265, %268 : vector<24x24xf32>
    %270 = math.exp %269 : vector<24x24xf32>
    %cst_114 = arith.constant dense<0.000000e+00> : vector<24xf32>
    %271 = vector.multi_reduction <add>, %270, %cst_114 [1] : vector<24x24xf32> to vector<24xf32>
    %272 = vector.shape_cast %271 : vector<24xf32> to vector<24x1xf32>
    %273 = tpu.reciprocal %272 {approx = true} : vector<24x1xf32> -> vector<24x1xf32>
    %274 = vector.broadcast %273 : vector<24x1xf32> to vector<24x24xf32>
    %275 = arith.mulf %270, %274 : vector<24x24xf32>
    %cst_115 = arith.constant dense<0.000000e+00> : vector<24x8xf32>
    %276 = tpu.matmul %275, %258, %cst_115 {dimension_numbers = #tpu.dot_dimension_numbers<[1], [0], [0], [1], [0, 0, 1, 1], [], []>} : vector<24x24xf32>, vector<24x8xf32>, vector<24x8xf32> -> vector<24x8xf32>
    %277 = vector.extract_strided_slice %234 {offsets = [0, 16], sizes = [24, 8], strides = [1, 1]} : vector<24x96xf32> to vector<24x8xf32>
    %278 = vector.extract_strided_slice %234 {offsets = [0, 48], sizes = [24, 8], strides = [1, 1]} : vector<24x96xf32> to vector<24x8xf32>
    %279 = vector.extract_strided_slice %234 {offsets = [0, 80], sizes = [24, 8], strides = [1, 1]} : vector<24x96xf32> to vector<24x8xf32>
    %cst_116 = arith.constant dense<0.000000e+00> : vector<24x24xf32>
    %280 = tpu.matmul %277, %278, %cst_116 {dimension_numbers = #tpu.dot_dimension_numbers<[1], [1], [0], [0], [0, 0, 1, 0], [], []>} : vector<24x8xf32>, vector<24x8xf32>, vector<24x24xf32> -> vector<24x24xf32>
    %cst_117 = arith.constant 0.353553385 : f32
    %281 = vector.broadcast %cst_117 : f32 to vector<24x24xf32>
    %282 = arith.mulf %280, %281 : vector<24x24xf32>
    %cst_118 = arith.constant -1.000000e+30 : f32
    %283 = vector.shape_cast %21 : vector<1x24xi1> to vector<1x24xi1>
    %284 = vector.broadcast %283 : vector<1x24xi1> to vector<24x24xi1>
    %285 = vector.broadcast %cst_118 : f32 to vector<24x24xf32>
    %286 = arith.select %284, %282, %285 : vector<24x24xi1>, vector<24x24xf32>
    %cst_119 = arith.constant dense<0xFF800000> : vector<24xf32>
    %287 = vector.multi_reduction <maximumf>, %286, %cst_119 [1] : vector<24x24xf32> to vector<24xf32>
    %288 = vector.shape_cast %287 : vector<24xf32> to vector<24x1xf32>
    %289 = vector.broadcast %288 : vector<24x1xf32> to vector<24x24xf32>
    %290 = arith.subf %286, %289 : vector<24x24xf32>
    %291 = math.exp %290 : vector<24x24xf32>
    %cst_120 = arith.constant dense<0.000000e+00> : vector<24xf32>
    %292 = vector.multi_reduction <add>, %291, %cst_120 [1] : vector<24x24xf32> to vector<24xf32>
    %293 = vector.shape_cast %292 : vector<24xf32> to vector<24x1xf32>
    %294 = tpu.reciprocal %293 {approx = true} : vector<24x1xf32> -> vector<24x1xf32>
    %295 = vector.broadcast %294 : vector<24x1xf32> to vector<24x24xf32>
    %296 = arith.mulf %291, %295 : vector<24x24xf32>
    %cst_121 = arith.constant dense<0.000000e+00> : vector<24x8xf32>
    %297 = tpu.matmul %296, %279, %cst_121 {dimension_numbers = #tpu.dot_dimension_numbers<[1], [0], [0], [1], [0, 0, 1, 1], [], []>} : vector<24x24xf32>, vector<24x8xf32>, vector<24x8xf32> -> vector<24x8xf32>
    %298 = vector.extract_strided_slice %234 {offsets = [0, 24], sizes = [24, 8], strides = [1, 1]} : vector<24x96xf32> to vector<24x8xf32>
    %299 = vector.extract_strided_slice %234 {offsets = [0, 56], sizes = [24, 8], strides = [1, 1]} : vector<24x96xf32> to vector<24x8xf32>
    %300 = vector.extract_strided_slice %234 {offsets = [0, 88], sizes = [24, 8], strides = [1, 1]} : vector<24x96xf32> to vector<24x8xf32>
    %cst_122 = arith.constant dense<0.000000e+00> : vector<24x24xf32>
    %301 = tpu.matmul %298, %299, %cst_122 {dimension_numbers = #tpu.dot_dimension_numbers<[1], [1], [0], [0], [0, 0, 1, 0], [], []>} : vector<24x8xf32>, vector<24x8xf32>, vector<24x24xf32> -> vector<24x24xf32>
    %cst_123 = arith.constant 0.353553385 : f32
    %302 = vector.broadcast %cst_123 : f32 to vector<24x24xf32>
    %303 = arith.mulf %301, %302 : vector<24x24xf32>
    %cst_124 = arith.constant -1.000000e+30 : f32
    %304 = vector.shape_cast %21 : vector<1x24xi1> to vector<1x24xi1>
    %305 = vector.broadcast %304 : vector<1x24xi1> to vector<24x24xi1>
    %306 = vector.broadcast %cst_124 : f32 to vector<24x24xf32>
    %307 = arith.select %305, %303, %306 : vector<24x24xi1>, vector<24x24xf32>
    %cst_125 = arith.constant dense<0xFF800000> : vector<24xf32>
    %308 = vector.multi_reduction <maximumf>, %307, %cst_125 [1] : vector<24x24xf32> to vector<24xf32>
    %309 = vector.shape_cast %308 : vector<24xf32> to vector<24x1xf32>
    %310 = vector.broadcast %309 : vector<24x1xf32> to vector<24x24xf32>
    %311 = arith.subf %307, %310 : vector<24x24xf32>
    %312 = math.exp %311 : vector<24x24xf32>
    %cst_126 = arith.constant dense<0.000000e+00> : vector<24xf32>
    %313 = vector.multi_reduction <add>, %312, %cst_126 [1] : vector<24x24xf32> to vector<24xf32>
    %314 = vector.shape_cast %313 : vector<24xf32> to vector<24x1xf32>
    %315 = tpu.reciprocal %314 {approx = true} : vector<24x1xf32> -> vector<24x1xf32>
    %316 = vector.broadcast %315 : vector<24x1xf32> to vector<24x24xf32>
    %317 = arith.mulf %312, %316 : vector<24x24xf32>
    %cst_127 = arith.constant dense<0.000000e+00> : vector<24x8xf32>
    %318 = tpu.matmul %317, %300, %cst_127 {dimension_numbers = #tpu.dot_dimension_numbers<[1], [0], [0], [1], [0, 0, 1, 1], [], []>} : vector<24x24xf32>, vector<24x8xf32>, vector<24x8xf32> -> vector<24x8xf32>
    %319 = tpu.concatenate %255, %276, %297, %318 in 1 : vector<24x8xf32>, vector<24x8xf32>, vector<24x8xf32>, vector<24x8xf32> -> vector<24x32xf32>
    %c1_128 = arith.constant 1 : index
    %c0_129 = arith.constant 0 : index
    %c0_130 = arith.constant 0 : index
    %320 = vector.load %arg9[%c1_128, %c0_129, %c0_130] : memref<2x32x32xf32, #tpu.memory_space<vmem>>, vector<1x32x32xf32>
    %321 = vector.shape_cast %320 : vector<1x32x32xf32> to vector<32x32xf32>
    %cst_131 = arith.constant dense<0.000000e+00> : vector<24x32xf32>
    %322 = tpu.matmul %319, %321, %cst_131 {dimension_numbers = #tpu.dot_dimension_numbers<[1], [0], [0], [1], [0, 0, 1, 1], [], []>} : vector<24x32xf32>, vector<32x32xf32>, vector<24x32xf32> -> vector<24x32xf32>
    %c1_132 = arith.constant 1 : index
    %c0_133 = arith.constant 0 : index
    %c0_134 = arith.constant 0 : index
    %323 = vector.load %arg10[%c1_132, %c0_133, %c0_134] : memref<2x1x32xf32, #tpu.memory_space<vmem>>, vector<1x1x32xf32>
    %324 = vector.shape_cast %323 : vector<1x1x32xf32> to vector<1x32xf32>
    %325 = vector.broadcast %324 : vector<1x32xf32> to vector<24x32xf32>
    %326 = arith.addf %322, %325 : vector<24x32xf32>
    %327 = arith.addf %201, %326 : vector<24x32xf32>
    %c1_135 = arith.constant 1 : index
    %c0_136 = arith.constant 0 : index
    %c0_137 = arith.constant 0 : index
    %328 = vector.load %arg11[%c1_135, %c0_136, %c0_137] : memref<2x1x32xf32, #tpu.memory_space<vmem>>, vector<1x1x32xf32>
    %329 = vector.shape_cast %328 : vector<1x1x32xf32> to vector<1x32xf32>
    %c1_138 = arith.constant 1 : index
    %c0_139 = arith.constant 0 : index
    %c0_140 = arith.constant 0 : index
    %330 = vector.load %arg12[%c1_138, %c0_139, %c0_140] : memref<2x1x32xf32, #tpu.memory_space<vmem>>, vector<1x1x32xf32>
    %331 = vector.shape_cast %330 : vector<1x1x32xf32> to vector<1x32xf32>
    %cst_141 = arith.constant dense<0.000000e+00> : vector<24xf32>
    %332 = vector.multi_reduction <add>, %327, %cst_141 [1] : vector<24x32xf32> to vector<24xf32>
    %333 = vector.shape_cast %332 : vector<24xf32> to vector<24x1xf32>
    %cst_142 = arith.constant 3.200000e+01 : f32
    %334 = vector.broadcast %cst_142 : f32 to vector<24x1xf32>
    %335 = arith.divf %333, %334 : vector<24x1xf32>
    %336 = vector.broadcast %335 : vector<24x1xf32> to vector<24x32xf32>
    %337 = arith.subf %327, %336 : vector<24x32xf32>
    %338 = arith.mulf %337, %337 : vector<24x32xf32>
    %cst_143 = arith.constant dense<0.000000e+00> : vector<24xf32>
    %339 = vector.multi_reduction <add>, %338, %cst_143 [1] : vector<24x32xf32> to vector<24xf32>
    %340 = vector.shape_cast %339 : vector<24xf32> to vector<24x1xf32>
    %cst_144 = arith.constant 3.200000e+01 : f32
    %341 = vector.broadcast %cst_144 : f32 to vector<24x1xf32>
    %342 = arith.divf %340, %341 : vector<24x1xf32>
    %343 = vector.broadcast %335 : vector<24x1xf32> to vector<24x32xf32>
    %344 = arith.subf %327, %343 : vector<24x32xf32>
    %cst_145 = arith.constant 9.99999996E-13 : f32
    %345 = vector.broadcast %cst_145 : f32 to vector<24x1xf32>
    %346 = arith.addf %342, %345 : vector<24x1xf32>
    %347 = math.rsqrt %346 : vector<24x1xf32>
    %348 = vector.broadcast %347 : vector<24x1xf32> to vector<24x32xf32>
    %349 = arith.mulf %344, %348 : vector<24x32xf32>
    %350 = vector.broadcast %329 : vector<1x32xf32> to vector<24x32xf32>
    %351 = arith.mulf %349, %350 : vector<24x32xf32>
    %352 = vector.broadcast %331 : vector<1x32xf32> to vector<24x32xf32>
    %353 = arith.addf %351, %352 : vector<24x32xf32>
    %c1_146 = arith.constant 1 : index
    %c0_147 = arith.constant 0 : index
    %c0_148 = arith.constant 0 : index
    %354 = vector.load %arg13[%c1_146, %c0_147, %c0_148] : memref<2x32x64xf32, #tpu.memory_space<vmem>>, vector<1x32x64xf32>
    %355 = vector.shape_cast %354 : vector<1x32x64xf32> to vector<32x64xf32>
    %cst_149 = arith.constant dense<0.000000e+00> : vector<24x64xf32>
    %356 = tpu.matmul %353, %355, %cst_149 {dimension_numbers = #tpu.dot_dimension_numbers<[1], [0], [0], [1], [0, 0, 1, 1], [], []>} : vector<24x32xf32>, vector<32x64xf32>, vector<24x64xf32> -> vector<24x64xf32>
    %c1_150 = arith.constant 1 : index
    %c0_151 = arith.constant 0 : index
    %c0_152 = arith.constant 0 : index
    %357 = vector.load %arg14[%c1_150, %c0_151, %c0_152] : memref<2x1x64xf32, #tpu.memory_space<vmem>>, vector<1x1x64xf32>
    %358 = vector.shape_cast %357 : vector<1x1x64xf32> to vector<1x64xf32>
    %359 = vector.broadcast %358 : vector<1x64xf32> to vector<24x64xf32>
    %360 = arith.addf %356, %359 : vector<24x64xf32>
    %361 = arith.mulf %360, %360 : vector<24x64xf32>
    %362 = arith.mulf %360, %361 : vector<24x64xf32>
    %cst_153 = arith.constant 4.471500e-02 : f32
    %363 = vector.broadcast %cst_153 : f32 to vector<24x64xf32>
    %364 = arith.mulf %363, %362 : vector<24x64xf32>
    %365 = arith.addf %360, %364 : vector<24x64xf32>
    %cst_154 = arith.constant 0.797884583 : f32
    %366 = vector.broadcast %cst_154 : f32 to vector<24x64xf32>
    %367 = arith.mulf %366, %365 : vector<24x64xf32>
    %368 = math.tanh %367 : vector<24x64xf32>
    %cst_155 = arith.constant 1.000000e+00 : f32
    %369 = vector.broadcast %cst_155 : f32 to vector<24x64xf32>
    %370 = arith.addf %369, %368 : vector<24x64xf32>
    %cst_156 = arith.constant 5.000000e-01 : f32
    %371 = vector.broadcast %cst_156 : f32 to vector<24x64xf32>
    %372 = arith.mulf %371, %370 : vector<24x64xf32>
    %373 = arith.mulf %360, %372 : vector<24x64xf32>
    %c1_157 = arith.constant 1 : index
    %c0_158 = arith.constant 0 : index
    %c0_159 = arith.constant 0 : index
    %374 = vector.load %arg15[%c1_157, %c0_158, %c0_159] : memref<2x64x32xf32, #tpu.memory_space<vmem>>, vector<1x64x32xf32>
    %375 = vector.shape_cast %374 : vector<1x64x32xf32> to vector<64x32xf32>
    %cst_160 = arith.constant dense<0.000000e+00> : vector<24x32xf32>
    %376 = tpu.matmul %373, %375, %cst_160 {dimension_numbers = #tpu.dot_dimension_numbers<[1], [0], [0], [1], [0, 0, 1, 1], [], []>} : vector<24x64xf32>, vector<64x32xf32>, vector<24x32xf32> -> vector<24x32xf32>
    %c1_161 = arith.constant 1 : index
    %c0_162 = arith.constant 0 : index
    %c0_163 = arith.constant 0 : index
    %377 = vector.load %arg16[%c1_161, %c0_162, %c0_163] : memref<2x1x32xf32, #tpu.memory_space<vmem>>, vector<1x1x32xf32>
    %378 = vector.shape_cast %377 : vector<1x1x32xf32> to vector<1x32xf32>
    %379 = vector.broadcast %378 : vector<1x32xf32> to vector<24x32xf32>
    %380 = arith.addf %376, %379 : vector<24x32xf32>
    %381 = arith.addf %327, %380 : vector<24x32xf32>
    %c0_164 = arith.constant 0 : index
    %c0_165 = arith.constant 0 : index
    %382 = vector.load %arg17[%c0_164, %c0_165] : memref<1x32xf32, #tpu.memory_space<vmem>>, vector<1x32xf32>
    %c0_166 = arith.constant 0 : index
    %c0_167 = arith.constant 0 : index
    %383 = vector.load %arg18[%c0_166, %c0_167] : memref<1x32xf32, #tpu.memory_space<vmem>>, vector<1x32xf32>
    %cst_168 = arith.constant dense<0.000000e+00> : vector<24xf32>
    %384 = vector.multi_reduction <add>, %381, %cst_168 [1] : vector<24x32xf32> to vector<24xf32>
    %385 = vector.shape_cast %384 : vector<24xf32> to vector<24x1xf32>
    %cst_169 = arith.constant 3.200000e+01 : f32
    %386 = vector.broadcast %cst_169 : f32 to vector<24x1xf32>
    %387 = arith.divf %385, %386 : vector<24x1xf32>
    %388 = vector.broadcast %387 : vector<24x1xf32> to vector<24x32xf32>
    %389 = arith.subf %381, %388 : vector<24x32xf32>
    %390 = arith.mulf %389, %389 : vector<24x32xf32>
    %cst_170 = arith.constant dense<0.000000e+00> : vector<24xf32>
    %391 = vector.multi_reduction <add>, %390, %cst_170 [1] : vector<24x32xf32> to vector<24xf32>
    %392 = vector.shape_cast %391 : vector<24xf32> to vector<24x1xf32>
    %cst_171 = arith.constant 3.200000e+01 : f32
    %393 = vector.broadcast %cst_171 : f32 to vector<24x1xf32>
    %394 = arith.divf %392, %393 : vector<24x1xf32>
    %395 = vector.broadcast %387 : vector<24x1xf32> to vector<24x32xf32>
    %396 = arith.subf %381, %395 : vector<24x32xf32>
    %cst_172 = arith.constant 9.99999996E-13 : f32
    %397 = vector.broadcast %cst_172 : f32 to vector<24x1xf32>
    %398 = arith.addf %394, %397 : vector<24x1xf32>
    %399 = math.rsqrt %398 : vector<24x1xf32>
    %400 = vector.broadcast %399 : vector<24x1xf32> to vector<24x32xf32>
    %401 = arith.mulf %396, %400 : vector<24x32xf32>
    %402 = vector.broadcast %382 : vector<1x32xf32> to vector<24x32xf32>
    %403 = arith.mulf %401, %402 : vector<24x32xf32>
    %404 = vector.broadcast %383 : vector<1x32xf32> to vector<24x32xf32>
    %405 = arith.addf %403, %404 : vector<24x32xf32>
    %c0_173 = arith.constant 0 : index
    %c0_174 = arith.constant 0 : index
    %406 = vector.load %arg19[%c0_173, %c0_174] : memref<1x32xf32, #tpu.memory_space<vmem>>, vector<1x32xf32>
    %407 = vector.broadcast %406 : vector<1x32xf32> to vector<24x32xf32>
    %408 = arith.mulf %405, %407 : vector<24x32xf32>
    %cst_175 = arith.constant dense<0.000000e+00> : vector<24xf32>
    %409 = vector.multi_reduction <add>, %408, %cst_175 [1] : vector<24x32xf32> to vector<24xf32>
    %410 = vector.shape_cast %409 : vector<24xf32> to vector<24x1xf32>
    %c0_176 = arith.constant 0 : index
    %c0_177 = arith.constant 0 : index
    %411 = vector.load %arg20[%c0_176, %c0_177] : memref<1x1xf32, #tpu.memory_space<vmem>>, vector<1x1xf32>
    %412 = vector.broadcast %411 : vector<1x1xf32> to vector<24x1xf32>
    %413 = arith.addf %410, %412 : vector<24x1xf32>
    %c0_178 = arith.constant 0 : index
    %c0_179 = arith.constant 0 : index
    %414 = vector.load %arg21[%c0_178, %c0_179] : memref<32x24xf32, #tpu.memory_space<vmem>>, vector<32x24xf32>
    %c0_180 = arith.constant 0 : index
    %c0_181 = arith.constant 0 : index
    %415 = vector.load %arg22[%c0_180, %c0_181] : memref<24x32xf32, #tpu.memory_space<vmem>>, vector<24x32xf32>
    %416 = vector.broadcast %413 : vector<24x1xf32> to vector<24x32xf32>
    %417 = arith.mulf %416, %415 : vector<24x32xf32>
    %cst_182 = arith.constant dense<0.000000e+00> : vector<32x32xf32>
    %418 = tpu.matmul %414, %417, %cst_182 {dimension_numbers = #tpu.dot_dimension_numbers<[1], [0], [0], [1], [0, 0, 1, 1], [], []>} : vector<32x24xf32>, vector<24x32xf32>, vector<32x32xf32> -> vector<32x32xf32>
    %c0_183 = arith.constant 0 : index
    %c0_184 = arith.constant 0 : index
    %c0_185 = arith.constant 0 : index
    %c0_186 = arith.constant 0 : index
    %419 = vector.load %arg23[%c0_183, %c0_184, %c0_185, %c0_186] : memref<1x1x32x32xf32, #tpu.memory_space<vmem>>, vector<1x1x32x32xf32>
    %420 = vector.shape_cast %419 : vector<1x1x32x32xf32> to vector<32x32xf32>
    %421 = vector.shape_cast %418 : vector<32x32xf32> to vector<1x1x32x32xf32>
    tpu.vector_store %arg23[%c0_183, %c0_184, %c0_185, %c0_186], %421 {strides = array<i32>} : memref<1x1x32x32xf32, #tpu.memory_space<vmem>>, vector<1x1x32x32xf32>,
    return
  }
  func.func @transform_0(%arg0: i32) -> (i32, i32, i32) {
    %c0_i32 = arith.constant 0 : i32
    %c0_i32_0 = arith.constant 0 : i32
    %c0_i32_1 = arith.constant 0 : i32
    return %arg0, %c0_i32, %c0_i32_0 : i32, i32, i32
  }
  func.func @transform_1(%arg0: i32) -> (i32, i32) {
    %c0_i32 = arith.constant 0 : i32
    %c0_i32_0 = arith.constant 0 : i32
    %c0_i32_1 = arith.constant 0 : i32
    return %c0_i32, %c0_i32_0 : i32, i32
  }
  func.func @transform_2(%arg0: i32) -> (i32, i32) {
    %c0_i32 = arith.constant 0 : i32
    %c0_i32_0 = arith.constant 0 : i32
    %c0_i32_1 = arith.constant 0 : i32
    return %c0_i32, %c0_i32_0 : i32, i32
  }
  func.func @transform_3(%arg0: i32) -> (i32, i32) {
    %c0_i32 = arith.constant 0 : i32
    %c0_i32_0 = arith.constant 0 : i32
    %c0_i32_1 = arith.constant 0 : i32
    return %c0_i32, %c0_i32_0 : i32, i32
  }
  func.func @transform_4(%arg0: i32) -> (i32, i32, i32) {
    %c0_i32 = arith.constant 0 : i32
    %c0_i32_0 = arith.constant 0 : i32
    %c0_i32_1 = arith.constant 0 : i32
    %c0_i32_2 = arith.constant 0 : i32
    return %c0_i32, %c0_i32_0, %c0_i32_1 : i32, i32, i32
  }
  func.func @transform_5(%arg0: i32) -> (i32, i32, i32) {
    %c0_i32 = arith.constant 0 : i32
    %c0_i32_0 = arith.constant 0 : i32
    %c0_i32_1 = arith.constant 0 : i32
    %c0_i32_2 = arith.constant 0 : i32
    return %c0_i32, %c0_i32_0, %c0_i32_1 : i32, i32, i32
  }
  func.func @transform_6(%arg0: i32) -> (i32, i32, i32) {
    %c0_i32 = arith.constant 0 : i32
    %c0_i32_0 = arith.constant 0 : i32
    %c0_i32_1 = arith.constant 0 : i32
    %c0_i32_2 = arith.constant 0 : i32
    return %c0_i32, %c0_i32_0, %c0_i32_1 : i32, i32, i32
  }
  func.func @transform_7(%arg0: i32) -> (i32, i32, i32) {
    %c0_i32 = arith.constant 0 : i32
    %c0_i32_0 = arith.constant 0 : i32
    %c0_i32_1 = arith.constant 0 : i32
    %c0_i32_2 = arith.constant 0 : i32
    return %c0_i32, %c0_i32_0, %c0_i32_1 : i32, i32, i32
  }
  func.func @transform_8(%arg0: i32) -> (i32, i32, i32) {
    %c0_i32 = arith.constant 0 : i32
    %c0_i32_0 = arith.constant 0 : i32
    %c0_i32_1 = arith.constant 0 : i32
    %c0_i32_2 = arith.constant 0 : i32
    return %c0_i32, %c0_i32_0, %c0_i32_1 : i32, i32, i32
  }
  func.func @transform_9(%arg0: i32) -> (i32, i32, i32) {
    %c0_i32 = arith.constant 0 : i32
    %c0_i32_0 = arith.constant 0 : i32
    %c0_i32_1 = arith.constant 0 : i32
    %c0_i32_2 = arith.constant 0 : i32
    return %c0_i32, %c0_i32_0, %c0_i32_1 : i32, i32, i32
  }
  func.func @transform_10(%arg0: i32) -> (i32, i32, i32) {
    %c0_i32 = arith.constant 0 : i32
    %c0_i32_0 = arith.constant 0 : i32
    %c0_i32_1 = arith.constant 0 : i32
    %c0_i32_2 = arith.constant 0 : i32
    return %c0_i32, %c0_i32_0, %c0_i32_1 : i32, i32, i32
  }
  func.func @transform_11(%arg0: i32) -> (i32, i32, i32) {
    %c0_i32 = arith.constant 0 : i32
    %c0_i32_0 = arith.constant 0 : i32
    %c0_i32_1 = arith.constant 0 : i32
    %c0_i32_2 = arith.constant 0 : i32
    return %c0_i32, %c0_i32_0, %c0_i32_1 : i32, i32, i32
  }
  func.func @transform_12(%arg0: i32) -> (i32, i32, i32) {
    %c0_i32 = arith.constant 0 : i32
    %c0_i32_0 = arith.constant 0 : i32
    %c0_i32_1 = arith.constant 0 : i32
    %c0_i32_2 = arith.constant 0 : i32
    return %c0_i32, %c0_i32_0, %c0_i32_1 : i32, i32, i32
  }
  func.func @transform_13(%arg0: i32) -> (i32, i32, i32) {
    %c0_i32 = arith.constant 0 : i32
    %c0_i32_0 = arith.constant 0 : i32
    %c0_i32_1 = arith.constant 0 : i32
    %c0_i32_2 = arith.constant 0 : i32
    return %c0_i32, %c0_i32_0, %c0_i32_1 : i32, i32, i32
  }
  func.func @transform_14(%arg0: i32) -> (i32, i32, i32) {
    %c0_i32 = arith.constant 0 : i32
    %c0_i32_0 = arith.constant 0 : i32
    %c0_i32_1 = arith.constant 0 : i32
    %c0_i32_2 = arith.constant 0 : i32
    return %c0_i32, %c0_i32_0, %c0_i32_1 : i32, i32, i32
  }
  func.func @transform_15(%arg0: i32) -> (i32, i32, i32) {
    %c0_i32 = arith.constant 0 : i32
    %c0_i32_0 = arith.constant 0 : i32
    %c0_i32_1 = arith.constant 0 : i32
    %c0_i32_2 = arith.constant 0 : i32
    return %c0_i32, %c0_i32_0, %c0_i32_1 : i32, i32, i32
  }
  func.func @transform_16(%arg0: i32) -> (i32, i32) {
    %c0_i32 = arith.constant 0 : i32
    %c0_i32_0 = arith.constant 0 : i32
    %c0_i32_1 = arith.constant 0 : i32
    return %c0_i32, %c0_i32_0 : i32, i32
  }
  func.func @transform_17(%arg0: i32) -> (i32, i32) {
    %c0_i32 = arith.constant 0 : i32
    %c0_i32_0 = arith.constant 0 : i32
    %c0_i32_1 = arith.constant 0 : i32
    return %c0_i32, %c0_i32_0 : i32, i32
  }
  func.func @transform_18(%arg0: i32) -> (i32, i32) {
    %c0_i32 = arith.constant 0 : i32
    %c0_i32_0 = arith.constant 0 : i32
    %c0_i32_1 = arith.constant 0 : i32
    return %c0_i32, %c0_i32_0 : i32, i32
  }
  func.func @transform_19(%arg0: i32) -> (i32, i32) {
    %c0_i32 = arith.constant 0 : i32
    %c0_i32_0 = arith.constant 0 : i32
    %c0_i32_1 = arith.constant 0 : i32
    return %c0_i32, %c0_i32_0 : i32, i32
  }
  func.func @transform_20(%arg0: i32) -> (i32, i32) {
    %c0_i32 = arith.constant 0 : i32
    %c0_i32_0 = arith.constant 0 : i32
    %c0_i32_1 = arith.constant 0 : i32
    return %c0_i32, %c0_i32_0 : i32, i32
  }
  func.func @transform_21(%arg0: i32) -> (i32, i32) {
    %c0_i32 = arith.constant 0 : i32
    %c0_i32_0 = arith.constant 0 : i32
    %c0_i32_1 = arith.constant 0 : i32
    return %c0_i32, %c0_i32_0 : i32, i32
  }
  func.func @transform_22(%arg0: i32) -> (i32, i32, i32, i32) {
    %c0_i32 = arith.constant 0 : i32
    %c0_i32_0 = arith.constant 0 : i32
    %c0_i32_1 = arith.constant 0 : i32
    %c0_i32_2 = arith.constant 0 : i32
    return %arg0, %c0_i32, %c0_i32_0, %c0_i32_1 : i32, i32, i32, i32
  }
}

</mosaic_0001>

<bundles_post_ra>
// kernel: segmentation_model_forward.1
= control target key start
LH: loop header
LB: loop body
LE: loop exit
PB: predicated region body
PF: predicated region fallthrough
CT: control target
= control target key end

     0   :  { %s6695_s0 = inlined_call_operand.vmem [shape: f32[2,24,192], index: 0, kind: input, shape index: {}]   ;;  %s6696_s1 = inlined_call_operand.vmem [shape: f32[24,32], index: 1, kind: input, shape index: {}]   ;;  %s6697_s2 = inlined_call_operand.vmem [shape: f32[192,32], index: 2, kind: input, shape index: {}]   ;;  %s6698_s3 = inlined_call_operand.vmem [shape: f32[1,32], index: 3, kind: input, shape index: {}]   ;;  %s6699_s4 = inlined_call_operand.vmem [shape: f32[2,1,32], index: 4, kind: input, shape index: {}]   ;;  %s6700_s5 = inlined_call_operand.vmem [shape: f32[2,1,32], index: 5, kind: input, shape index: {}]   ;;  %s6701_s6 = inlined_call_operand.vmem [shape: f32[2,32,96], index: 6, kind: input, shape index: {}]   ;;  %s6702_s7 = inlined_call_operand.vmem [shape: f32[2,1,96], index: 7, kind: input, shape index: {}]   ;;  %s6703_s8 = inlined_call_operand.vmem [shape: f32[2,32,32], index: 8, kind: input, shape index: {}]   ;;  %s6704_s9 = inlined_call_operand.vmem [shape: f32[2,1,32], index: 9, kind: input, shape index: {}]   ;;  %s6705_s10 = inlined_call_operand.vmem [shape: f32[2,1,32], index: 10, kind: input, shape index: {}]   ;;  %s6706_s11 = inlined_call_operand.vmem [shape: f32[2,1,32], index: 11, kind: input, shape index: {}]   ;;  %s6707_s12 = inlined_call_operand.vmem [shape: f32[2,32,64], index: 12, kind: input, shape index: {}]   ;;  %s6708_s13 = inlined_call_operand.vmem [shape: f32[2,1,64], index: 13, kind: input, shape index: {}]   ;;  %s6709_s14 = inlined_call_operand.vmem [shape: f32[2,64,32], index: 14, kind: input, shape index: {}]   ;;  %s6710_s15 = inlined_call_operand.vmem [shape: f32[2,1,32], index: 15, kind: input, shape index: {}]   ;;  %s6711_s16 = inlined_call_operand.vmem [shape: f32[1,32], index: 16, kind: input, shape index: {}]   ;;  %s6712_s17 = inlined_call_operand.vmem [shape: f32[1,32], index: 17, kind: input, shape index: {}]   ;;  %s6713_s18 = inlined_call_operand.vmem [shape: f32[1,32], index: 18, kind: input, shape index: {}]   ;;  %s6714_s19 = inlined_call_operand.<no memory space> [shape: f32[1,1], index: 19, kind: input, shape index: {}]   ;;  %s6715_s20 = inlined_call_operand.vmem [shape: f32[32,24], index: 20, kind: input, shape index: {}]   ;;  %s6716_s21 = inlined_call_operand.vmem [shape: f32[24,32], index: 21, kind: input, shape index: {}]   ;;  %s6717_s22 = inlined_call_operand.hbm [shape: f32[2,1,32,32], index: 22, kind: output, shape index: {}]  }
   0x1   :  { %6757 = sst [smem:[#allocation10_spill]] %s6695_s0  ;;  %v27_v0 = vstv %s6714_s19 }
   0x2   :  { %6758 = sst [smem:[#allocation11_spill]] %s6696_s1  ;;  %28 = vst [vmem:[#allocation2] sm:$0x1] %v27_v0 }
   0x3   :  { %6759 = sst [smem:[#allocation12_spill]] %s6697_s2 }
   0x4   :  { %6760 = sst [smem:[#allocation13_spill]] %s6698_s3 }
   0x5   :  { %6761 = sst [smem:[#allocation14_spill]] %s6699_s4 }
   0x6   :  { %6762 = sst [smem:[#allocation15_spill]] %s6700_s5 }
   0x7   :  { %6763 = sst [smem:[#allocation16_spill]] %s6701_s6 }
   0x8   :  { %6764 = sst [smem:[#allocation17_spill]] %s6702_s7 }
   0x9   :  { %6765 = sst [smem:[#allocation18_spill]] %s6703_s8 }
   0xa   :  { %6766 = sst [smem:[#allocation19_spill]] %s6704_s9 }
   0xb   :  { %6767 = sst [smem:[#allocation20_spill]] %s6705_s10 }
   0xc   :  { %29 = vsyncpa [#allocation4], 0 }
   0xd   :  { %31 = vsyncpa [#allocation4 + $0x1], 0  ;;  %s5410_s29 = smov 0   ;;  %s5412_s30 = smov 0  }
   0xe   :  { %s5414_s4 = smov 0   ;;  %s5416_s0 = smov 0  }
   0xf LB: > { %6768 = sst [smem:[#allocation6_spill]] %s5267_s4  ;;  %s5431_s19 = sadd.s32 4294967295, %s5271_s0   ;;  %s5271_s0 = sphi %s5416_s0, %s6800_s0   ;;  %s5267_s4 = sphi %s5414_s4, %s6802_s4   ;;  %s5263_s30 = sphi %s5412_s30, %s6804_s30   ;;  %s5259_s29 = sphi %s5410_s29, %s6803_s29  }
  0x10   : > { %s4276_s23 = sadd.s32 4294967294, %s5271_s0   ;;  %s5435_s1 = sadd.s32 1, %s5271_s0  }
  0x11   : > { %6769 = sst [smem:[#allocation7_spill]] %s5435_s1  ;;  %s511_s5 = sadd.s32 1, %s5267_s4 }
  0x12   : > { %s508_s24 = ssub.s32 %s5271_s0, %s5435_s1  ;;  %p521_p0 = scmp.ne.s32.totalorder %s5267_s4, %s5263_s30 }
  0x13   : > { %p509_p1 = scmp.eq.s32.totalorder %s508_s24, 0  ;;  %p522_p2 = scmp.eq.s32.totalorder %s5431_s19, 1 }
  0x14   : > { %p527_p3 = scmp.ne.s32.totalorder %s5263_s30, %s5259_s29  ;;  %p528_p4 = scmp.eq.s32.totalorder %s4276_s23, 1 }
  0x15   : > { %s5446_s6 = scalar_select %p509_p1, %s5267_s4, %s511_s5  }
  0x16   : > { %p5448_p5 = por %p522_p2, %p521_p0  ;;  %p5452_p6 = por %p528_p4, %p527_p3 }
  0x17   : > { %6770 = sst [smem:[#allocation8_spill]] %s5446_s6  ;;  %p4279_p7 = scmp.ge.s32.totalorder %s5271_s0, 1 }
  0x18   : > { %s6772_s26 = scalar_select %p5452_p6, 1, 0 }
  0x19   : > { %p617_p8 = scmp.lt.s32.totalorder %s5271_s0, 3 }
  0x1a   : > { %6773 = sst [smem:[#allocation9_spill]] %s6772_s26 }
  0x1b   : > { %p618_p9 = pnand %p4279_p7, %p617_p8 }
  0x1c   : > { %s6774_s3 = sld [smem:[#allocation12_spill]] (!%p618_p9)  ;;  %p679_p10 = scmp.lt.s32.totalorder (!%p618_p9), %s5431_s19, 1 }
  0x1d   : > { %621 = sbr.rel (%p618_p9) target bundleno = 6677 (0x1a15), region = 108  ;;  %s6775_s1 = sld [smem:[#allocation10_spill]] (!%p618_p9) }
  0x1e   : > { %s6776_s27 = sld [smem:[#allocation13_spill]] (!%p618_p9)  ;;  %s6745_s23 = smov (!%p618_p9), 88  }
  0x1f   : > { %s6777_s6 = sld [smem:[#allocation11_spill]] (!%p618_p9)  ;;  %s6729_s4 = smov (!%p618_p9), 112  }
  0x20   : > { %s6779_s28 = sld [smem:[#allocation14_spill]] (!%p618_p9) }
  0x21   : > { %s6780_s24 = sld [smem:[#allocation15_spill]] (!%p618_p9) }
  0x22   : > { %v705_v1 = vld [vmem:[%s6774_s3 + $0x78] sm:$0xff]  ;;  %v5273_v2 = vmov 0.0   ;;  %v704_v3 = vld [vmem:[%s6774_s3 + $0x70] sm:$0xff]  ;;  %s680_s5 = scalar_select %p679_p10, %s5431_s19, 1  ;;  %v703_v4 = vld [vmem:[%s6774_s3 + $0x68] sm:$0xff]  ;;  %vm714_vm0 = vcmask 523264   ;;  %v804_v32 = vlaneseq }
  0x23   : > { %724 = vmatprep.subr.mxu0 %v5273_v2  ;;  %4609 = vmatprep.subr.mxu1 %v5273_v2  ;;  %v702_v5 = vld [vmem:[%s6774_s3 + $0x60] sm:$0xff]  ;;  %v701_v6 = vld [vmem:[%s6774_s3 + $0x58] sm:$0xff]  ;;  %v700_v8 = vld [vmem:[%s6774_s3 + $0x50] sm:$0xff]  ;;  %vm847_vm3 = vcmask 261120   ;;  %vm5274_vm4 = vmmov 0   ;;  %s6781_s7 = sld [smem:[#allocation17_spill]] }
  0x24   : > { %725 = vmatpush1.msra.mxu0 %v705_v1  ;;  %s5013_s2 = smul.u32 48, %s680_s5  ;;  %v699_v9 = vld [vmem:[%s6774_s3 + $0x48] sm:$0xff]  ;;  %v698_v10 = vld [vmem:[%s6774_s3 + $0x40] sm:$0xff]  ;;  %v697_v11 = vld [vmem:[%s6774_s3 + $0x38] sm:$0xff]  ;;  %v805_v33 = vshrl.u32 %v804_v32, 7  ;;  %4617 = vmatprep.mubr.msk.f32.mxu1 %vm5274_vm4, %v5273_v2  ;;  %vm1015_vm5 = vcmask 64512  }
  0x25   : > { %726 = vmatprep.subr.mxu0 %v5273_v2  ;;  %v696_v12 = vld [vmem:[%s6774_s3 + $0x30] sm:$0xff]  ;;  %v695_v13 = vld [vmem:[%s6774_s3 + $0x28] sm:$0xff]  ;;  %v694_v14 = vld [vmem:[%s6774_s3 + $0x20] sm:$0xff]  ;;  %vm1116_vm7 = vcmask 195584   ;;  %s6731_s5 = smov 104   ;;  %s6782_s8 = sld [smem:[#allocation18_spill]] }
  0x26   : > { %727 = vmatpush1.msra.mxu0 %v704_v3  ;;  %s5479_s26 = scalar_lea.vmem %s6775_s1, %s5013_s2  ;;  %v693_v15 = vld [vmem:[%s6774_s3 + $0x18] sm:$0xff]  ;;  %v692_v16 = vld [vmem:[%s6774_s3 + $0x10] sm:$0xff]  ;;  %v691_v17 = vld [vmem:[%s6774_s3 + $0x8] sm:$0xff]  ;;  %vm808_vm1 = vcmp.ge.s32.totalorder %v805_v33, 1  ;;  %v807_v36 = vadd.s32 16, %v805_v33  ;;  %s6747_s1 = smov 96  }
  0x27   : > { %728 = vmatprep.subr.mxu0 %v5273_v2  ;;  %v685_v7 = vld [vmem:[%s5479_s26 + $0x8] sm:$0xff]  ;;  %v690_v18 = vld [vmem:[%s6774_s3] sm:$0xff]  ;;  %v713_v19 = vld [vmem:[%s6774_s3 + $0xb8] sm:$0xff]  ;;  %v4285_v34 = vsel %vm808_vm1, 1.0, %v5273_v2  ;;  %s6727_s2 = smov 64   ;;  %vm2010_vm8 = vcmask 130048  }
  0x28   : > { %729 = vmatpush1.msra.mxu0 %v703_v4  ;;  %4282 = vmatprep.mubr.msk.f32.mxu0 %vm714_vm0, %v685_v7  ;;  %v712_v20 = vld [vmem:[%s6774_s3 + $0xb0] sm:$0xff]  ;;  %v711_v21 = vld [vmem:[%s6774_s3 + $0xa8] sm:$0xff]  ;;  %v710_v22 = vld [vmem:[%s6774_s3 + $0xa0] sm:$0xff]  ;;  %vm813_vm2 = vcmp.lt.s32.totalorder %v807_v36, 17  ;;  %s6783_s9 = sld [smem:[#allocation19_spill]] }
  0x29   : > { %730 = vmatprep.subr.mxu0 %v5273_v2  ;;  %v709_v23 = vld [vmem:[%s6774_s3 + $0x98] sm:$0xff]  ;;  %v708_v24 = vld [vmem:[%s6774_s3 + $0x90] sm:$0xff]  ;;  %v707_v25 = vld [vmem:[%s6774_s3 + $0x88] sm:$0xff]  ;;  %v4286_v45 = vsel %vm813_vm2, 1.0, %v5273_v2  ;;  %s6784_s10 = sld [smem:[#allocation20_spill]] }
  0x2a   : > { %731 = vmatpush1.msra.mxu0 %v702_v5  ;;  %v706_v26 = vld [vmem:[%s6774_s3 + $0x80] sm:$0xff]  ;;  %v687_v28 = vld [vmem:[%s5479_s26 + $0x18] sm:$0xff]  ;;  %v686_v29 = vld [vmem:[%s5479_s26 + $0x10] sm:$0xff]  ;;  %s6750_s3 = smov 24  }
  0x2b   : > { %732 = vmatprep.subr.mxu0 %v5273_v2  ;;  %v684_v27 = vld [vmem:[%s5479_s26] sm:$0xff]  ;;  %v689_v30 = vld [vmem:[%s5479_s26 + $0x28] sm:$0xff]  ;;  %v825_v49 = vld [vmem:[%s6777_s6 + $0x10] sm:$0xff] }
  0x2c   : > { %733 = vmatpush1.msra.mxu0 %v701_v6  ;;  %v688_v31 = vld [vmem:[%s5479_s26 + $0x20] sm:$0xff]  ;;  %v824_v42 = vld [vmem:[%s6777_s6 + $0x8] sm:$0xff]  ;;  %s6743_s26 = smov 120  }
  0x2d   : > { %734 = vmatprep.subr.mxu0 %v5273_v2  ;;  %v4287_v35 = vld [vmem:[%s6776_s27] ss:$0 sm:$0xff]  ;;  %s6778_s27 = sld [smem:[#allocation16_spill]] }
  0x2e   : > { %735 = vmatpush1.msra.mxu0 %v700_v8  ;;  %v823_v37 = vld [vmem:[%s6777_s6] sm:$0xff]  ;;  %v836_v38 = vmul.f32 %v4287_v35, %v4285_v34  ;;  %v838_v51 = vmul.f32 %v4287_v35, %v4286_v45  ;;  %s6787_s6 = smov 120  }
  0x2f   : > { %736 = vmatprep.subr.mxu0 %v5273_v2 }
  0x30   : > { %737 = vmatpush1.msra.mxu0 %v699_v9 }
  0x31   : > { %738 = vmatprep.subr.mxu0 %v5273_v2 }
  0x32   : > { %739 = vmatpush1.msra.mxu0 %v698_v10 }
  0x33   : > { %740 = vmatprep.subr.mxu0 %v5273_v2  ;;  %v909_v10 = vld [vmem:[%s6778_s27 + $0x18] sm:$0xff] }
  0x34   : > { %741 = vmatpush1.msra.mxu0 %v697_v11  ;;  %v908_v11 = vld [vmem:[%s6778_s27 + $0x10] sm:$0xff]  ;;  %4610 = vmatpush3.msra.mxu1 %v909_v10 }
  0x35   : > { %742 = vmatprep.subr.mxu0 %v5273_v2  ;;  %4611 = vmatprep.subr.mxu1 %v5273_v2 }
  0x36   : > { %743 = vmatpush1.msra.mxu0 %v696_v12  ;;  %v907_v12 = vld [vmem:[%s6778_s27 + $0x8] sm:$0xff]  ;;  %4612 = vmatpush3.msra.mxu1 %v908_v11 }
  0x37   : > { %744 = vmatprep.subr.mxu0 %v5273_v2  ;;  %4613 = vmatprep.subr.mxu1 %v5273_v2 }
  0x38   : > { %745 = vmatpush1.msra.mxu0 %v695_v13  ;;  %v906_v13 = vld [vmem:[%s6778_s27] sm:$0xff]  ;;  %4614 = vmatpush3.msra.mxu1 %v907_v12 }
  0x39   : > { %746 = vmatprep.subr.mxu0 %v5273_v2  ;;  %4615 = vmatprep.subr.mxu1 %v5273_v2 }
  0x3a   : > { %747 = vmatpush1.msra.mxu0 %v694_v14  ;;  %4616 = vmatpush3.msra.mxu1 %v906_v13 }
  0x3b   : > { %748 = vmatprep.subr.mxu0 %v5273_v2  ;;  %4626 = vmatprep.subr.mxu1 %v5273_v2 }
  0x3c   : > { %749 = vmatpush1.msra.mxu0 %v693_v15 }
  0x3d   : > { %750 = vmatprep.subr.mxu0 %v5273_v2 }
  0x3e   : > { %751 = vmatpush1.msra.mxu0 %v692_v16 }
  0x3f   : > { %752 = vmatprep.subr.mxu0 %v5273_v2 }
  0x40   : > { %753 = vmatpush1.msra.mxu0 %v691_v17 }
  0x41   : > { %754 = vmatprep.subr.mxu0 %v5273_v2 }
  0x42   : > { %755 = vmatpush1.msra.mxu0 %v690_v18 }
  0x43   : > { %772 = vmatprep.subr.mxu0 %v5273_v2 }
  0x44   : > { %773 = vmatpush2.msra.mxu0 %v713_v19 }
  0x45   : > { %774 = vmatprep.subr.mxu0 %v5273_v2 }
  0x46   : > { %775 = vmatpush2.msra.mxu0 %v712_v20 }
  0x47   : > { %776 = vmatprep.subr.mxu0 %v5273_v2 }
  0x48   : > { %777 = vmatpush2.msra.mxu0 %v711_v21 }
  0x49   : > { %778 = vmatprep.subr.mxu0 %v5273_v2 }
  0x4a   : > { %779 = vmatpush2.msra.mxu0 %v710_v22 }
  0x4b   : > { %780 = vmatprep.subr.mxu0 %v5273_v2 }
  0x4c   : > { %781 = vmatpush2.msra.mxu0 %v709_v23 }
  0x4d   : > { %782 = vmatprep.subr.mxu0 %v5273_v2 }
  0x4e   : > { %783 = vmatpush2.msra.mxu0 %v708_v24  ;;  %v4288_v24 = vld [vmem:[%s6779_s28] ss:$0 sm:$0xff] }
  0x4f   : > { %784 = vmatprep.subr.mxu0 %v5273_v2 }
  0x50   : > { %785 = vmatpush2.msra.mxu0 %v707_v25 }
  0x51   : > { %786 = vmatprep.subr.mxu0 %v5273_v2 }
  0x52   : > { %787 = vmatpush2.msra.mxu0 %v706_v26  ;;  %v4289_v26 = vld [vmem:[%s6780_s24] ss:$0 sm:$0xff] }
  0x53   : > { %789 = vmatmul.mubr.f32.vlgmr.msra.gmra.mxu0 %v684_v27  ;;  %4686 = vmatprep.subr.mxu0 %v5273_v2 }
  0x54   : > { %4283 = vmatprep.mubr.msk.f32.mxu0 %vm714_vm0, %v687_v28 }
  0x57   : > { %794 = vmatmul.mubr.f32.gmra.mxu0 %v686_v29 }
  0x58   : > { %4284 = vmatprep.mubr.msk.f32.mxu0 %vm714_vm0, %v689_v30 }
  0x5b   : > { %799 = vmatmul.mubr.f32.gmra.mxu0 %v688_v31 }
  0x5c   : > { %4692 = vmatprep.mubr.msk.f32.mxu0 %vm5274_vm4, %v5273_v2 }
 0x113   : > { %v790_v39 = vpop.f32.mrf.mxu0 }
 0x114   : > { %v826_v40 = vadd.f32 %v823_v37, %v790_v39 }
 0x115   : > { %v792_v41 = vpop.f32.mrf.mxu0 }
 0x116   : > { %v5583_v43 = vadd.f32 %v836_v38, %v826_v40  ;;  %v4290_v40 = vld [vmem:[%s6781_s7] ss:$0 sm:$0xff] }
 0x117   : > { %v795_v44 = vpop.f32.mrf.mxu0 }
 0x118   : > { %v827_v46 = vadd.f32 %v824_v42, %v795_v44  ;;  %v848_v47 = vsel %vm847_vm3, %v5583_v43, 0.0 }
 0x119   : > { %849 = vadd.xlane.f32.xlu0 %v848_v47  ;;  %v797_v48 = vpop.f32.mrf.mxu0 }
 0x11a   : > { %v5591_v50 = vadd.f32 %v4287_v35, %v827_v46 }
 0x11b   : > { %v800_v52 = vpop.f32.mrf.mxu0 }
 0x11c   : > { %v828_v53 = vadd.f32 %v825_v49, %v800_v52  ;;  %v851_v54 = vsel %vm847_vm3, %v5591_v50, 0.0 }
 0x11d   : > { %852 = vadd.xlane.f32.xlu0 %v851_v54  ;;  %v802_v55 = vpop.f32.mrf.mxu0 }
 0x11e   : > { %v5595_v56 = vadd.f32 %v838_v51, %v828_v53  ;;  %v5674_v53 = vand.u32 127, %v804_v32 }
 0x120   : > { %v854_v57 = vsel %vm847_vm3, %v5595_v56, 0.0  ;;  %vm844_vm6 = vcmp.lt.s32.totalorder %v5674_v53, 17 }
 0x121   : > { %855 = vadd.xlane.f32.xlu1 %v854_v57 }
 0x1a2   : > { %v850_v58 = vpop.xlane.xlu0 %849 }
 0x1a3   : > { %v858_v59 = vmul.f32 0.03125, %v850_v58 }
 0x1a5   : > { %v861_v60 = vsub.f32 %v5583_v43, %v858_v59 }
 0x1a6   : > { %v853_v61 = vpop.xlane.xlu0 %852 }
 0x1a7   : > { %v859_v62 = vmul.f32 0.03125, %v853_v61  ;;  %v864_v63 = vmul.f32 %v861_v60, %v861_v60 }
 0x1a9   : > { %v862_v0 = vsub.f32 %v5591_v50, %v859_v62  ;;  %v867_v1 = vsel %vm847_vm3, %v864_v63, 0.0 }
 0x1aa   : > { %868 = vadd.xlane.f32.xlu1 %v867_v1  ;;  %v856_v3 = vpop.xlane.xlu1 %855 }
 0x1ab   : > { %v860_v4 = vmul.f32 0.03125, %v856_v3  ;;  %v865_v5 = vmul.f32 %v862_v0, %v862_v0 }
 0x1ad   : > { %v863_v6 = vsub.f32 %v5595_v56, %v860_v4  ;;  %v870_v7 = vsel %vm847_vm3, %v865_v5, 0.0 }
 0x1ae   : > { %871 = vadd.xlane.f32.xlu0 %v870_v7 }
 0x1af   : > { %v866_v8 = vmul.f32 %v863_v6, %v863_v6 }
 0x1b1   : > { %v873_v9 = vsel %vm847_vm3, %v866_v8, 0.0 }
 0x1b2   : > { %874 = vadd.xlane.f32.xlu1 %v873_v9 }
 0x233   : > { %v869_v14 = vpop.xlane.xlu1 %868 }
 0x234   : > { %v876_v15 = vmul.f32 0.03125, %v869_v14 }
 0x236   : > { %v879_v16 = vadd.f32 1e-12, %v876_v15 }
 0x237   : > { %v872_v17 = vpop.xlane.xlu0 %871 }
 0x238   : > { %5073 = vrsqrt.f32 %v879_v16  ;;  %v877_v18 = vmul.f32 0.03125, %v872_v17 }
 0x23a   : > { %v880_v19 = vadd.f32 1e-12, %v877_v18 }
 0x23b   : > { %v875_v20 = vpop.xlane.xlu1 %874 }
 0x23c   : > { %5075 = vrsqrt.f32 %v880_v19  ;;  %v878_v21 = vmul.f32 0.03125, %v875_v20 }
 0x23e   : > { %v881_v22 = vadd.f32 1e-12, %v878_v21 }
 0x240   : > { %5077 = vrsqrt.f32 %v881_v22 }
 0x245   : > { %v5074_v23 = vpop.eup %5073 }
 0x246   : > { %v885_v25 = vmul.f32 %v5074_v23, %v861_v60 }
 0x248   : > { %v894_v27 = vmul.f32 %v4288_v24, %v885_v25 }
 0x249   : > { %v5076_v28 = vpop.eup %5075 }
 0x24a   : > { %v903_v29 = vadd.f32 %v4289_v26, %v894_v27  ;;  %v886_v30 = vmul.f32 %v5076_v28, %v862_v0 }
 0x24c   : > { %4618 = vmatmul.mubr.msk.f32.vlgmr.msra.gmra.mxu1 %vm847_vm3, %v903_v29  ;;  %v895_v31 = vmul.f32 %v4288_v24, %v886_v30 }
 0x24d   : > { %v5078_v33 = vpop.eup %5077  ;;  %4620 = vmatprep.mubr.msk.f32.mxu1 %vm5274_vm4, %v5273_v2 }
 0x24e   : > { %v904_v34 = vadd.f32 %v4289_v26, %v895_v31  ;;  %v887_v35 = vmul.f32 %v5078_v33, %v863_v6 }
 0x250   : > { %4621 = vmatmul.mubr.msk.f32.gmra.mxu1 %vm847_vm3, %v904_v34  ;;  %v896_v36 = vmul.f32 %v4288_v24, %v887_v35 }
 0x251   : > { %4623 = vmatprep.mubr.msk.f32.mxu1 %vm5274_vm4, %v5273_v2 }
 0x252   : > { %v905_v37 = vadd.f32 %v4289_v26, %v896_v36 }
 0x254   : > { %4624 = vmatmul.mubr.msk.f32.gmra.mxu1 %vm847_vm3, %v905_v37 }
 0x255   : > { %4632 = vmatprep.mubr.msk.f32.mxu1 %vm5274_vm4, %v5273_v2 }
 0x30c   : > { %v992_v38 = vpop.f32.mrf.mxu1 }
 0x30d   : > { %v5647_v46 = vadd.f32 %v4290_v40, %v992_v38 }
 0x30e   : > { %v4619_v39 = vpop.f32.mrf.mxu1 }
 0x310   : > { %v997_v41 = vpop.f32.mrf.mxu1 }
 0x311   : > { %v5643_v42 = vadd.f32 %v4290_v40, %v997_v41 }
 0x312   : > { %v4622_v44 = vpop.f32.mrf.mxu1 }
 0x313   : > { %1011 = vrot.lane.b32.xlu1 %v5643_v42, %s6747_s1 }
 0x314   : > { %v1002_v45 = vpop.f32.mrf.mxu1 }
 0x315   : > { %v5649_v47 = vadd.f32 %v4290_v40, %v1002_v45 }
 0x316   : > { %v4625_v48 = vpop.f32.mrf.mxu1 }
 0x317   : > { %1009 = vrot.lane.b32.xlu1 %v5647_v46, %s6747_s1  ;;  %1013 = vrot.lane.b32.xlu0 %v5649_v47, %s6747_s1  ;;  %s6785_s1 = smov 96  }
 0x385   : > { %v1012_v51 = vpop.permute.xlu1 %1011 }
 0x389   : > { %v1014_v49 = vpop.permute.xlu0 %1013  ;;  %v1010_v52 = vpop.permute.xlu1 %1009 }
 0x38a   : > { %4627 = vmatpush3.xpose.msk.msra.mxu1 %vm1015_vm5, %v1014_v49 }
 0x38b   : > { %4628 = vmatprep.subr.mxu1 %v5273_v2 }
 0x38e   : > { %4629 = vmatpush3.xpose.msk.msra.mxu1 %vm1015_vm5, %v1012_v51 }
 0x38f   : > { %4630 = vmatprep.subr.mxu1 %v5273_v2 }
 0x392   : > { %4631 = vmatpush3.xpose.msk.msra.mxu1 %vm1015_vm5, %v1010_v52 }
 0x393   : > { %4641 = vmatprep.subr.mxu1 %v5273_v2 }
 0x395   : > { %4633 = vmatmul.mubr.msk.f32.vlgmr.msra.gmra.mxu1 %vm1015_vm5, %v5647_v46 }
 0x396   : > { %4635 = vmatprep.mubr.msk.f32.mxu1 %vm5274_vm4, %v5273_v2 }
 0x399   : > { %4636 = vmatmul.mubr.msk.f32.gmra.mxu1 %vm1015_vm5, %v5643_v42 }
 0x39a   : > { %4638 = vmatprep.mubr.msk.f32.mxu1 %vm5274_vm4, %v5273_v2 }
 0x39d   : > { %4639 = vmatmul.mubr.msk.f32.gmra.mxu1 %vm1015_vm5, %v5649_v47 }
 0x39e   : > { %4647 = vmatprep.mubr.msk.f32.mxu1 %vm5274_vm4, %v5273_v2 }
 0x455   : > { %v1094_v54 = vpop.f32.mrf.mxu1 }
 0x456   : > { %v1108_v55 = vmul.f32 0.35355338, %v1094_v54 }
 0x457   : > { %v4634_v57 = vpop.f32.mrf.mxu1 }
 0x458   : > { %v1113_v58 = vsel %vm844_vm6, %v1108_v55, -1e+30 }
 0x459   : > { %v1099_v59 = vpop.f32.mrf.mxu1  ;;  %v1117_v60 = vsel %vm1116_vm7, %v1113_v58, -inf }
 0x45a   : > { %v1109_v61 = vmul.f32 0.35355338, %v1099_v59  ;;  %1118 = vmax.xlane.f32.xlu1 %v1117_v60 }
 0x45b   : > { %v4637_v62 = vpop.f32.mrf.mxu1 }
 0x45c   : > { %v1114_v63 = vsel %vm844_vm6, %v1109_v61, -1e+30 }
 0x45d   : > { %v1104_v32 = vpop.f32.mrf.mxu1  ;;  %v1120_v0 = vsel %vm1116_vm7, %v1114_v63, -inf }
 0x45e   : > { %v1110_v1 = vmul.f32 0.35355338, %v1104_v32  ;;  %1121 = vmax.xlane.f32.xlu0 %v1120_v0 }
 0x45f   : > { %v4640_v3 = vpop.f32.mrf.mxu1 }
 0x460   : > { %v1115_v4 = vsel %vm844_vm6, %v1110_v1, -1e+30 }
 0x461   : > { %v1123_v5 = vsel %vm1116_vm7, %v1115_v4, -inf }
 0x462   : > { %1124 = vmax.xlane.f32.xlu0 %v1123_v5 }
 0x46b   : > { %1154 = vrot.lane.b32.xlu1 %v5649_v47, %s6727_s2 }
 0x46f   : > { %1150 = vrot.lane.b32.xlu1 %v5647_v46, %s6727_s2 }
 0x473   : > { %1258 = vrot.lane.b32.xlu1 %v5649_v47, %s6745_s23 }
 0x477   : > { %1256 = vrot.lane.b32.xlu1 %v5643_v42, %s6745_s23 }
 0x4e3   : > { %v1119_v6 = vpop.xlane.xlu1 %1118 }
 0x4e4   : > { %v1126_v7 = vsub.f32 %v1113_v58, %v1119_v6 }
 0x4e6   : > { %v1129_v8 = vmul.f32 1.442695, %v1126_v7 }
 0x4e7   : > { %v1155_v9 = vpop.permute.xlu1 %1154  ;;  %v1122_v10 = vpop.xlane.xlu0 %1121 }
 0x4e8   : > { %5079 = vpow2.f32 %v1129_v8  ;;  %v1127_v11 = vsub.f32 %v1114_v63, %v1122_v10  ;;  %4642 = vmatpush3.msra.mxu1 %v1155_v9 }
 0x4e9   : > { %4643 = vmatprep.subr.mxu1 %v5273_v2 }
 0x4ea   : > { %v1131_v12 = vmul.f32 1.442695, %v1127_v11 }
 0x4eb   : > { %v1125_v17 = vpop.xlane.xlu0 %1124  ;;  %v1151_v22 = vpop.permute.xlu1 %1150 }
 0x4ec   : > { %5081 = vpow2.f32 %v1131_v12  ;;  %v1128_v18 = vsub.f32 %v1115_v4, %v1125_v17 }
 0x4ee   : > { %v1133_v19 = vmul.f32 1.442695, %v1128_v18 }
 0x4ef   : > { %v1259_v23 = vpop.permute.xlu1 %1258 }
 0x4f0   : > { %5083 = vpow2.f32 %v1133_v19 }
 0x4f3   : > { %v1257_v24 = vpop.permute.xlu1 %1256 }
 0x4f5   : > { %v5080_v13 = vpop.eup %5079 }
 0x4f6   : > { %v1135_v14 = vsel %vm1116_vm7, %v5080_v13, 0.0 }
 0x4f7   : > { %1136 = vadd.xlane.f32.xlu0 %v1135_v14 }
 0x4f9   : > { %v5082_v15 = vpop.eup %5081 }
 0x4fa   : > { %v1138_v16 = vsel %vm1116_vm7, %v5082_v15, 0.0 }
 0x4fb   : > { %1139 = vadd.xlane.f32.xlu1 %v1138_v16 }
 0x4fd   : > { %v5084_v20 = vpop.eup %5083 }
 0x4fe   : > { %v1141_v21 = vsel %vm1116_vm7, %v5084_v20, 0.0 }
 0x50c   : > { %1248 = vrot.lane.b32.xlu1 %v5647_v46, %s6743_s26 }
 0x50d   : > { %1152 = vrot.lane.b32.xlu0 %v5643_v42, %s6727_s2  ;;  %s6741_s2 = smov 80  }
 0x510   : > { %1250 = vrot.lane.b32.xlu1 %v5643_v42, %s6743_s26 }
 0x514   : > { %1252 = vrot.lane.b32.xlu1 %v5649_v47, %s6743_s26  ;;  %s6786_s26 = smov 88  }
 0x518   : > { %1489 = vrot.lane.b32.xlu1 %v5647_v46, %s6729_s4 }
 0x51c   : > { %1491 = vrot.lane.b32.xlu1 %v5643_v42, %s6729_s4 }
 0x520   : > { %1493 = vrot.lane.b32.xlu1 %v5649_v47, %s6729_s4  ;;  %s6735_s4 = smov 72  }
 0x524   : > { %1730 = vrot.lane.b32.xlu1 %v5647_v46, %s6731_s5 }
 0x528   : > { %1734 = vrot.lane.b32.xlu1 %v5649_v47, %s6731_s5 }
 0x52c   : > { %1142 = vadd.xlane.f32.xlu0 %v1141_v21 }
 0x542   : > { %1254 = vrot.lane.b32.xlu0 %v5647_v46, %s6745_s23  ;;  %s6752_s23 = smov 16  }
 0x546   : > { %1499 = vrot.lane.b32.xlu0 %v5649_v47, %s6741_s2 }
 0x54a   : > { %1497 = vrot.lane.b32.xlu0 %v5643_v42, %s6741_s2 }
 0x54e   : > { %1495 = vrot.lane.b32.xlu0 %v5647_v46, %s6741_s2  ;;  %s6791_s2 = smov 104  }
 0x552   : > { %1740 = vrot.lane.b32.xlu0 %v5649_v47, %s6735_s4 }
 0x556   : > { %1738 = vrot.lane.b32.xlu0 %v5643_v42, %s6735_s4 }
 0x55a   : > { %1736 = vrot.lane.b32.xlu0 %v5647_v46, %s6735_s4  ;;  %s6737_s4 = smov 40  }
 0x55e   : > { %1732 = vrot.lane.b32.xlu0 %v5643_v42, %s6731_s5  ;;  %s6733_s5 = smov 56  }
 0x580   : > { %v1137_v25 = vpop.xlane.xlu0 %1136 }
 0x581   : > { %5085 = vrcp.f32 %v1137_v25 }
 0x584   : > { %v1140_v26 = vpop.xlane.xlu1 %1139  ;;  %v1153_v27 = vpop.permute.xlu0 %1152 }
 0x585   : > { %5087 = vrcp.f32 %v1140_v26  ;;  %4644 = vmatpush3.msra.mxu1 %v1153_v27 }
 0x586   : > { %4645 = vmatprep.subr.mxu1 %v5273_v2 }
 0x587   : > { %4646 = vmatpush3.msra.mxu1 %v1151_v22 }
 0x588   : > { %4656 = vmatprep.subr.mxu1 %v5273_v2  ;;  %v1249_v33 = vpop.permute.xlu1 %1248 }
 0x58c   : > { %v1251_v35 = vpop.permute.xlu1 %1250 }
 0x58e   : > { %v5086_v28 = vpop.eup %5085 }
 0x58f   : > { %v1147_v29 = vmul.f32 %v5086_v28, %v5080_v13 }
 0x590   : > { %v1253_v37 = vpop.permute.xlu1 %1252 }
 0x591   : > { %4648 = vmatmul.mubr.msk.f32.vlgmr.msra.gmra.mxu1 %vm1116_vm7, %v1147_v29 }
 0x592   : > { %v5088_v30 = vpop.eup %5087  ;;  %4657 = vmatpush3.xpose.msk.msra.mxu1 %vm1015_vm5, %v1259_v23  ;;  %4650 = vmatprep.mubr.msk.f32.mxu1 %vm5274_vm4, %v5273_v2 }
 0x593   : > { %4658 = vmatprep.subr.mxu1 %v5273_v2  ;;  %v1148_v31 = vmul.f32 %v5088_v30, %v5082_v15 }
 0x594   : > { %v1490_v40 = vpop.permute.xlu1 %1489 }
 0x595   : > { %4651 = vmatmul.mubr.msk.f32.gmra.mxu1 %vm1116_vm7, %v1148_v31 }
 0x596   : > { %4659 = vmatpush3.xpose.msk.msra.mxu1 %vm1015_vm5, %v1257_v24  ;;  %4653 = vmatprep.mubr.msk.f32.mxu1 %vm5274_vm4, %v5273_v2 }
 0x597   : > { %4660 = vmatprep.subr.mxu1 %v5273_v2 }
 0x598   : > { %v1492_v48 = vpop.permute.xlu1 %1491 }
 0x59c   : > { %v1494_v52 = vpop.permute.xlu1 %1493 }
 0x5a0   : > { %v1731_v55 = vpop.permute.xlu1 %1730 }
 0x5a4   : > { %v1735_v58 = vpop.permute.xlu1 %1734 }
 0x5b5   : > { %v1143_v34 = vpop.xlane.xlu0 %1142 }
 0x5b6   : > { %5089 = vrcp.f32 %v1143_v34 }
 0x5b9   : > { %v1255_v36 = vpop.permute.xlu0 %1254 }
 0x5ba   : > { %4661 = vmatpush3.xpose.msk.msra.mxu1 %vm1015_vm5, %v1255_v36 }
 0x5bb   : > { %4671 = vmatprep.subr.mxu1 %v5273_v2 }
 0x5bd   : > { %v1500_v38 = vpop.permute.xlu0 %1499 }
 0x5be   : > { %4687 = vmatpush3.xpose.msk.msra.mxu0 %vm1015_vm5, %v1500_v38 }
 0x5bf   : > { %4688 = vmatprep.subr.mxu0 %v5273_v2 }
 0x5c1   : > { %v1498_v39 = vpop.permute.xlu0 %1497 }
 0x5c2   : > { %4689 = vmatpush3.xpose.msk.msra.mxu0 %vm1015_vm5, %v1498_v39 }
 0x5c3   : > { %v5090_v41 = vpop.eup %5089  ;;  %4690 = vmatprep.subr.mxu0 %v5273_v2 }
 0x5c4   : > { %v1149_v44 = vmul.f32 %v5090_v41, %v5084_v20 }
 0x5c5   : > { %v1496_v45 = vpop.permute.xlu0 %1495 }
 0x5c6   : > { %4654 = vmatmul.mubr.msk.f32.gmra.mxu1 %vm1116_vm7, %v1149_v44  ;;  %4691 = vmatpush3.xpose.msk.msra.mxu0 %vm1015_vm5, %v1496_v45 }
 0x5c7   : > { %4662 = vmatprep.mubr.msk.f32.mxu1 %vm5274_vm4, %v5273_v2  ;;  %4716 = vmatprep.subr.mxu0 %v5273_v2 }
 0x5c9   : > { %4693 = vmatmul.mubr.msk.f32.vlgmr.msra.gmra.mxu0 %vm1015_vm5, %v1490_v40  ;;  %v1741_v49 = vpop.permute.xlu0 %1740 }
 0x5ca   : > { %4663 = vmatmul.mubr.msk.f32.vlgmr.msra.gmra.mxu1 %vm1015_vm5, %v1249_v33  ;;  %4717 = vmatpush3.xpose.msk.msra.mxu0 %vm1015_vm5, %v1741_v49 }
 0x5cb   : > { %4695 = vmatprep.mubr.msk.f32.mxu0 %vm5274_vm4, %v5273_v2  ;;  %4665 = vmatprep.mubr.msk.f32.mxu1 %vm5274_vm4, %v5273_v2 }
 0x5cc   : > { %4718 = vmatprep.subr.mxu0 %v5273_v2 }
 0x5cd   : > { %4696 = vmatmul.mubr.msk.f32.gmra.mxu0 %vm1015_vm5, %v1492_v48  ;;  %v1739_v51 = vpop.permute.xlu0 %1738 }
 0x5ce   : > { %4666 = vmatmul.mubr.msk.f32.gmra.mxu1 %vm1015_vm5, %v1251_v35  ;;  %4719 = vmatpush3.xpose.msk.msra.mxu0 %vm1015_vm5, %v1739_v51 }
 0x5cf   : > { %4698 = vmatprep.mubr.msk.f32.mxu0 %vm5274_vm4, %v5273_v2  ;;  %4668 = vmatprep.mubr.msk.f32.mxu1 %vm5274_vm4, %v5273_v2 }
 0x5d0   : > { %4720 = vmatprep.subr.mxu0 %v5273_v2 }
 0x5d1   : > { %4699 = vmatmul.mubr.msk.f32.gmra.mxu0 %vm1015_vm5, %v1494_v52  ;;  %v1737_v54 = vpop.permute.xlu0 %1736 }
 0x5d2   : > { %4669 = vmatmul.mubr.msk.f32.gmra.mxu1 %vm1015_vm5, %v1253_v37  ;;  %4721 = vmatpush3.xpose.msk.msra.mxu0 %vm1015_vm5, %v1737_v54 }
 0x5d3   : > { %4722 = vmatprep.mubr.msk.f32.mxu0 %vm5274_vm4, %v5273_v2  ;;  %4677 = vmatprep.mubr.msk.f32.mxu1 %vm5274_vm4, %v5273_v2 }
 0x5d4   : > { %4746 = vmatprep.subr.mxu0 %v5273_v2 }
 0x5d5   : > { %4723 = vmatmul.mubr.msk.f32.vlgmr.msra.gmra.mxu0 %vm1015_vm5, %v1731_v55  ;;  %v1733_v57 = vpop.permute.xlu0 %1732 }
 0x5d6   : > { %4725 = vmatprep.mubr.msk.f32.mxu0 %vm5274_vm4, %v5273_v2 }
 0x5d9   : > { %4726 = vmatmul.mubr.msk.f32.gmra.mxu0 %vm1015_vm5, %v1733_v57 }
 0x5da   : > { %4728 = vmatprep.mubr.msk.f32.mxu0 %vm5274_vm4, %v5273_v2 }
 0x5dd   : > { %4729 = vmatmul.mubr.msk.f32.gmra.mxu0 %vm1015_vm5, %v1735_v58 }
 0x5de   : > { %4754 = vmatprep.mubr.msk.f32.mxu0 %vm5274_vm4, %v5273_v2 }
 0x651   : > { %v5788_v59 = vpop.f32.mrf.mxu1 }
 0x653   : > { %v4649_v60 = vpop.f32.mrf.mxu1 }
 0x655   : > { %v5790_v61 = vpop.f32.mrf.mxu1 }
 0x657   : > { %v4652_v62 = vpop.f32.mrf.mxu1 }
 0x686   : > { %v5792_v63 = vpop.f32.mrf.mxu1 }
 0x688   : > { %v4655_v32 = vpop.f32.mrf.mxu1 }
 0x689   : > { %v1579_v0 = vpop.f32.mrf.mxu0 }
 0x68a   : > { %v1338_v1 = vpop.f32.mrf.mxu1  ;;  %v1593_v18 = vmul.f32 0.35355338, %v1579_v0 }
 0x68b   : > { %v1352_v3 = vmul.f32 0.35355338, %v1338_v1  ;;  %v4694_v4 = vpop.f32.mrf.mxu0 }
 0x68c   : > { %v4664_v5 = vpop.f32.mrf.mxu1  ;;  %v1596_v29 = vsel %vm844_vm6, %v1593_v18, -1e+30 }
 0x68d   : > { %v1584_v6 = vpop.f32.mrf.mxu0  ;;  %v5796_v7 = vsel %vm844_vm6, %v1352_v3, -1e+30  ;;  %v1599_v33 = vsel %vm1116_vm7, %v1596_v29, -inf }
 0x68e   : > { %v1343_v8 = vpop.f32.mrf.mxu1  ;;  %v1358_v9 = vsel %vm1116_vm7, %v5796_v7, -inf  ;;  %v1594_v27 = vmul.f32 0.35355338, %v1584_v6 }
 0x68f   : > { %v1353_v10 = vmul.f32 0.35355338, %v1343_v8  ;;  %1359 = vmax.xlane.f32.xlu0 %v1358_v9  ;;  %v4697_v11 = vpop.f32.mrf.mxu0 }
 0x690   : > { %v4667_v12 = vpop.f32.mrf.mxu1  ;;  %v1597_v36 = vsel %vm844_vm6, %v1594_v27, -1e+30 }
 0x691   : > { %v1589_v13 = vpop.f32.mrf.mxu0  ;;  %v5802_v14 = vsel %vm844_vm6, %v1353_v10, -1e+30  ;;  %v1602_v40 = vsel %vm1116_vm7, %v1597_v36, -inf }
 0x692   : > { %v1595_v15 = vmul.f32 0.35355338, %v1589_v13  ;;  %v1348_v16 = vpop.f32.mrf.mxu1  ;;  %v1361_v17 = vsel %vm1116_vm7, %v5802_v14, -inf }
 0x693   : > { %v1354_v19 = vmul.f32 0.35355338, %v1348_v16  ;;  %1362 = vmax.xlane.f32.xlu1 %v1361_v17  ;;  %v4700_v20 = vpop.f32.mrf.mxu0 }
 0x694   : > { %v4670_v21 = vpop.f32.mrf.mxu1  ;;  %v1598_v22 = vsel %vm844_vm6, %v1595_v15, -1e+30 }
 0x695   : > { %v1820_v23 = vpop.f32.mrf.mxu0  ;;  %v5810_v24 = vsel %vm844_vm6, %v1354_v19, -1e+30  ;;  %v1605_v25 = vsel %vm1116_vm7, %v1598_v22, -inf }
 0x696   : > { %v1364_v26 = vsel %vm1116_vm7, %v5810_v24, -inf  ;;  %v1834_v34 = vmul.f32 0.35355338, %v1820_v23 }
 0x697   : > { %1365 = vmax.xlane.f32.xlu0 %v1364_v26  ;;  %1606 = vmax.xlane.f32.xlu1 %v1605_v25  ;;  %v4724_v28 = vpop.f32.mrf.mxu0 }
 0x698   : > { %v1837_v45 = vsel %vm844_vm6, %v1834_v34, -1e+30 }
 0x699   : > { %v1825_v30 = vpop.f32.mrf.mxu0  ;;  %v1840_v48 = vsel %vm1116_vm7, %v1837_v45, -inf }
 0x69a   : > { %v1835_v31 = vmul.f32 0.35355338, %v1825_v30 }
 0x69b   : > { %1600 = vmax.xlane.f32.xlu0 %v1599_v33  ;;  %v4727_v35 = vpop.f32.mrf.mxu0 }
 0x69c   : > { %v1838_v37 = vsel %vm844_vm6, %v1835_v31, -1e+30 }
 0x69d   : > { %v1830_v38 = vpop.f32.mrf.mxu0  ;;  %v1843_v39 = vsel %vm1116_vm7, %v1838_v37, -inf }
 0x69e   : > { %1844 = vmax.xlane.f32.xlu1 %v1843_v39  ;;  %v1836_v41 = vmul.f32 0.35355338, %v1830_v38 }
 0x69f   : > { %1603 = vmax.xlane.f32.xlu0 %v1602_v40  ;;  %v4730_v44 = vpop.f32.mrf.mxu0 }
 0x6a0   : > { %v1839_v49 = vsel %vm844_vm6, %v1836_v41, -1e+30 }
 0x6a1   : > { %v1846_v51 = vsel %vm1116_vm7, %v1839_v49, -inf }
 0x6a3   : > { %1841 = vmax.xlane.f32.xlu0 %v1840_v48 }
 0x6a7   : > { %1847 = vmax.xlane.f32.xlu0 %v1846_v51 }
 0x718   : > { %v1360_v52 = vpop.xlane.xlu0 %1359 }
 0x71c   : > { %v1363_v54 = vpop.xlane.xlu1 %1362 }
 0x71d   : > { %v1368_v19 = vsub.f32 %v5802_v14, %v1363_v54 }
 0x71f   : > { %v1372_v23 = vmul.f32 1.442695, %v1368_v19 }
 0x720   : > { %v5830_v55 = vpop.xlane.xlu0 %1365  ;;  %v1607_v57 = vpop.xlane.xlu1 %1606 }
 0x721   : > { %v1610_v58 = vsub.f32 %v1598_v22, %v1607_v57  ;;  %v1367_v22 = vsub.f32 %v5796_v7, %v1360_v52 }
 0x723   : > { %v1615_v32 = vmul.f32 1.442695, %v1610_v58  ;;  %v1370_v27 = vmul.f32 1.442695, %v1367_v22 }
 0x724   : > { %v1601_v60 = vpop.xlane.xlu0 %1600 }
 0x725   : > { %v1608_v62 = vsub.f32 %v1596_v29, %v1601_v60 }
 0x727   : > { %v1611_v0 = vmul.f32 1.442695, %v1608_v62  ;;  %v1845_v18 = vpop.xlane.xlu1 %1844 }
 0x728   : > { %v1604_v1 = vpop.xlane.xlu0 %1603  ;;  %v1850_v20 = vsub.f32 %v1838_v37, %v1845_v18 }
 0x729   : > { %5091 = vpow2.f32 %v1611_v0  ;;  %v1609_v3 = vsub.f32 %v1597_v36, %v1604_v1  ;;  %v1369_v36 = vsub.f32 %v5810_v24, %v5830_v55 }
 0x72a   : > { %5093 = vpow2.f32 %v1615_v32  ;;  %v1854_v25 = vmul.f32 1.442695, %v1850_v20 }
 0x72b   : > { %v1613_v4 = vmul.f32 1.442695, %v1609_v3  ;;  %v1374_v37 = vmul.f32 1.442695, %v1369_v36 }
 0x72c   : > { %v1842_v5 = vpop.xlane.xlu0 %1841 }
 0x72d   : > { %5095 = vpow2.f32 %v1613_v4  ;;  %v1849_v6 = vsub.f32 %v1837_v45, %v1842_v5 }
 0x72f   : > { %v1852_v8 = vmul.f32 1.442695, %v1849_v6 }
 0x730   : > { %v1848_v21 = vpop.xlane.xlu0 %1847 }
 0x731   : > { %5097 = vpow2.f32 %v1852_v8  ;;  %v1851_v26 = vsub.f32 %v1839_v49, %v1848_v21 }
 0x732   : > { %5099 = vpow2.f32 %v1372_v23 }
 0x733   : > { %5101 = vpow2.f32 %v1854_v25  ;;  %v1856_v28 = vmul.f32 1.442695, %v1851_v26  ;;  %v2020_v25 = vld [vmem:[%s6782_s8 + $0x18] sm:$0xff]  ;;  %v2019_v26 = vld [vmem:[%s6782_s8 + $0x10] sm:$0xff] }
 0x734   : > { %5103 = vpow2.f32 %v1370_v27  ;;  %4747 = vmatpush3.msra.mxu0 %v2020_v25  ;;  %v2018_v27 = vld [vmem:[%s6782_s8 + $0x8] sm:$0xff] }
 0x735   : > { %5105 = vpow2.f32 %v1856_v28  ;;  %4748 = vmatprep.subr.mxu0 %v5273_v2 }
 0x736   : > { %v5832_v9 = vpop.eup %5091  ;;  %5107 = vpow2.f32 %v1374_v37  ;;  %4749 = vmatpush3.msra.mxu0 %v2019_v26 }
 0x737   : > { %v1617_v10 = vsel %vm1116_vm7, %v5832_v9, 0.0  ;;  %v5836_v11 = vpop.eup %5093  ;;  %4750 = vmatprep.subr.mxu0 %v5273_v2 }
 0x738   : > { %1618 = vadd.xlane.f32.xlu0 %v1617_v10  ;;  %v1623_v15 = vsel %vm1116_vm7, %v5836_v11, 0.0  ;;  %4751 = vmatpush3.msra.mxu0 %v2018_v27 }
 0x739   : > { %4752 = vmatprep.subr.mxu0 %v5273_v2 }
 0x73a   : > { %v5838_v12 = vpop.eup %5095 }
 0x73b   : > { %v1620_v13 = vsel %vm1116_vm7, %v5838_v12, 0.0 }
 0x73c   : > { %1621 = vadd.xlane.f32.xlu1 %v1620_v13  ;;  %1624 = vadd.xlane.f32.xlu0 %v1623_v15 }
 0x73e   : > { %v5844_v16 = vpop.eup %5097 }
 0x73f   : > { %v1858_v17 = vsel %vm1116_vm7, %v5844_v16, 0.0  ;;  %v5100_v29 = vpop.eup %5099 }
 0x740   : > { %1859 = vadd.xlane.f32.xlu0 %v1858_v17  ;;  %v5856_v30 = vpop.eup %5101  ;;  %v1379_v33 = vsel %vm1116_vm7, %v5100_v29, 0.0 }
 0x741   : > { %v5104_v31 = vpop.eup %5103  ;;  %v1861_v14 = vsel %vm1116_vm7, %v5856_v30, 0.0 }
 0x742   : > { %v5861_v34 = vpop.eup %5105  ;;  %v1376_v7 = vsel %vm1116_vm7, %v5104_v31, 0.0 }
 0x743   : > { %v1864_v35 = vsel %vm1116_vm7, %v5861_v34, 0.0  ;;  %v5108_v38 = vpop.eup %5107 }
 0x744   : > { %v1382_v39 = vsel %vm1116_vm7, %v5108_v38, 0.0 }
 0x74d   : > { %1395 = vrot.lane.b32.xlu1 %v5649_v47, %s6733_s5 }
 0x751   : > { %1391 = vrot.lane.b32.xlu1 %v5647_v46, %s6733_s5 }
 0x756   : > { %1393 = vrot.lane.b32.xlu0 %v5643_v42, %s6733_s5  ;;  %s6739_s5 = smov 48  }
 0x775   : > { %1862 = vadd.xlane.f32.xlu1 %v1861_v14  ;;  %1380 = vadd.xlane.f32.xlu0 %v1379_v33 }
 0x779   : > { %1377 = vadd.xlane.f32.xlu1 %v1376_v7  ;;  %1865 = vadd.xlane.f32.xlu0 %v1864_v35 }
 0x78a   : > { %1636 = vrot.lane.b32.xlu1 %v5649_v47, %s6739_s5 }
 0x78f   : > { %1634 = vrot.lane.b32.xlu0 %v5643_v42, %s6739_s5 }
 0x793   : > { %1873 = vrot.lane.b32.xlu0 %v5647_v46, %s6737_s4 }
 0x7ae   : > { %1383 = vadd.xlane.f32.xlu1 %v1382_v39 }
 0x7bf   : > { %1632 = vrot.lane.b32.xlu1 %v5647_v46, %s6739_s5  ;;  %s6792_s5 = smov 64  }
 0x7c1   : > { %v1619_v40 = vpop.xlane.xlu0 %1618 }
 0x7c3   : > { %1877 = vrot.lane.b32.xlu1 %v5649_v47, %s6737_s4 }
 0x7c5   : > { %v1622_v41 = vpop.xlane.xlu1 %1621  ;;  %v1625_v44 = vpop.xlane.xlu0 %1624 }
 0x7c7   : > { %1875 = vrot.lane.b32.xlu1 %v5643_v42, %s6737_s4  ;;  %s6754_s4 = smov 8  }
 0x7c9   : > { %v1396_v45 = vpop.permute.xlu1 %1395  ;;  %v1860_v24 = vpop.xlane.xlu0 %1859 }
 0x7ca   : > { %4672 = vmatpush3.msra.mxu1 %v1396_v45 }
 0x7cb   : > { %4673 = vmatprep.subr.mxu1 %v5273_v2 }
 0x7cd   : > { %v1394_v48 = vpop.permute.xlu0 %1393  ;;  %v1392_v49 = vpop.permute.xlu1 %1391 }
 0x7ce   : > { %4674 = vmatpush3.msra.mxu1 %v1394_v48 }
 0x7cf   : > { %4675 = vmatprep.subr.mxu1 %v5273_v2 }
 0x7d0   : > { %4676 = vmatpush3.msra.mxu1 %v1392_v49 }
 0x7d1   : > { %4701 = vmatprep.subr.mxu1 %v5273_v2 }
 0x7fe   : > { %v1863_v46 = vpop.xlane.xlu1 %1862  ;;  %v1381_v47 = vpop.xlane.xlu0 %1380 }
 0x802   : > { %v1378_v51 = vpop.xlane.xlu1 %1377  ;;  %v1866_v52 = vpop.xlane.xlu0 %1865 }
 0x803   : > { %5109 = vrcp.f32 %v1378_v51 }
 0x804   : > { %5111 = vrcp.f32 %v1381_v47 }
 0x806   : > { %v1637_v57 = vpop.permute.xlu1 %1636  ;;  %v1635_v58 = vpop.permute.xlu0 %1634 }
 0x80a   : > { %v1874_v15 = vpop.permute.xlu0 %1873 }
 0x810   : > { %v5110_v42 = vpop.eup %5109 }
 0x811   : > { %v1388_v54 = vmul.f32 %v5110_v42, %v5104_v31  ;;  %v5112_v55 = vpop.eup %5111  ;;  %v2017_v31 = vld [vmem:[%s6782_s8] sm:$0xff] }
 0x812   : > { %v1389_v60 = vmul.f32 %v5112_v55, %v5100_v29  ;;  %4753 = vmatpush3.msra.mxu0 %v2017_v31  ;;  %v2181_v31 = vld [vmem:[%s6707_s12 + $0x10] sm:$0xff] }
 0x813   : > { %4678 = vmatmul.mubr.msk.f32.vlgmr.msra.gmra.mxu1 %vm1116_vm7, %v1388_v54  ;;  %4780 = vmatprep.subr.mxu0 %v5273_v2 }
 0x814   : > { %4702 = vmatpush3.msra.mxu1 %v1637_v57  ;;  %4680 = vmatprep.mubr.msk.f32.mxu1 %vm5274_vm4, %v5273_v2 }
 0x815   : > { %4703 = vmatprep.subr.mxu1 %v5273_v2 }
 0x816   : > { %4704 = vmatpush3.msra.mxu1 %v1635_v58 }
 0x817   : > { %4681 = vmatmul.mubr.msk.f32.gmra.mxu1 %vm1116_vm7, %v1389_v60  ;;  %4705 = vmatprep.subr.mxu1 %v5273_v2 }
 0x818   : > { %4683 = vmatprep.mubr.msk.f32.mxu1 %vm5274_vm4, %v5273_v2 }
 0x837   : > { %v1384_v62 = vpop.xlane.xlu1 %1383 }
 0x838   : > { %5113 = vrcp.f32 %v1384_v62 }
 0x839   : > { %5115 = vrcp.f32 %v1619_v40 }
 0x83a   : > { %5117 = vrcp.f32 %v1622_v41 }
 0x83b   : > { %v1633_v32 = vpop.permute.xlu1 %1632  ;;  %5119 = vrcp.f32 %v1625_v44 }
 0x83c   : > { %4706 = vmatpush3.msra.mxu1 %v1633_v32  ;;  %5121 = vrcp.f32 %v1860_v24  ;;  %v4330_v32 = vld [vmem:[%s6783_s9] ss:$0 sm:$0xff] }
 0x83d   : > { %4731 = vmatprep.subr.mxu1 %v5273_v2  ;;  %5123 = vrcp.f32 %v1863_v46 }
 0x83e   : > { %5125 = vrcp.f32 %v1866_v52 }
 0x83f   : > { %v1878_v4 = vpop.permute.xlu1 %1877 }
 0x843   : > { %v1876_v8 = vpop.permute.xlu1 %1875 }
 0x845   : > { %v5114_v0 = vpop.eup %5113 }
 0x846   : > { %v1390_v1 = vmul.f32 %v5114_v0, %v5108_v38  ;;  %v5116_v3 = vpop.eup %5115 }
 0x847   : > { %v1629_v5 = vmul.f32 %v5116_v3, %v5832_v9  ;;  %v5118_v6 = vpop.eup %5117 }
 0x848   : > { %4684 = vmatmul.mubr.msk.f32.gmra.mxu1 %vm1116_vm7, %v1390_v1  ;;  %v1630_v10 = vmul.f32 %v5118_v6, %v5838_v12  ;;  %v5120_v13 = vpop.eup %5119 }
 0x849   : > { %4707 = vmatprep.mubr.msk.f32.mxu1 %vm5274_vm4, %v5273_v2  ;;  %v1631_v9 = vmul.f32 %v5120_v13, %v5836_v11  ;;  %v5122_v17 = vpop.eup %5121 }
 0x84a   : > { %v1870_v12 = vmul.f32 %v5122_v17, %v5844_v16  ;;  %v5124_v18 = vpop.eup %5123 }
 0x84b   : > { %v1871_v19 = vmul.f32 %v5124_v18, %v5856_v30  ;;  %v5126_v20 = vpop.eup %5125 }
 0x84c   : > { %4708 = vmatmul.mubr.msk.f32.vlgmr.msra.gmra.mxu1 %vm1116_vm7, %v1629_v5  ;;  %v1872_v11 = vmul.f32 %v5126_v20, %v5861_v34 }
 0x84d   : > { %4732 = vmatpush3.msra.mxu1 %v1878_v4  ;;  %4710 = vmatprep.mubr.msk.f32.mxu1 %vm5274_vm4, %v5273_v2 }
 0x84e   : > { %4733 = vmatprep.subr.mxu1 %v5273_v2 }
 0x84f   : > { %4734 = vmatpush3.msra.mxu1 %v1876_v8 }
 0x850   : > { %4735 = vmatprep.subr.mxu1 %v5273_v2  ;;  %4711 = vmatmul.mubr.msk.f32.gmra.mxu1 %vm1116_vm7, %v1630_v10 }
 0x851   : > { %4736 = vmatpush3.msra.mxu1 %v1874_v15  ;;  %4713 = vmatprep.mubr.msk.f32.mxu1 %vm5274_vm4, %v5273_v2 }
 0x852   : > { %4763 = vmatprep.subr.mxu1 %v5273_v2 }
 0x854   : > { %4714 = vmatmul.mubr.msk.f32.gmra.mxu1 %vm1116_vm7, %v1631_v9 }
 0x855   : > { %4737 = vmatprep.mubr.msk.f32.mxu1 %vm5274_vm4, %v5273_v2 }
 0x858   : > { %4738 = vmatmul.mubr.msk.f32.vlgmr.msra.gmra.mxu1 %vm1116_vm7, %v1870_v12 }
 0x859   : > { %4740 = vmatprep.mubr.msk.f32.mxu1 %vm5274_vm4, %v5273_v2 }
 0x85c   : > { %4741 = vmatmul.mubr.msk.f32.gmra.mxu1 %vm1116_vm7, %v1871_v19 }
 0x85d   : > { %4743 = vmatprep.mubr.msk.f32.mxu1 %vm5274_vm4, %v5273_v2 }
 0x860   : > { %4744 = vmatmul.mubr.msk.f32.gmra.mxu1 %vm1116_vm7, %v1872_v11 }
 0x861   : > { %4771 = vmatprep.mubr.msk.f32.mxu1 %vm5274_vm4, %v5273_v2 }
 0x8d3   : > { %v1475_v16 = vpop.f32.mrf.mxu1 }
 0x8d4   : > { %1974 = vrot.lane.b32.xlu1 %v1475_v16, %s6754_s4 }
 0x8d5   : > { %v4679_v21 = vpop.f32.mrf.mxu1 }
 0x8d7   : > { %v1480_v22 = vpop.f32.mrf.mxu1 }
 0x8d8   : > { %1976 = vrot.lane.b32.xlu0 %v1480_v22, %s6754_s4 }
 0x8d9   : > { %v4682_v23 = vpop.f32.mrf.mxu1 }
 0x908   : > { %v1485_v28 = vpop.f32.mrf.mxu1 }
 0x90a   : > { %v4685_v29 = vpop.f32.mrf.mxu1 }
 0x90c   : > { %v1716_v30 = vpop.f32.mrf.mxu1 }
 0x90d   : > { %1986 = vrot.lane.b32.xlu0 %v1716_v30, %s6752_s23  ;;  %v2182_v30 = vld [vmem:[%s6707_s12 + $0x18] sm:$0xff] }
 0x90e   : > { %v4709_v14 = vpop.f32.mrf.mxu1  ;;  %4764 = vmatpush3.msra.mxu1 %v2182_v30 }
 0x90f   : > { %4765 = vmatprep.subr.mxu1 %v5273_v2  ;;  %v2180_v14 = vld [vmem:[%s6707_s12 + $0x8] sm:$0xff] }
 0x910   : > { %v1721_v33 = vpop.f32.mrf.mxu1  ;;  %4766 = vmatpush3.msra.mxu1 %v2181_v31 }
 0x911   : > { %1988 = vrot.lane.b32.xlu1 %v1721_v33, %s6752_s23  ;;  %4767 = vmatprep.subr.mxu1 %v5273_v2  ;;  %v2179_v33 = vld [vmem:[%s6707_s12] sm:$0xff] }
 0x912   : > { %v4712_v34 = vpop.f32.mrf.mxu1  ;;  %4768 = vmatpush3.msra.mxu1 %v2180_v14 }
 0x913   : > { %4769 = vmatprep.subr.mxu1 %v5273_v2 }
 0x914   : > { %v1726_v7 = vpop.f32.mrf.mxu1  ;;  %4770 = vmatpush3.msra.mxu1 %v2179_v33 }
 0x915   : > { %4805 = vmatprep.subr.mxu1 %v5273_v2 }
 0x916   : > { %v4715_v35 = vpop.f32.mrf.mxu1 }
 0x918   : > { %v1957_v36 = vpop.f32.mrf.mxu1 }
 0x919   : > { %1998 = vrot.lane.b32.xlu1 %v1957_v36, %s6750_s3 }
 0x91a   : > { %v4739_v37 = vpop.f32.mrf.mxu1 }
 0x91c   : > { %v1962_v38 = vpop.f32.mrf.mxu1 }
 0x91d   : > { %1978 = vrot.lane.b32.xlu1 %v1485_v28, %s6754_s4  ;;  %2000 = vrot.lane.b32.xlu0 %v1962_v38, %s6750_s3  ;;  %s6788_s4 = smov 80  }
 0x91e   : > { %v4742_v39 = vpop.f32.mrf.mxu1 }
 0x920   : > { %v1967_v40 = vpop.f32.mrf.mxu1 }
 0x921   : > { %1990 = vrot.lane.b32.xlu0 %v1726_v7, %s6752_s23  ;;  %2002 = vrot.lane.b32.xlu1 %v1967_v40, %s6750_s3  ;;  %s6789_s23 = smov 112   ;;  %s6790_s3 = smov 72  }
 0x922   : > { %v4745_v41 = vpop.f32.mrf.mxu1 }
 0x946   : > { %v1975_v44 = vpop.permute.xlu1 %1974 }
 0x947   : > { %v2007_v49 = vsel %vm1015_vm5, %v5788_v59, %v1975_v44 }
 0x94a   : > { %v1977_v45 = vpop.permute.xlu0 %1976 }
 0x94b   : > { %v2008_v52 = vsel %vm1015_vm5, %v5790_v61, %v1977_v45  ;;  %v4334_v45 = vld [vmem:[%s6784_s10] ss:$0 sm:$0xff] }
 0x97f   : > { %v1987_v48 = vpop.permute.xlu0 %1986 }
 0x980   : > { %v2011_v46 = vsel %vm2010_vm8, %v2007_v49, %v1987_v48  ;;  %v4335_v48 = vld [vmem:[%s6706_s11] ss:$0 sm:$0xff] }
 0x983   : > { %v1989_v24 = vpop.permute.xlu1 %1988 }
 0x984   : > { %v2012_v42 = vsel %vm2010_vm8, %v2008_v52, %v1989_v24 }
 0x98b   : > { %v1999_v47 = vpop.permute.xlu1 %1998 }
 0x98c   : > { %v2014_v51 = vsel %vm1116_vm7, %v2011_v46, %v1999_v47 }
 0x98d   : > { %4755 = vmatmul.mubr.msk.f32.vlgmr.msra.gmra.mxu0 %vm847_vm3, %v2014_v51 }
 0x98e   : > { %4757 = vmatprep.mubr.msk.f32.mxu0 %vm5274_vm4, %v5273_v2 }
 0x98f   : > { %v1979_v54 = vpop.permute.xlu1 %1978  ;;  %v2001_v55 = vpop.permute.xlu0 %2000 }
 0x990   : > { %v2015_v57 = vsel %vm1116_vm7, %v2012_v42, %v2001_v55  ;;  %v2009_v59 = vsel %vm1015_vm5, %v5792_v63, %v1979_v54 }
 0x991   : > { %4758 = vmatmul.mubr.msk.f32.gmra.mxu0 %vm847_vm3, %v2015_v57 }
 0x992   : > { %4760 = vmatprep.mubr.msk.f32.mxu0 %vm5274_vm4, %v5273_v2 }
 0x993   : > { %v2003_v58 = vpop.permute.xlu1 %2002  ;;  %v1991_v60 = vpop.permute.xlu0 %1990 }
 0x994   : > { %v2013_v61 = vsel %vm2010_vm8, %v2009_v59, %v1991_v60  ;;  %v2312_v60 = vld [vmem:[%s6709_s14 + $0x30] sm:$0xff] }
 0x995   : > { %v2016_v62 = vsel %vm1116_vm7, %v2013_v61, %v2003_v58  ;;  %v2313_v58 = vld [vmem:[%s6709_s14 + $0x38] sm:$0xff]  ;;  %v2311_v61 = vld [vmem:[%s6709_s14 + $0x28] sm:$0xff] }
 0x996   : > { %4761 = vmatmul.mubr.msk.f32.gmra.mxu0 %vm847_vm3, %v2016_v62  ;;  %v2310_v62 = vld [vmem:[%s6709_s14 + $0x20] sm:$0xff] }
 0x997   : > { %4796 = vmatprep.mubr.msk.f32.mxu0 %vm5274_vm4, %v5273_v2  ;;  %4781 = vmatpush3.msra.mxu0 %v2313_v58 }
 0x998   : > { %4782 = vmatprep.subr.mxu0 %v5273_v2 }
 0x999   : > { %4783 = vmatpush3.msra.mxu0 %v2312_v60 }
 0x99a   : > { %4784 = vmatprep.subr.mxu0 %v5273_v2 }
 0x99b   : > { %4785 = vmatpush3.msra.mxu0 %v2311_v61 }
 0x99c   : > { %4786 = vmatprep.subr.mxu0 %v5273_v2 }
 0x99d   : > { %4787 = vmatpush3.msra.mxu0 %v2310_v62 }
 0x99e   : > { %4788 = vmatprep.subr.mxu0 %v5273_v2 }
 0xa4d   : > { %v2103_v0 = vpop.f32.mrf.mxu0 }
 0xa4e   : > { %v2104_v1 = vadd.f32 %v4330_v32, %v2103_v0  ;;  %v2308_v0 = vld [vmem:[%s6709_s14 + $0x10] sm:$0xff] }
 0xa4f   : > { %v4756_v3 = vpop.f32.mrf.mxu0 }
 0xa50   : > { %v5973_v63 = vadd.f32 %v2104_v1, %v5583_v43  ;;  %v2307_v1 = vld [vmem:[%s6709_s14 + $0x8] sm:$0xff]  ;;  %v2306_v3 = vld [vmem:[%s6709_s14] sm:$0xff] }
 0xa51   : > { %v2108_v4 = vpop.f32.mrf.mxu0 }
 0xa52   : > { %v2109_v5 = vadd.f32 %v4330_v32, %v2108_v4  ;;  %v2122_v6 = vsel %vm847_vm3, %v5973_v63, 0.0  ;;  %v4336_v4 = vld [vmem:[%s6708_s13] ss:$0 sm:$0xff] }
 0xa53   : > { %2123 = vadd.xlane.f32.xlu0 %v2122_v6  ;;  %v4759_v8 = vpop.f32.mrf.mxu0 }
 0xa54   : > { %v5978_v10 = vadd.f32 %v2109_v5, %v5591_v50 }
 0xa56   : > { %v2113_v13 = vpop.f32.mrf.mxu0  ;;  %v2125_v15 = vsel %vm847_vm3, %v5978_v10, 0.0 }
 0xa57   : > { %v2114_v9 = vadd.f32 %v4330_v32, %v2113_v13  ;;  %2126 = vadd.xlane.f32.xlu1 %v2125_v15  ;;  %v2309_v32 = vld [vmem:[%s6709_s14 + $0x18] sm:$0xff] }
 0xa58   : > { %v4762_v17 = vpop.f32.mrf.mxu0  ;;  %4789 = vmatpush3.msra.mxu0 %v2309_v32 }
 0xa59   : > { %v5983_v43 = vadd.f32 %v2114_v9, %v5595_v56  ;;  %4790 = vmatprep.subr.mxu0 %v5273_v2 }
 0xa5a   : > { %4791 = vmatpush3.msra.mxu0 %v2308_v0 }
 0xa5b   : > { %v2128_v12 = vsel %vm847_vm3, %v5983_v43, 0.0  ;;  %4792 = vmatprep.subr.mxu0 %v5273_v2 }
 0xa5c   : > { %2129 = vadd.xlane.f32.xlu0 %v2128_v12  ;;  %4793 = vmatpush3.msra.mxu0 %v2307_v1 }
 0xa5d   : > { %4794 = vmatprep.subr.mxu0 %v5273_v2 }
 0xa5e   : > { %4795 = vmatpush3.msra.mxu0 %v2306_v3 }
 0xa5f   : > { %4822 = vmatprep.subr.mxu0 %v5273_v2 }
 0xadc   : > { %v2124_v18 = vpop.xlane.xlu0 %2123 }
 0xadd   : > { %v2131_v19 = vmul.f32 0.03125, %v2124_v18 }
 0xadf   : > { %v2134_v20 = vsub.f32 %v5973_v63, %v2131_v19 }
 0xae0   : > { %v2127_v50 = vpop.xlane.xlu1 %2126 }
 0xae1   : > { %v2132_v11 = vmul.f32 0.03125, %v2127_v50  ;;  %v2137_v16 = vmul.f32 %v2134_v20, %v2134_v20 }
 0xae3   : > { %v2135_v21 = vsub.f32 %v5978_v10, %v2132_v11  ;;  %v2140_v22 = vsel %vm847_vm3, %v2137_v16, 0.0 }
 0xae4   : > { %2141 = vadd.xlane.f32.xlu0 %v2140_v22 }
 0xae5   : > { %v2130_v23 = vpop.xlane.xlu0 %2129  ;;  %v2138_v25 = vmul.f32 %v2135_v21, %v2135_v21 }
 0xae6   : > { %v2133_v56 = vmul.f32 0.03125, %v2130_v23 }
 0xae7   : > { %v2143_v26 = vsel %vm847_vm3, %v2138_v25, 0.0 }
 0xae8   : > { %v2136_v27 = vsub.f32 %v5983_v43, %v2133_v56  ;;  %2144 = vadd.xlane.f32.xlu0 %v2143_v26 }
 0xaea   : > { %v2139_v28 = vmul.f32 %v2136_v27, %v2136_v27 }
 0xaec   : > { %v2146_v29 = vsel %vm847_vm3, %v2139_v28, 0.0 }
 0xaed   : > { %2147 = vadd.xlane.f32.xlu1 %v2146_v29 }
 0xb6d   : > { %v2142_v34 = vpop.xlane.xlu0 %2141 }
 0xb6e   : > { %v2149_v7 = vmul.f32 0.03125, %v2142_v34 }
 0xb70   : > { %v2152_v35 = vadd.f32 1e-12, %v2149_v7 }
 0xb71   : > { %v2145_v36 = vpop.xlane.xlu0 %2144 }
 0xb72   : > { %5127 = vrsqrt.f32 %v2152_v35  ;;  %v2150_v37 = vmul.f32 0.03125, %v2145_v36 }
 0xb74   : > { %v2153_v38 = vadd.f32 1e-12, %v2150_v37 }
 0xb76   : > { %5129 = vrsqrt.f32 %v2153_v38  ;;  %v2148_v39 = vpop.xlane.xlu1 %2147 }
 0xb77   : > { %v2151_v40 = vmul.f32 0.03125, %v2148_v39 }
 0xb79   : > { %v2154_v41 = vadd.f32 1e-12, %v2151_v40 }
 0xb7b   : > { %5131 = vrsqrt.f32 %v2154_v41 }
 0xb7f   : > { %v5128_v44 = vpop.eup %5127 }
 0xb80   : > { %v2158_v24 = vmul.f32 %v5128_v44, %v2134_v20  ;;  %v4340_v44 = vld [vmem:[%s6710_s15] ss:$0 sm:$0xff] }
 0xb82   : > { %v2167_v49 = vmul.f32 %v4334_v45, %v2158_v24 }
 0xb83   : > { %v5130_v46 = vpop.eup %5129 }
 0xb84   : > { %v2176_v47 = vadd.f32 %v4335_v48, %v2167_v49  ;;  %v2159_v51 = vmul.f32 %v5130_v46, %v2135_v21 }
 0xb86   : > { %4772 = vmatmul.mubr.msk.f32.vlgmr.msra.gmra.mxu1 %vm847_vm3, %v2176_v47  ;;  %v2168_v52 = vmul.f32 %v4334_v45, %v2159_v51 }
 0xb87   : > { %4774 = vmatprep.mubr.msk.f32.mxu1 %vm5274_vm4, %v5273_v2 }
 0xb88   : > { %v5132_v42 = vpop.eup %5131  ;;  %v2177_v54 = vadd.f32 %v4335_v48, %v2168_v52 }
 0xb89   : > { %v2160_v55 = vmul.f32 %v5132_v42, %v2136_v27 }
 0xb8a   : > { %4775 = vmatmul.mubr.msk.f32.gmra.mxu1 %vm847_vm3, %v2177_v54 }
 0xb8b   : > { %4777 = vmatprep.mubr.msk.f32.mxu1 %vm5274_vm4, %v5273_v2  ;;  %v2169_v57 = vmul.f32 %v4334_v45, %v2160_v55 }
 0xb8d   : > { %v2178_v59 = vadd.f32 %v4335_v48, %v2169_v57 }
 0xb8f   : > { %4778 = vmatmul.mubr.msk.f32.gmra.mxu1 %vm847_vm3, %v2178_v59 }
 0xb90   : > { %4813 = vmatprep.mubr.msk.f32.mxu1 %vm5274_vm4, %v5273_v2 }
 0xc46   : > { %v2265_v5 = vpop.f32.mrf.mxu1 }
 0xc47   : > { %v2266_v6 = vadd.f32 %v4336_v4, %v2265_v5 }
 0xc48   : > { %v4773_v8 = vpop.f32.mrf.mxu1 }
 0xc49   : > { %v2279_v13 = vmul.f32 %v2266_v6, %v2266_v6 }
 0xc4a   : > { %v2270_v15 = vpop.f32.mrf.mxu1 }
 0xc4b   : > { %v2282_v9 = vmul.f32 %v2279_v13, %v2266_v6  ;;  %v2271_v17 = vadd.f32 %v4336_v4, %v2270_v15 }
 0xc4c   : > { %v4776_v12 = vpop.f32.mrf.mxu1 }
 0xc4d   : > { %v2285_v18 = vmul.f32 0.044715, %v2282_v9  ;;  %v2280_v19 = vmul.f32 %v2271_v17, %v2271_v17  ;;  %v4351_v9 = vld [vmem:[%s6778_s27 + $0x38] sm:$0xff]  ;;  %v4349_v12 = vld [vmem:[%s6778_s27 + $0x28] sm:$0xff] }
 0xc4e   : > { %4806 = vmatpush3.msra.mxu1 %v4351_v9 }
 0xc4f   : > { %v2288_v20 = vadd.f32 %v2285_v18, %v2266_v6  ;;  %v2283_v50 = vmul.f32 %v2280_v19, %v2271_v17  ;;  %v2275_v11 = vpop.f32.mrf.mxu1  ;;  %4807 = vmatprep.subr.mxu1 %v5273_v2  ;;  %v4348_v18 = vld [vmem:[%s6778_s27 + $0x20] sm:$0xff] }
 0xc50   : > { %v2276_v16 = vadd.f32 %v4336_v4, %v2275_v11 }
 0xc51   : > { %v2291_v21 = vmul.f32 0.7978846, %v2288_v20  ;;  %v2286_v22 = vmul.f32 0.044715, %v2283_v50  ;;  %v4779_v23 = vpop.f32.mrf.mxu1 }
 0xc52   : > { %v2281_v25 = vmul.f32 %v2276_v16, %v2276_v16 }
 0xc53   : > { %5133 = vtanh.f32 %v2291_v21  ;;  %v2289_v56 = vadd.f32 %v2286_v22, %v2271_v17 }
 0xc54   : > { %v2284_v26 = vmul.f32 %v2281_v25, %v2276_v16 }
 0xc55   : > { %v2292_v27 = vmul.f32 0.7978846, %v2289_v56 }
 0xc56   : > { %v2287_v28 = vmul.f32 0.044715, %v2284_v26  ;;  %v4346_v26 = vld [vmem:[%s6779_s28 + $0x1] ss:$0 sm:$0xff] }
 0xc57   : > { %5135 = vtanh.f32 %v2292_v27 }
 0xc58   : > { %v2290_v29 = vadd.f32 %v2287_v28, %v2276_v16  ;;  %v4347_v28 = vld [vmem:[%s6780_s24 + $0x1] ss:$0 sm:$0xff] }
 0xc5a   : > { %v2293_v30 = vmul.f32 0.7978846, %v2290_v29 }
 0xc5c   : > { %5137 = vtanh.f32 %v2293_v30 }
 0xc60   : > { %v5134_v31 = vpop.eup %5133 }
 0xc61   : > { %v2297_v14 = vadd.f32 1.0, %v5134_v31 }
 0xc63   : > { %v2300_v33 = vmul.f32 0.5, %v2297_v14 }
 0xc64   : > { %v5136_v34 = vpop.eup %5135 }
 0xc65   : > { %v2303_v7 = vmul.f32 %v2300_v33, %v2266_v6  ;;  %v2298_v35 = vadd.f32 1.0, %v5136_v34 }
 0xc67   : > { %4797 = vmatmul.mubr.msk.f32.vlgmr.msra.gmra.mxu0 %vm714_vm0, %v2303_v7  ;;  %v2301_v36 = vmul.f32 0.5, %v2298_v35 }
 0xc68   : > { %4799 = vmatprep.mubr.msk.f32.mxu0 %vm5274_vm4, %v5273_v2 }
 0xc69   : > { %v5138_v37 = vpop.eup %5137  ;;  %v2304_v38 = vmul.f32 %v2301_v36, %v2271_v17  ;;  %v4350_v17 = vld [vmem:[%s6778_s27 + $0x30] sm:$0xff] }
 0xc6a   : > { %v2299_v39 = vadd.f32 1.0, %v5138_v37  ;;  %4808 = vmatpush3.msra.mxu1 %v4350_v17 }
 0xc6b   : > { %4800 = vmatmul.mubr.msk.f32.gmra.mxu0 %vm714_vm0, %v2304_v38  ;;  %4809 = vmatprep.subr.mxu1 %v5273_v2 }
 0xc6c   : > { %4802 = vmatprep.mubr.msk.f32.mxu0 %vm5274_vm4, %v5273_v2  ;;  %v2302_v40 = vmul.f32 0.5, %v2299_v39  ;;  %4810 = vmatpush3.msra.mxu1 %v4349_v12 }
 0xc6d   : > { %4811 = vmatprep.subr.mxu1 %v5273_v2 }
 0xc6e   : > { %v2305_v41 = vmul.f32 %v2302_v40, %v2276_v16  ;;  %4812 = vmatpush3.msra.mxu1 %v4348_v18  ;;  %v4353_v40 = vld [vmem:[%s6781_s7 + $0x1] ss:$0 sm:$0xff] }
 0xc6f   : > { %4837 = vmatprep.subr.mxu1 %v5273_v2 }
 0xc70   : > { %4803 = vmatmul.mubr.msk.f32.gmra.mxu0 %vm714_vm0, %v2305_v41 }
 0xc71   : > { %4828 = vmatprep.mubr.msk.f32.mxu0 %vm5274_vm4, %v5273_v2 }
 0xd27   : > { %v2396_v45 = vpop.f32.mrf.mxu0 }
 0xd28   : > { %v2397_v24 = vadd.f32 %v4340_v44, %v2396_v45 }
 0xd29   : > { %v4798_v48 = vpop.f32.mrf.mxu0 }
 0xd2a   : > { %v6072_v49 = vadd.f32 %v2397_v24, %v5973_v63 }
 0xd2b   : > { %v2401_v46 = vpop.f32.mrf.mxu0 }
 0xd2c   : > { %v2402_v47 = vadd.f32 %v4340_v44, %v2401_v46  ;;  %v2417_v51 = vsel %vm847_vm3, %v6072_v49, 0.0 }
 0xd2d   : > { %2418 = vadd.xlane.f32.xlu0 %v2417_v51  ;;  %v4801_v52 = vpop.f32.mrf.mxu0 }
 0xd2e   : > { %v6077_v42 = vadd.f32 %v2402_v47, %v5978_v10 }
 0xd30   : > { %v2406_v54 = vpop.f32.mrf.mxu0  ;;  %v2420_v55 = vsel %vm847_vm3, %v6077_v42, 0.0 }
 0xd31   : > { %v2407_v57 = vadd.f32 %v4340_v44, %v2406_v54  ;;  %2421 = vadd.xlane.f32.xlu1 %v2420_v55 }
 0xd32   : > { %v4804_v59 = vpop.f32.mrf.mxu0 }
 0xd33   : > { %v6082_v63 = vadd.f32 %v2407_v57, %v5983_v43 }
 0xd35   : > { %v2423_v58 = vsel %vm847_vm3, %v6082_v63, 0.0 }
 0xd36   : > { %2424 = vadd.xlane.f32.xlu0 %v2423_v58 }
 0xdb6   : > { %v2419_v60 = vpop.xlane.xlu0 %2418 }
 0xdb7   : > { %v2426_v61 = vmul.f32 0.03125, %v2419_v60 }
 0xdb9   : > { %v2429_v62 = vsub.f32 %v6072_v49, %v2426_v61 }
 0xdba   : > { %v2422_v10 = vpop.xlane.xlu1 %2421 }
 0xdbb   : > { %v2427_v32 = vmul.f32 0.03125, %v2422_v10  ;;  %v2432_v0 = vmul.f32 %v2429_v62, %v2429_v62 }
 0xdbd   : > { %v2430_v1 = vsub.f32 %v6077_v42, %v2427_v32  ;;  %v2435_v3 = vsel %vm847_vm3, %v2432_v0, 0.0 }
 0xdbe   : > { %2436 = vadd.xlane.f32.xlu1 %v2435_v3 }
 0xdbf   : > { %v2425_v4 = vpop.xlane.xlu0 %2424  ;;  %v2433_v5 = vmul.f32 %v2430_v1, %v2430_v1 }
 0xdc0   : > { %v2428_v43 = vmul.f32 0.03125, %v2425_v4 }
 0xdc1   : > { %v2438_v6 = vsel %vm847_vm3, %v2433_v5, 0.0 }
 0xdc2   : > { %v2431_v8 = vsub.f32 %v6082_v63, %v2428_v43  ;;  %2439 = vadd.xlane.f32.xlu0 %v2438_v6 }
 0xdc4   : > { %v2434_v13 = vmul.f32 %v2431_v8, %v2431_v8 }
 0xdc6   : > { %v2441_v15 = vsel %vm847_vm3, %v2434_v13, 0.0 }
 0xdc7   : > { %2442 = vadd.xlane.f32.xlu1 %v2441_v15 }
 0xe47   : > { %v2437_v19 = vpop.xlane.xlu1 %2436 }
 0xe48   : > { %v2444_v20 = vmul.f32 0.03125, %v2437_v19 }
 0xe4a   : > { %v2447_v50 = vadd.f32 1e-12, %v2444_v20 }
 0xe4b   : > { %v2440_v11 = vpop.xlane.xlu0 %2439 }
 0xe4c   : > { %5139 = vrsqrt.f32 %v2447_v50  ;;  %v2445_v16 = vmul.f32 0.03125, %v2440_v11 }
 0xe4e   : > { %v2448_v21 = vadd.f32 1e-12, %v2445_v16 }
 0xe50   : > { %5141 = vrsqrt.f32 %v2448_v21  ;;  %v2443_v22 = vpop.xlane.xlu1 %2442 }
 0xe51   : > { %v2446_v23 = vmul.f32 0.03125, %v2443_v22 }
 0xe53   : > { %v2449_v25 = vadd.f32 1e-12, %v2446_v23 }
 0xe55   : > { %5143 = vrsqrt.f32 %v2449_v25 }
 0xe59   : > { %v5140_v56 = vpop.eup %5139 }
 0xe5a   : > { %v2453_v27 = vmul.f32 %v5140_v56, %v2429_v62 }
 0xe5c   : > { %v2462_v29 = vmul.f32 %v4346_v26, %v2453_v27 }
 0xe5d   : > { %v5142_v30 = vpop.eup %5141 }
 0xe5e   : > { %v2471_v31 = vadd.f32 %v4347_v28, %v2462_v29  ;;  %v2454_v14 = vmul.f32 %v5142_v30, %v2430_v1 }
 0xe60   : > { %4814 = vmatmul.mubr.msk.f32.vlgmr.msra.gmra.mxu1 %vm847_vm3, %v2471_v31  ;;  %v2463_v33 = vmul.f32 %v4346_v26, %v2454_v14 }
 0xe61   : > { %4816 = vmatprep.mubr.msk.f32.mxu1 %vm5274_vm4, %v5273_v2 }
 0xe62   : > { %v5144_v34 = vpop.eup %5143  ;;  %v2472_v7 = vadd.f32 %v4347_v28, %v2463_v33 }
 0xe63   : > { %v2455_v35 = vmul.f32 %v5144_v34, %v2431_v8 }
 0xe64   : > { %4817 = vmatmul.mubr.msk.f32.gmra.mxu1 %vm847_vm3, %v2472_v7 }
 0xe65   : > { %4819 = vmatprep.mubr.msk.f32.mxu1 %vm5274_vm4, %v5273_v2  ;;  %v2464_v36 = vmul.f32 %v4346_v26, %v2455_v35 }
 0xe67   : > { %v2473_v37 = vadd.f32 %v4347_v28, %v2464_v36 }
 0xe69   : > { %4820 = vmatmul.mubr.msk.f32.gmra.mxu1 %vm847_vm3, %v2473_v37 }
 0xe6a   : > { %4843 = vmatprep.mubr.msk.f32.mxu1 %vm5274_vm4, %v5273_v2 }
 0xf20   : > { %v2562_v38 = vpop.f32.mrf.mxu1 }
 0xf21   : > { %v6130_v24 = vadd.f32 %v4353_v40, %v2562_v38 }
 0xf22   : > { %v4815_v39 = vpop.f32.mrf.mxu1 }
 0xf24   : > { %v2567_v41 = vpop.f32.mrf.mxu1 }
 0xf25   : > { %v6126_v44 = vadd.f32 %v4353_v40, %v2567_v41 }
 0xf26   : > { %v4818_v45 = vpop.f32.mrf.mxu1 }
 0xf27   : > { %2581 = vrot.lane.b32.xlu1 %v6126_v44, %s6785_s1 }
 0xf29   : > { %v2572_v48 = vpop.f32.mrf.mxu1 }
 0xf2a   : > { %v6132_v46 = vadd.f32 %v4353_v40, %v2572_v48 }
 0xf2b   : > { %2579 = vrot.lane.b32.xlu1 %v6130_v24, %s6785_s1  ;;  %v4821_v47 = vpop.f32.mrf.mxu1 }
 0xf2c   : > { %2583 = vrot.lane.b32.xlu0 %v6132_v46, %s6785_s1  ;;  %s6793_s1 = smov 56  }
 0xf2f   : > { %2824 = vrot.lane.b32.xlu1 %v6132_v46, %s6786_s26 }
 0xf30   : > { %2822 = vrot.lane.b32.xlu0 %v6126_v44, %s6786_s26 }
 0xf33   : > { %2820 = vrot.lane.b32.xlu1 %v6130_v24, %s6786_s26  ;;  %s6794_s26 = smov 48  }
 0xf34   : > { %2814 = vrot.lane.b32.xlu0 %v6130_v24, %s6787_s6 }
 0xf37   : > { %3065 = vrot.lane.b32.xlu1 %v6132_v46, %s6788_s4 }
 0xf38   : > { %2816 = vrot.lane.b32.xlu0 %v6126_v44, %s6787_s6 }
 0xf3b   : > { %3063 = vrot.lane.b32.xlu1 %v6126_v44, %s6788_s4 }
 0xf3c   : > { %2818 = vrot.lane.b32.xlu0 %v6132_v46, %s6787_s6  ;;  %s6795_s6 = smov 40  }
 0xf3f   : > { %3061 = vrot.lane.b32.xlu1 %v6130_v24, %s6788_s4  ;;  %s6796_s4 = smov 8  }
 0xf40   : > { %3055 = vrot.lane.b32.xlu0 %v6130_v24, %s6789_s23 }
 0xf43   : > { %3306 = vrot.lane.b32.xlu1 %v6132_v46, %s6790_s3 }
 0xf44   : > { %3057 = vrot.lane.b32.xlu0 %v6126_v44, %s6789_s23 }
 0xf47   : > { %3304 = vrot.lane.b32.xlu1 %v6126_v44, %s6790_s3 }
 0xf48   : > { %3059 = vrot.lane.b32.xlu0 %v6132_v46, %s6789_s23  ;;  %s6797_s23 = smov 16  }
 0xf4b   : > { %3302 = vrot.lane.b32.xlu1 %v6130_v24, %s6790_s3  ;;  %s676_s3 = sand.u32 1, %s5263_s30  }
 0xf4c   : > { %3296 = vrot.lane.b32.xlu0 %v6130_v24, %s6791_s2 }
 0xf4f   : > { %3298 = vrot.lane.b32.xlu1 %v6126_v44, %s6791_s2 }
 0xf50   : > { %3300 = vrot.lane.b32.xlu0 %v6132_v46, %s6791_s2  ;;  %s6798_s2 = smov 24  }
 0xf53   : > { %2716 = vrot.lane.b32.xlu1 %v6130_v24, %s6792_s5 }
 0xf54   : > { %2718 = vrot.lane.b32.xlu0 %v6126_v44, %s6792_s5 }
 0xf57   : > { %2720 = vrot.lane.b32.xlu1 %v6132_v46, %s6792_s5  ;;  %s4441_s5 = sshll.u32 %s5431_s19, 9 }
 0xf5b   : > { %2961 = vrot.lane.b32.xlu1 %v6132_v46, %s6793_s1 }
 0xf99   : > { %v2582_v51 = vpop.permute.xlu1 %2581 }
 0xf9d   : > { %v2580_v52 = vpop.permute.xlu1 %2579 }
 0xf9e   : > { %v2584_v54 = vpop.permute.xlu0 %2583 }
 0xf9f   : > { %4823 = vmatpush3.xpose.msk.msra.mxu0 %vm1015_vm5, %v2584_v54 }
 0xfa0   : > { %4824 = vmatprep.subr.mxu0 %v5273_v2 }
 0xfa1   : > { %v2825_v55 = vpop.permute.xlu1 %2824 }
 0xfa2   : > { %v2823_v57 = vpop.permute.xlu0 %2822 }
 0xfa3   : > { %4825 = vmatpush3.xpose.msk.msra.mxu0 %vm1015_vm5, %v2582_v51 }
 0xfa4   : > { %4826 = vmatprep.subr.mxu0 %v5273_v2 }
 0xfa5   : > { %v2821_v59 = vpop.permute.xlu1 %2820 }
 0xfa6   : > { %v2815_v58 = vpop.permute.xlu0 %2814 }
 0xfa7   : > { %4827 = vmatpush3.xpose.msk.msra.mxu0 %vm1015_vm5, %v2580_v52 }
 0xfa8   : > { %4852 = vmatprep.subr.mxu0 %v5273_v2 }
 0xfa9   : > { %v3066_v60 = vpop.permute.xlu1 %3065 }
 0xfaa   : > { %4829 = vmatmul.mubr.msk.f32.vlgmr.msra.gmra.mxu0 %vm1015_vm5, %v6130_v24  ;;  %v2817_v61 = vpop.permute.xlu0 %2816 }
 0xfab   : > { %4853 = vmatpush3.xpose.msk.msra.mxu0 %vm1015_vm5, %v2825_v55  ;;  %4831 = vmatprep.mubr.msk.f32.mxu0 %vm5274_vm4, %v5273_v2 }
 0xfac   : > { %4854 = vmatprep.subr.mxu0 %v5273_v2 }
 0xfad   : > { %v3064_v62 = vpop.permute.xlu1 %3063 }
 0xfae   : > { %4832 = vmatmul.mubr.msk.f32.gmra.mxu0 %vm1015_vm5, %v6126_v44  ;;  %v2819_v10 = vpop.permute.xlu0 %2818 }
 0xfaf   : > { %4855 = vmatpush3.xpose.msk.msra.mxu0 %vm1015_vm5, %v2823_v57  ;;  %4834 = vmatprep.mubr.msk.f32.mxu0 %vm5274_vm4, %v5273_v2 }
 0xfb0   : > { %4856 = vmatprep.subr.mxu0 %v5273_v2 }
 0xfb1   : > { %v3062_v32 = vpop.permute.xlu1 %3061 }
 0xfb2   : > { %4835 = vmatmul.mubr.msk.f32.gmra.mxu0 %vm1015_vm5, %v6132_v46  ;;  %v3056_v0 = vpop.permute.xlu0 %3055 }
 0xfb3   : > { %4857 = vmatpush3.xpose.msk.msra.mxu0 %vm1015_vm5, %v2821_v59  ;;  %4858 = vmatprep.mubr.msk.f32.mxu0 %vm5274_vm4, %v5273_v2 }
 0xfb4   : > { %4882 = vmatprep.subr.mxu0 %v5273_v2 }
 0xfb5   : > { %v3307_v1 = vpop.permute.xlu1 %3306 }
 0xfb6   : > { %4859 = vmatmul.mubr.msk.f32.vlgmr.msra.gmra.mxu0 %vm1015_vm5, %v2815_v58  ;;  %v3058_v3 = vpop.permute.xlu0 %3057 }
 0xfb7   : > { %4883 = vmatpush3.xpose.msk.msra.mxu0 %vm1015_vm5, %v3066_v60  ;;  %4861 = vmatprep.mubr.msk.f32.mxu0 %vm5274_vm4, %v5273_v2 }
 0xfb8   : > { %4884 = vmatprep.subr.mxu0 %v5273_v2 }
 0xfb9   : > { %v3305_v4 = vpop.permute.xlu1 %3304 }
 0xfba   : > { %4862 = vmatmul.mubr.msk.f32.gmra.mxu0 %vm1015_vm5, %v2817_v61  ;;  %v3060_v5 = vpop.permute.xlu0 %3059 }
 0xfbb   : > { %4885 = vmatpush3.xpose.msk.msra.mxu0 %vm1015_vm5, %v3064_v62  ;;  %4864 = vmatprep.mubr.msk.f32.mxu0 %vm5274_vm4, %v5273_v2 }
 0xfbc   : > { %4886 = vmatprep.subr.mxu0 %v5273_v2 }
 0xfbd   : > { %v3303_v43 = vpop.permute.xlu1 %3302 }
 0xfbe   : > { %4865 = vmatmul.mubr.msk.f32.gmra.mxu0 %vm1015_vm5, %v2819_v10  ;;  %v3297_v6 = vpop.permute.xlu0 %3296 }
 0xfbf   : > { %4887 = vmatpush3.xpose.msk.msra.mxu0 %vm1015_vm5, %v3062_v32  ;;  %4888 = vmatprep.mubr.msk.f32.mxu0 %vm5274_vm4, %v5273_v2 }
 0xfc0   : > { %4912 = vmatprep.subr.mxu0 %v5273_v2 }
 0xfc1   : > { %v3299_v8 = vpop.permute.xlu1 %3298 }
 0xfc2   : > { %4889 = vmatmul.mubr.msk.f32.vlgmr.msra.gmra.mxu0 %vm1015_vm5, %v3056_v0  ;;  %v3301_v13 = vpop.permute.xlu0 %3300 }
 0xfc3   : > { %4913 = vmatpush3.xpose.msk.msra.mxu0 %vm1015_vm5, %v3307_v1  ;;  %4891 = vmatprep.mubr.msk.f32.mxu0 %vm5274_vm4, %v5273_v2 }
 0xfc4   : > { %4914 = vmatprep.subr.mxu0 %v5273_v2 }
 0xfc5   : > { %v2717_v15 = vpop.permute.xlu1 %2716 }
 0xfc6   : > { %4892 = vmatmul.mubr.msk.f32.gmra.mxu0 %vm1015_vm5, %v3058_v3  ;;  %v2719_v17 = vpop.permute.xlu0 %2718 }
 0xfc7   : > { %4915 = vmatpush3.xpose.msk.msra.mxu0 %vm1015_vm5, %v3305_v4  ;;  %4894 = vmatprep.mubr.msk.f32.mxu0 %vm5274_vm4, %v5273_v2 }
 0xfc8   : > { %4916 = vmatprep.subr.mxu0 %v5273_v2 }
 0xfc9   : > { %v2721_v9 = vpop.permute.xlu1 %2720 }
 0xfca   : > { %4838 = vmatpush3.msra.mxu1 %v2721_v9  ;;  %4895 = vmatmul.mubr.msk.f32.gmra.mxu0 %vm1015_vm5, %v3060_v5 }
 0xfcb   : > { %4839 = vmatprep.subr.mxu1 %v5273_v2  ;;  %4917 = vmatpush3.xpose.msk.msra.mxu0 %vm1015_vm5, %v3303_v43 }
 0xfcc   : > { %4840 = vmatpush3.msra.mxu1 %v2719_v17  ;;  %4918 = vmatprep.mubr.msk.f32.mxu0 %vm5274_vm4, %v5273_v2 }
 0xfcd   : > { %4841 = vmatprep.subr.mxu1 %v5273_v2  ;;  %4942 = vmatprep.subr.mxu0 %v5273_v2 }
 0xfce   : > { %4842 = vmatpush3.msra.mxu1 %v2717_v15  ;;  %4919 = vmatmul.mubr.msk.f32.vlgmr.msra.gmra.mxu0 %vm1015_vm5, %v3297_v6 }
 0xfcf   : > { %4921 = vmatprep.mubr.msk.f32.mxu0 %vm5274_vm4, %v5273_v2  ;;  %4867 = vmatprep.subr.mxu1 %v5273_v2 }
 0xfd2   : > { %4922 = vmatmul.mubr.msk.f32.gmra.mxu0 %vm1015_vm5, %v3299_v8 }
 0xfd3   : > { %4924 = vmatprep.mubr.msk.f32.mxu0 %vm5274_vm4, %v5273_v2 }
 0xfd6   : > { %4925 = vmatmul.mubr.msk.f32.gmra.mxu0 %vm1015_vm5, %v3301_v13 }
 0xfd7   : > { %4950 = vmatprep.mubr.msk.f32.mxu0 %vm5274_vm4, %v5273_v2 }
0x106a   : > { %v2663_v12 = vpop.f32.mrf.mxu0 }
0x106b   : > { %v2677_v18 = vmul.f32 0.35355338, %v2663_v12 }
0x106c   : > { %v4830_v19 = vpop.f32.mrf.mxu0 }
0x106d   : > { %v6250_v20 = vsel %vm844_vm6, %v2677_v18, -1e+30 }
0x106e   : > { %v2668_v50 = vpop.f32.mrf.mxu0  ;;  %v2683_v11 = vsel %vm1116_vm7, %v6250_v20, -inf }
0x106f   : > { %v2678_v16 = vmul.f32 0.35355338, %v2668_v50  ;;  %2684 = vmax.xlane.f32.xlu1 %v2683_v11  ;;  %v6326_v11 = vpop.permute.xlu1 %2961 }
0x1070   : > { %v4833_v21 = vpop.f32.mrf.mxu0 }
0x1071   : > { %v6256_v22 = vsel %vm844_vm6, %v2678_v16, -1e+30 }
0x1072   : > { %v2673_v23 = vpop.f32.mrf.mxu0  ;;  %v2686_v25 = vsel %vm1116_vm7, %v6256_v22, -inf }
0x1073   : > { %v2679_v56 = vmul.f32 0.35355338, %v2673_v23  ;;  %2687 = vmax.xlane.f32.xlu0 %v2686_v25 }
0x1074   : > { %v4836_v26 = vpop.f32.mrf.mxu0 }
0x1075   : > { %v6262_v27 = vsel %vm844_vm6, %v2679_v56, -1e+30 }
0x1076   : > { %v2904_v28 = vpop.f32.mrf.mxu0  ;;  %v2689_v29 = vsel %vm1116_vm7, %v6262_v27, -inf }
0x1077   : > { %v2918_v30 = vmul.f32 0.35355338, %v2904_v28  ;;  %2690 = vmax.xlane.f32.xlu0 %v2689_v29 }
0x1078   : > { %v4860_v31 = vpop.f32.mrf.mxu0 }
0x1079   : > { %v6268_v14 = vsel %vm844_vm6, %v2918_v30, -1e+30 }
0x107a   : > { %v2909_v33 = vpop.f32.mrf.mxu0  ;;  %v2924_v34 = vsel %vm1116_vm7, %v6268_v14, -inf }
0x107b   : > { %v2919_v7 = vmul.f32 0.35355338, %v2909_v33  ;;  %2925 = vmax.xlane.f32.xlu0 %v2924_v34 }
0x107c   : > { %v4863_v35 = vpop.f32.mrf.mxu0 }
0x107d   : > { %v6274_v36 = vsel %vm844_vm6, %v2919_v7, -1e+30 }
0x107e   : > { %v2914_v37 = vpop.f32.mrf.mxu0  ;;  %v2927_v38 = vsel %vm1116_vm7, %v6274_v36, -inf }
0x107f   : > { %v2920_v39 = vmul.f32 0.35355338, %v2914_v37  ;;  %2928 = vmax.xlane.f32.xlu1 %v2927_v38 }
0x1080   : > { %v4866_v40 = vpop.f32.mrf.mxu0 }
0x1081   : > { %v6280_v41 = vsel %vm844_vm6, %v2920_v39, -1e+30 }
0x1082   : > { %v3145_v45 = vpop.f32.mrf.mxu0  ;;  %v2930_v48 = vsel %vm1116_vm7, %v6280_v41, -inf }
0x1083   : > { %v3159_v47 = vmul.f32 0.35355338, %v3145_v45  ;;  %2931 = vmax.xlane.f32.xlu0 %v2930_v48 }
0x1084   : > { %v4890_v51 = vpop.f32.mrf.mxu0 }
0x1085   : > { %v6286_v52 = vsel %vm844_vm6, %v3159_v47, -1e+30 }
0x1086   : > { %v3150_v54 = vpop.f32.mrf.mxu0  ;;  %v3165_v55 = vsel %vm1116_vm7, %v6286_v52, -inf }
0x1087   : > { %v3160_v57 = vmul.f32 0.35355338, %v3150_v54  ;;  %3166 = vmax.xlane.f32.xlu1 %v3165_v55 }
0x1088   : > { %v4893_v59 = vpop.f32.mrf.mxu0 }
0x1089   : > { %v6292_v58 = vsel %vm844_vm6, %v3160_v57, -1e+30 }
0x108a   : > { %v3155_v60 = vpop.f32.mrf.mxu0  ;;  %v3168_v61 = vsel %vm1116_vm7, %v6292_v58, -inf }
0x108b   : > { %v3161_v62 = vmul.f32 0.35355338, %v3155_v60  ;;  %3169 = vmax.xlane.f32.xlu0 %v3168_v61 }
0x108c   : > { %v4896_v10 = vpop.f32.mrf.mxu0 }
0x108d   : > { %v6298_v32 = vsel %vm844_vm6, %v3161_v62, -1e+30 }
0x108e   : > { %v3386_v0 = vpop.f32.mrf.mxu0  ;;  %v3171_v1 = vsel %vm1116_vm7, %v6298_v32, -inf }
0x108f   : > { %v3400_v3 = vmul.f32 0.35355338, %v3386_v0  ;;  %3172 = vmax.xlane.f32.xlu1 %v3171_v1 }
0x1090   : > { %v4920_v4 = vpop.f32.mrf.mxu0 }
0x1091   : > { %v6304_v5 = vsel %vm844_vm6, %v3400_v3, -1e+30 }
0x1092   : > { %v3391_v43 = vpop.f32.mrf.mxu0  ;;  %v3406_v6 = vsel %vm1116_vm7, %v6304_v5, -inf }
0x1093   : > { %3407 = vmax.xlane.f32.xlu0 %v3406_v6  ;;  %v3401_v9 = vmul.f32 0.35355338, %v3391_v43 }
0x1094   : > { %v4923_v8 = vpop.f32.mrf.mxu0 }
0x1095   : > { %v6316_v12 = vsel %vm844_vm6, %v3401_v9, -1e+30 }
0x1096   : > { %v3396_v13 = vpop.f32.mrf.mxu0  ;;  %v3409_v19 = vsel %vm1116_vm7, %v6316_v12, -inf }
0x1097   : > { %v3402_v17 = vmul.f32 0.35355338, %v3396_v13 }
0x1098   : > { %v4926_v15 = vpop.f32.mrf.mxu0 }
0x1099   : > { %v6320_v18 = vsel %vm844_vm6, %v3402_v17, -1e+30 }
0x109a   : > { %v3412_v50 = vsel %vm1116_vm7, %v6320_v18, -inf }
0x10a0   : > { %2957 = vrot.lane.b32.xlu1 %v6130_v24, %s6793_s1 }
0x10a4   : > { %3202 = vrot.lane.b32.xlu1 %v6132_v46, %s6794_s26 }
0x10a9   : > { %2959 = vrot.lane.b32.xlu0 %v6126_v44, %s6793_s1 }
0x10c8   : > { %3410 = vmax.xlane.f32.xlu1 %v3409_v19  ;;  %3413 = vmax.xlane.f32.xlu0 %v3412_v50 }
0x10f8   : > { %v2685_v16 = vpop.xlane.xlu1 %2684 }
0x10f9   : > { %v2692_v21 = vsub.f32 %v6250_v20, %v2685_v16 }
0x10fb   : > { %v2695_v23 = vmul.f32 1.442695, %v2692_v21 }
0x10fc   : > { %v2688_v25 = vpop.xlane.xlu0 %2687 }
0x10fd   : > { %5145 = vpow2.f32 %v2695_v23  ;;  %v2693_v53 = vsub.f32 %v6256_v22, %v2688_v25 }
0x10ff   : > { %v2697_v56 = vmul.f32 1.442695, %v2693_v53 }
0x1100   : > { %v2691_v20 = vpop.xlane.xlu0 %2690 }
0x1101   : > { %5147 = vpow2.f32 %v2697_v56  ;;  %v2694_v22 = vsub.f32 %v6262_v27, %v2691_v20 }
0x1103   : > { %v2699_v7 = vmul.f32 1.442695, %v2694_v22 }
0x1104   : > { %v2926_v31 = vpop.xlane.xlu0 %2925 }
0x1105   : > { %v2933_v34 = vsub.f32 %v6268_v14, %v2926_v31  ;;  %5149 = vpow2.f32 %v2699_v7 }
0x1107   : > { %v2936_v38 = vmul.f32 1.442695, %v2933_v34 }
0x1108   : > { %v2929_v33 = vpop.xlane.xlu1 %2928 }
0x1109   : > { %v2934_v35 = vsub.f32 %v6274_v36, %v2929_v33  ;;  %5151 = vpow2.f32 %v2936_v38 }
0x110a   : > { %v6330_v26 = vpop.eup %5145 }
0x110b   : > { %v2701_v28 = vsel %vm1116_vm7, %v6330_v26, 0.0  ;;  %v2938_v39 = vmul.f32 1.442695, %v2934_v35 }
0x110c   : > { %2702 = vadd.xlane.f32.xlu1 %v2701_v28  ;;  %v2932_v37 = vpop.xlane.xlu0 %2931 }
0x110d   : > { %v2935_v40 = vsub.f32 %v6280_v41, %v2932_v37  ;;  %5153 = vpow2.f32 %v2938_v39 }
0x110e   : > { %v6334_v29 = vpop.eup %5147 }
0x110f   : > { %v2704_v30 = vsel %vm1116_vm7, %v6334_v29, 0.0  ;;  %v2940_v48 = vmul.f32 1.442695, %v2935_v40 }
0x1110   : > { %2705 = vadd.xlane.f32.xlu0 %v2704_v30  ;;  %v3167_v45 = vpop.xlane.xlu1 %3166 }
0x1111   : > { %v3174_v47 = vsub.f32 %v6286_v52, %v3167_v45  ;;  %5155 = vpow2.f32 %v2940_v48 }
0x1112   : > { %v6349_v59 = vpop.eup %5149 }
0x1113   : > { %v3177_v54 = vmul.f32 1.442695, %v3174_v47  ;;  %v2707_v52 = vsel %vm1116_vm7, %v6349_v59, 0.0 }
0x1114   : > { %v3170_v27 = vpop.xlane.xlu0 %3169 }
0x1115   : > { %5157 = vpow2.f32 %v3177_v54  ;;  %v3175_v50 = vsub.f32 %v6292_v58, %v3170_v27 }
0x1116   : > { %v6351_v41 = vpop.eup %5151 }
0x1117   : > { %v2942_v10 = vsel %vm1116_vm7, %v6351_v41, 0.0  ;;  %v3179_v23 = vmul.f32 1.442695, %v3175_v50 }
0x1118   : > { %v3173_v51 = vpop.xlane.xlu1 %3172 }
0x1119   : > { %v3176_v14 = vsub.f32 %v6298_v32, %v3173_v51 }
0x111a   : > { %v6355_v61 = vpop.eup %5153 }
0x111b   : > { %v3181_v36 = vmul.f32 1.442695, %v3176_v14  ;;  %v2945_v62 = vsel %vm1116_vm7, %v6355_v61, 0.0 }
0x111c   : > { %v3408_v55 = vpop.xlane.xlu0 %3407  ;;  %v2958_v17 = vpop.permute.xlu1 %2957 }
0x111d   : > { %3198 = vrot.lane.b32.xlu1 %v6130_v24, %s6794_s26  ;;  %v3415_v57 = vsub.f32 %v6304_v5, %v3408_v55  ;;  %5159 = vpow2.f32 %v3181_v36 }
0x111e   : > { %v6361_v32 = vpop.eup %5155 }
0x111f   : > { %v3418_v60 = vmul.f32 1.442695, %v3415_v57  ;;  %v2948_v0 = vsel %vm1116_vm7, %v6361_v32, 0.0 }
0x1120   : > { %v2960_v5 = vpop.permute.xlu0 %2959  ;;  %v3203_v19 = vpop.permute.xlu1 %3202 }
0x1121   : > { %5161 = vpow2.f32 %v3418_v60 }
0x1122   : > { %v6365_v1 = vpop.eup %5157 }
0x1123   : > { %v3183_v3 = vsel %vm1116_vm7, %v6365_v1, 0.0 }
0x1126   : > { %3200 = vrot.lane.b32.xlu0 %v6126_v44, %s6794_s26 }
0x112a   : > { %v6369_v4 = vpop.eup %5159 }
0x112b   : > { %v3189_v43 = vsel %vm1116_vm7, %v6369_v4, 0.0 }
0x112e   : > { %v6373_v6 = vpop.eup %5161 }
0x112f   : > { %v3424_v9 = vsel %vm1116_vm7, %v6373_v6, 0.0 }
0x1141   : > { %2708 = vadd.xlane.f32.xlu1 %v2707_v52 }
0x1145   : > { %2946 = vadd.xlane.f32.xlu1 %v2945_v62  ;;  %2943 = vadd.xlane.f32.xlu0 %v2942_v10 }
0x1149   : > { %2949 = vadd.xlane.f32.xlu0 %v2948_v0 }
0x114d   : > { %3184 = vadd.xlane.f32.xlu0 %v3183_v3 }
0x1151   : > { %3190 = vadd.xlane.f32.xlu0 %v3189_v43  ;;  %v3414_v8 = vpop.xlane.xlu0 %3413  ;;  %v3411_v16 = vpop.xlane.xlu1 %3410 }
0x1152   : > { %v3417_v13 = vsub.f32 %v6320_v18, %v3414_v8  ;;  %v3416_v25 = vsub.f32 %v6316_v12, %v3411_v16 }
0x1154   : > { %v3422_v15 = vmul.f32 1.442695, %v3417_v13  ;;  %v3420_v53 = vmul.f32 1.442695, %v3416_v25 }
0x1155   : > { %3425 = vadd.xlane.f32.xlu0 %v3424_v9 }
0x1156   : > { %3443 = vrot.lane.b32.xlu1 %v6132_v46, %s6795_s6  ;;  %5163 = vpow2.f32 %v3422_v15 }
0x1157   : > { %5165 = vpow2.f32 %v3179_v23 }
0x1158   : > { %5167 = vpow2.f32 %v3420_v53  ;;  %v4396_v53 = vld [vmem:[%s6782_s8 + $0x38] sm:$0xff] }
0x1159   : > { %4943 = vmatpush3.msra.mxu0 %v4396_v53  ;;  %v4409_v53 = vld [vmem:[%s6707_s12 + $0x38] sm:$0xff] }
0x115a   : > { %4944 = vmatprep.subr.mxu0 %v5273_v2 }
0x1163   : > { %v6381_v21 = vpop.eup %5163 }
0x1164   : > { %v3430_v18 = vsel %vm1116_vm7, %v6381_v21, 0.0  ;;  %v6386_v56 = vpop.eup %5165 }
0x1165   : > { %3431 = vadd.xlane.f32.xlu0 %v3430_v18  ;;  %v3186_v46 = vsel %vm1116_vm7, %v6386_v56, 0.0  ;;  %v6390_v28 = vpop.eup %5167 }
0x1166   : > { %v3427_v58 = vsel %vm1116_vm7, %v6390_v28, 0.0 }
0x117a   : > { %3187 = vadd.xlane.f32.xlu1 %v3186_v46  ;;  %v4394_v46 = vld [vmem:[%s6782_s8 + $0x28] sm:$0xff] }
0x117b   : > { %3439 = vrot.lane.b32.xlu0 %v6130_v24, %s6795_s6 }
0x117e   : > { %3428 = vadd.xlane.f32.xlu1 %v3427_v58 }
0x118f   : > { %3441 = vrot.lane.b32.xlu1 %v6126_v44, %s6795_s6  ;;  %s6651_s6 = scalar_lea.hbm %s6717_s22, %s4441_s5 }
0x1195   : > { %v2703_v12 = vpop.xlane.xlu1 %2702 }
0x1196   : > { %5169 = vrcp.f32 %v2703_v12 }
0x1199   : > { %v2706_v30 = vpop.xlane.xlu0 %2705  ;;  %v3199_v44 = vpop.permute.xlu1 %3198 }
0x119a   : > { %5171 = vrcp.f32 %v2706_v30 }
0x11a3   : > { %v5170_v20 = vpop.eup %5169 }
0x11a4   : > { %v2713_v22 = vmul.f32 %v5170_v20, %v6330_v26 }
0x11a6   : > { %4844 = vmatmul.mubr.msk.f32.vlgmr.msra.gmra.mxu1 %vm1116_vm7, %v2713_v22 }
0x11a7   : > { %v5172_v31 = vpop.eup %5171  ;;  %4868 = vmatpush3.msra.mxu1 %v6326_v11  ;;  %4846 = vmatprep.mubr.msk.f32.mxu1 %vm5274_vm4, %v5273_v2  ;;  %v3201_v11 = vpop.permute.xlu0 %3200 }
0x11a8   : > { %4869 = vmatprep.subr.mxu1 %v5273_v2  ;;  %v2714_v24 = vmul.f32 %v5172_v31, %v6334_v29 }
0x11a9   : > { %4870 = vmatpush3.msra.mxu1 %v2960_v5 }
0x11aa   : > { %4871 = vmatprep.subr.mxu1 %v5273_v2  ;;  %4847 = vmatmul.mubr.msk.f32.gmra.mxu1 %vm1116_vm7, %v2714_v24 }
0x11ab   : > { %4872 = vmatpush3.msra.mxu1 %v2958_v17  ;;  %4849 = vmatprep.mubr.msk.f32.mxu1 %vm5274_vm4, %v5273_v2 }
0x11ac   : > { %4897 = vmatprep.subr.mxu1 %v5273_v2 }
0x11ca   : > { %v2709_v26 = vpop.xlane.xlu1 %2708 }
0x11cb   : > { %5173 = vrcp.f32 %v2709_v26 }
0x11ce   : > { %v2944_v33 = vpop.xlane.xlu0 %2943  ;;  %v2947_v34 = vpop.xlane.xlu1 %2946 }
0x11cf   : > { %5175 = vrcp.f32 %v2944_v33 }
0x11d0   : > { %5177 = vrcp.f32 %v2947_v34 }
0x11d2   : > { %v2950_v29 = vpop.xlane.xlu0 %2949  ;;  %v3444_v54 = vpop.permute.xlu1 %3443 }
0x11d3   : > { %5179 = vrcp.f32 %v2950_v29 }
0x11d6   : > { %v3185_v7 = vpop.xlane.xlu0 %3184 }
0x11d7   : > { %5181 = vrcp.f32 %v3185_v7 }
0x11d8   : > { %v5174_v35 = vpop.eup %5173 }
0x11d9   : > { %v2715_v37 = vmul.f32 %v5174_v35, %v6349_v59 }
0x11da   : > { %v3191_v14 = vpop.xlane.xlu0 %3190 }
0x11db   : > { %4850 = vmatmul.mubr.msk.f32.gmra.mxu1 %vm1116_vm7, %v2715_v37 }
0x11dc   : > { %4873 = vmatprep.mubr.msk.f32.mxu1 %vm5274_vm4, %v5273_v2  ;;  %v5176_v38 = vpop.eup %5175 }
0x11dd   : > { %v2954_v39 = vmul.f32 %v5176_v38, %v6351_v41  ;;  %v5178_v40 = vpop.eup %5177 }
0x11de   : > { %v2955_v45 = vmul.f32 %v5178_v40, %v6355_v61  ;;  %v3426_v55 = vpop.xlane.xlu0 %3425 }
0x11df   : > { %4874 = vmatmul.mubr.msk.f32.vlgmr.msra.gmra.mxu1 %vm1116_vm7, %v2954_v39 }
0x11e0   : > { %4898 = vmatpush3.msra.mxu1 %v3203_v19  ;;  %4876 = vmatprep.mubr.msk.f32.mxu1 %vm5274_vm4, %v5273_v2  ;;  %v5180_v48 = vpop.eup %5179 }
0x11e1   : > { %4899 = vmatprep.subr.mxu1 %v5273_v2  ;;  %v2956_v47 = vmul.f32 %v5180_v48, %v6361_v32 }
0x11e2   : > { %4900 = vmatpush3.msra.mxu1 %v3201_v11 }
0x11e3   : > { %4901 = vmatprep.subr.mxu1 %v5273_v2  ;;  %4877 = vmatmul.mubr.msk.f32.gmra.mxu1 %vm1116_vm7, %v2955_v45 }
0x11e4   : > { %4902 = vmatpush3.msra.mxu1 %v3199_v44  ;;  %4879 = vmatprep.mubr.msk.f32.mxu1 %vm5274_vm4, %v5273_v2  ;;  %v5182_v27 = vpop.eup %5181 }
0x11e5   : > { %4927 = vmatprep.subr.mxu1 %v5273_v2  ;;  %v3195_v51 = vmul.f32 %v5182_v27, %v6365_v1 }
0x11e7   : > { %4880 = vmatmul.mubr.msk.f32.gmra.mxu1 %vm1116_vm7, %v2956_v47 }
0x11e8   : > { %4903 = vmatprep.mubr.msk.f32.mxu1 %vm5274_vm4, %v5273_v2 }
0x11eb   : > { %4904 = vmatmul.mubr.msk.f32.vlgmr.msra.gmra.mxu1 %vm1116_vm7, %v3195_v51 }
0x11ec   : > { %4928 = vmatpush3.msra.mxu1 %v3444_v54  ;;  %4906 = vmatprep.mubr.msk.f32.mxu1 %vm5274_vm4, %v5273_v2 }
0x11ed   : > { %4929 = vmatprep.subr.mxu1 %v5273_v2 }
0x11ee   : > { %v3432_v57 = vpop.xlane.xlu0 %3431 }
0x11f2   : > { %v3440_v60 = vpop.permute.xlu0 %3439 }
0x1203   : > { %v3188_v36 = vpop.xlane.xlu1 %3187 }
0x1204   : > { %5183 = vrcp.f32 %v3188_v36 }
0x1205   : > { %5185 = vrcp.f32 %v3191_v14 }
0x1206   : > { %5187 = vrcp.f32 %v3426_v55 }
0x1207   : > { %v3429_v59 = vpop.xlane.xlu1 %3428 }
0x1208   : > { %5189 = vrcp.f32 %v3429_v59 }
0x1209   : > { %5191 = vrcp.f32 %v3432_v57  ;;  %v4398_v57 = vld [vmem:[%s6783_s9 + $0x1] ss:$0 sm:$0xff] }
0x120b   : > { %v3442_v41 = vpop.permute.xlu1 %3441 }
0x120c   : > { %4930 = vmatpush3.msra.mxu1 %v3442_v41 }
0x120d   : > { %4931 = vmatprep.subr.mxu1 %v5273_v2 }
0x120e   : > { %4932 = vmatpush3.msra.mxu1 %v3440_v60 }
0x120f   : > { %4959 = vmatprep.subr.mxu1 %v5273_v2 }
0x1211   : > { %v5184_v52 = vpop.eup %5183 }
0x1212   : > { %v3196_v61 = vmul.f32 %v5184_v52, %v6386_v56  ;;  %v5186_v62 = vpop.eup %5185  ;;  %v4395_v56 = vld [vmem:[%s6782_s8 + $0x30] sm:$0xff] }
0x1213   : > { %v3197_v10 = vmul.f32 %v5186_v62, %v6369_v4  ;;  %v5188_v32 = vpop.eup %5187  ;;  %4945 = vmatpush3.msra.mxu0 %v4395_v56  ;;  %v4408_v56 = vld [vmem:[%s6707_s12 + $0x30] sm:$0xff] }
0x1214   : > { %4907 = vmatmul.mubr.msk.f32.gmra.mxu1 %vm1116_vm7, %v3196_v61  ;;  %v3436_v0 = vmul.f32 %v5188_v32, %v6373_v6  ;;  %4946 = vmatprep.subr.mxu0 %v5273_v2 }
0x1215   : > { %4909 = vmatprep.mubr.msk.f32.mxu1 %vm5274_vm4, %v5273_v2  ;;  %v5190_v1 = vpop.eup %5189  ;;  %4947 = vmatpush3.msra.mxu0 %v4394_v46  ;;  %v4407_v46 = vld [vmem:[%s6707_s12 + $0x28] sm:$0xff] }
0x1216   : > { %v3437_v3 = vmul.f32 %v5190_v1, %v6390_v28  ;;  %v5192_v5 = vpop.eup %5191  ;;  %4948 = vmatprep.subr.mxu0 %v5273_v2  ;;  %v4393_v28 = vld [vmem:[%s6782_s8 + $0x20] sm:$0xff]  ;;  %s5290_s8 = smov [#allocation3]  }
0x1217   : > { %v3438_v4 = vmul.f32 %v5192_v5, %v6381_v21  ;;  %4949 = vmatpush3.msra.mxu0 %v4393_v28  ;;  %v4406_v28 = vld [vmem:[%s6707_s12 + $0x20] sm:$0xff]  ;;  %s5215_s9 = sshll.u32 %s5290_s8, 4  ;;  %s5216_s9 = int_to_ptr.vmem [resolvable:$false] %s5215_s9 }
0x1218   : > { %4910 = vmatmul.mubr.msk.f32.gmra.mxu1 %vm1116_vm7, %v3197_v10  ;;  %4976 = vmatprep.subr.mxu0 %v5273_v2 }
0x1219   : > { %4933 = vmatprep.mubr.msk.f32.mxu1 %vm5274_vm4, %v5273_v2 }
0x121c   : > { %4934 = vmatmul.mubr.msk.f32.vlgmr.msra.gmra.mxu1 %vm1116_vm7, %v3436_v0 }
0x121d   : > { %4936 = vmatprep.mubr.msk.f32.mxu1 %vm5274_vm4, %v5273_v2  ;;  %4960 = vmatpush3.msra.mxu1 %v4409_v53 }
0x121e   : > { %4961 = vmatprep.subr.mxu1 %v5273_v2 }
0x121f   : > { %4962 = vmatpush3.msra.mxu1 %v4408_v56 }
0x1220   : > { %4937 = vmatmul.mubr.msk.f32.gmra.mxu1 %vm1116_vm7, %v3437_v3  ;;  %4963 = vmatprep.subr.mxu1 %v5273_v2 }
0x1221   : > { %4939 = vmatprep.mubr.msk.f32.mxu1 %vm5274_vm4, %v5273_v2  ;;  %4964 = vmatpush3.msra.mxu1 %v4407_v46 }
0x1222   : > { %4965 = vmatprep.subr.mxu1 %v5273_v2 }
0x1223   : > { %4966 = vmatpush3.msra.mxu1 %v4406_v28 }
0x1224   : > { %4940 = vmatmul.mubr.msk.f32.gmra.mxu1 %vm1116_vm7, %v3438_v4 }
0x1225   : > { %4967 = vmatprep.mubr.msk.f32.mxu1 %vm5274_vm4, %v5273_v2 }
0x1266   : > { %v2800_v43 = vpop.f32.mrf.mxu1 }
0x1268   : > { %v4845_v6 = vpop.f32.mrf.mxu1 }
0x126a   : > { %v2805_v8 = vpop.f32.mrf.mxu1 }
0x126c   : > { %v4848_v13 = vpop.f32.mrf.mxu1 }
0x129b   : > { %v2810_v15 = vpop.f32.mrf.mxu1 }
0x129d   : > { %v4851_v9 = vpop.f32.mrf.mxu1 }
0x129f   : > { %v3041_v17 = vpop.f32.mrf.mxu1 }
0x12a0   : > { %3540 = vrot.lane.b32.xlu1 %v3041_v17, %s6796_s4 }
0x12a1   : > { %v4875_v19 = vpop.f32.mrf.mxu1 }
0x12a3   : > { %v3046_v50 = vpop.f32.mrf.mxu1 }
0x12a4   : > { %3542 = vrot.lane.b32.xlu0 %v3046_v50, %s6796_s4 }
0x12a5   : > { %v4878_v16 = vpop.f32.mrf.mxu1 }
0x12a7   : > { %v3051_v21 = vpop.f32.mrf.mxu1 }
0x12a9   : > { %v4881_v23 = vpop.f32.mrf.mxu1 }
0x12ab   : > { %v3282_v25 = vpop.f32.mrf.mxu1 }
0x12ac   : > { %3552 = vrot.lane.b32.xlu0 %v3282_v25, %s6797_s23 }
0x12ad   : > { %v4905_v18 = vpop.f32.mrf.mxu1 }
0x12d4   : > { %v3287_v58 = vpop.f32.mrf.mxu1 }
0x12d5   : > { %3554 = vrot.lane.b32.xlu1 %v3287_v58, %s6797_s23 }
0x12d6   : > { %v4908_v12 = vpop.f32.mrf.mxu1 }
0x12d8   : > { %v3292_v30 = vpop.f32.mrf.mxu1 }
0x12da   : > { %v4911_v20 = vpop.f32.mrf.mxu1 }
0x12dc   : > { %v3523_v22 = vpop.f32.mrf.mxu1 }
0x12dd   : > { %3564 = vrot.lane.b32.xlu1 %v3523_v22, %s6798_s2 }
0x12de   : > { %v4935_v31 = vpop.f32.mrf.mxu1 }
0x12e0   : > { %v3528_v24 = vpop.f32.mrf.mxu1 }
0x12e1   : > { %3544 = vrot.lane.b32.xlu1 %v3051_v21, %s6796_s4  ;;  %3566 = vrot.lane.b32.xlu0 %v3528_v24, %s6798_s2 }
0x12e2   : > { %v4938_v44 = vpop.f32.mrf.mxu1 }
0x12e4   : > { %v3533_v11 = vpop.f32.mrf.mxu1 }
0x12e5   : > { %3556 = vrot.lane.b32.xlu0 %v3292_v30, %s6797_s23  ;;  %3568 = vrot.lane.b32.xlu1 %v3533_v11, %s6798_s2  ;;  %s4280_s2 = sshll.u32 %s676_s3, 5 }
0x12e6   : > { %v4941_v26 = vpop.f32.mrf.mxu1  ;;  %s678_s7 = scalar_lea.vmem [#allocation3], %s4280_s2  ;;  %s6654_s2 = scalar_lea.sflag [#allocation4], %s676_s3 }
0x12e7   : > { %s4214_s23 = sshll.u32 %s678_s7, 4  ;;  %s6645_s23 = int_to_ptr.vmem [resolvable:$true] %s4214_s23 }
0x12e8   : > { %s5211_s19 = scalar_lea.vmem %s6645_s23, 512  ;;  %p5218_p0 = scmp.lt.s32.totalorder %s6645_s23, %s5216_s9 }
0x12e9   : > { %p5212_p11 = scmp.ne.s32.totalorder %s6645_s23, %s5211_s19 }
0x12eb   : > { %p5213_p12 = pnand %p5212_p11, %p5448_p5 }
0x12ed   : > { %p5214_p13 = pneg %p5213_p12 }
0x1312   : > { %v3541_v33 = vpop.permute.xlu1 %3540 }
0x1313   : > { %v3573_v35 = vsel %vm1015_vm5, %v2800_v43, %v3541_v33  ;;  %v4404_v33 = vld [vmem:[%s6784_s10 + $0x1] ss:$0 sm:$0xff]  ;;  %s5217_s10 = scalar_lea.vmem %s5216_s9, 1024 }
0x1314   : > { %p5219_p1 = scmp.lt.s32.totalorder %s5217_s10, %s5211_s19 }
0x1316   : > { %v3543_v34 = vpop.permute.xlu0 %3542  ;;  %p5220_p2 = por %p5219_p1, %p5218_p0 }
0x1317   : > { %v3574_v40 = vsel %vm1015_vm5, %v2805_v8, %v3543_v34 }
0x1318   : > { %p5221_p3 = pnand %p5220_p2, %p5214_p13 }
0x131e   : > { %v3553_v7 = vpop.permute.xlu0 %3552 }
0x131f   : > { %v3576_v37 = vsel %vm2010_vm8, %v3573_v35, %v3553_v7 }
0x1347   : > { %v3555_v29 = vpop.permute.xlu1 %3554 }
0x1348   : > { %v3577_v45 = vsel %vm2010_vm8, %v3574_v40, %v3555_v29  ;;  %v4405_v29 = vld [vmem:[%s6706_s11 + $0x1] ss:$0 sm:$0xff] }
0x134f   : > { %v3565_v38 = vpop.permute.xlu1 %3564 }
0x1350   : > { %v3579_v39 = vsel %vm1116_vm7, %v3576_v37, %v3565_v38 }
0x1351   : > { %4951 = vmatmul.mubr.msk.f32.vlgmr.msra.gmra.mxu0 %vm847_vm3, %v3579_v39 }
0x1352   : > { %4953 = vmatprep.mubr.msk.f32.mxu0 %vm5274_vm4, %v5273_v2 }
0x1353   : > { %v3545_v48 = vpop.permute.xlu1 %3544  ;;  %v3567_v47 = vpop.permute.xlu0 %3566 }
0x1354   : > { %v3580_v27 = vsel %vm1116_vm7, %v3577_v45, %v3567_v47  ;;  %v3575_v51 = vsel %vm1015_vm5, %v2810_v15, %v3545_v48 }
0x1355   : > { %4954 = vmatmul.mubr.msk.f32.gmra.mxu0 %vm847_vm3, %v3580_v27 }
0x1356   : > { %4956 = vmatprep.mubr.msk.f32.mxu0 %vm5274_vm4, %v5273_v2 }
0x1357   : > { %v3569_v54 = vpop.permute.xlu1 %3568  ;;  %v3557_v14 = vpop.permute.xlu0 %3556 }
0x1358   : > { %v3578_v55 = vsel %vm2010_vm8, %v3575_v51, %v3557_v14  ;;  %v4422_v51 = vld [vmem:[%s6709_s14 + $0x78] sm:$0xff]  ;;  %v4420_v14 = vld [vmem:[%s6709_s14 + $0x68] sm:$0xff] }
0x1359   : > { %v3581_v36 = vsel %vm1116_vm7, %v3578_v55, %v3569_v54  ;;  %4977 = vmatpush3.msra.mxu0 %v4422_v51  ;;  %v4421_v54 = vld [vmem:[%s6709_s14 + $0x70] sm:$0xff]  ;;  %v4419_v55 = vld [vmem:[%s6709_s14 + $0x60] sm:$0xff] }
0x135a   : > { %4957 = vmatmul.mubr.msk.f32.gmra.mxu0 %vm847_vm3, %v3581_v36  ;;  %4978 = vmatprep.subr.mxu0 %v5273_v2  ;;  %v4418_v36 = vld [vmem:[%s6709_s14 + $0x58] sm:$0xff] }
0x135b   : > { %4992 = vmatprep.mubr.msk.f32.mxu0 %vm5274_vm4, %v5273_v2  ;;  %4979 = vmatpush3.msra.mxu0 %v4421_v54 }
0x135c   : > { %4980 = vmatprep.subr.mxu0 %v5273_v2 }
0x135d   : > { %4981 = vmatpush3.msra.mxu0 %v4420_v14 }
0x135e   : > { %4982 = vmatprep.subr.mxu0 %v5273_v2 }
0x135f   : > { %4983 = vmatpush3.msra.mxu0 %v4419_v55 }
0x1360   : > { %4984 = vmatprep.subr.mxu0 %v5273_v2 }
0x1361   : > { %4985 = vmatpush3.msra.mxu0 %v4418_v36 }
0x1362   : > { %4986 = vmatprep.subr.mxu0 %v5273_v2 }
0x1411   : > { %v3670_v59 = vpop.f32.mrf.mxu0 }
0x1412   : > { %v3671_v41 = vadd.f32 %v4398_v57, %v3670_v59  ;;  %v4416_v59 = vld [vmem:[%s6709_s14 + $0x48] sm:$0xff] }
0x1413   : > { %v4952_v60 = vpop.f32.mrf.mxu0 }
0x1414   : > { %v6503_v52 = vadd.f32 %v3671_v41, %v6072_v49  ;;  %v4415_v41 = vld [vmem:[%s6709_s14 + $0x40] sm:$0xff] }
0x1415   : > { %v3675_v61 = vpop.f32.mrf.mxu0  ;;  %v4411_v60 = vld [vmem:[%s6708_s13 + $0x1] ss:$0 sm:$0xff] }
0x1416   : > { %v3676_v62 = vadd.f32 %v4398_v57, %v3675_v61  ;;  %v3691_v10 = vsel %vm847_vm3, %v6503_v52, 0.0 }
0x1417   : > { %3692 = vadd.xlane.f32.xlu0 %v3691_v10  ;;  %v4955_v32 = vpop.f32.mrf.mxu0 }
0x1418   : > { %v6508_v0 = vadd.f32 %v3676_v62, %v6077_v42 }
0x141a   : > { %v3680_v1 = vpop.f32.mrf.mxu0  ;;  %v3694_v3 = vsel %vm847_vm3, %v6508_v0, 0.0 }
0x141b   : > { %v3681_v5 = vadd.f32 %v4398_v57, %v3680_v1  ;;  %3695 = vadd.xlane.f32.xlu1 %v3694_v3  ;;  %v4417_v57 = vld [vmem:[%s6709_s14 + $0x50] sm:$0xff] }
0x141c   : > { %v4958_v4 = vpop.f32.mrf.mxu0  ;;  %4987 = vmatpush3.msra.mxu0 %v4417_v57 }
0x141d   : > { %v6513_v49 = vadd.f32 %v3681_v5, %v6082_v63  ;;  %4988 = vmatprep.subr.mxu0 %v5273_v2 }
0x141e   : > { %4989 = vmatpush3.msra.mxu0 %v4416_v59 }
0x141f   : > { %v3697_v43 = vsel %vm847_vm3, %v6513_v49, 0.0  ;;  %4990 = vmatprep.subr.mxu0 %v5273_v2 }
0x1420   : > { %3698 = vadd.xlane.f32.xlu0 %v3697_v43  ;;  %4991 = vmatpush3.msra.mxu0 %v4415_v41 }
0x14a0   : > { %v3693_v6 = vpop.xlane.xlu0 %3692 }
0x14a1   : > { %v3700_v8 = vmul.f32 0.03125, %v3693_v6 }
0x14a3   : > { %v3703_v13 = vsub.f32 %v6503_v52, %v3700_v8 }
0x14a4   : > { %v3696_v42 = vpop.xlane.xlu1 %3695 }
0x14a5   : > { %v3701_v15 = vmul.f32 0.03125, %v3696_v42  ;;  %v3706_v9 = vmul.f32 %v3703_v13, %v3703_v13 }
0x14a7   : > { %v3704_v17 = vsub.f32 %v6508_v0, %v3701_v15  ;;  %v3709_v19 = vsel %vm847_vm3, %v3706_v9, 0.0 }
0x14a8   : > { %3710 = vadd.xlane.f32.xlu0 %v3709_v19 }
0x14a9   : > { %v3699_v50 = vpop.xlane.xlu0 %3698  ;;  %v3707_v16 = vmul.f32 %v3704_v17, %v3704_v17 }
0x14aa   : > { %v3702_v63 = vmul.f32 0.03125, %v3699_v50 }
0x14ab   : > { %v3712_v21 = vsel %vm847_vm3, %v3707_v16, 0.0 }
0x14ac   : > { %v3705_v23 = vsub.f32 %v6513_v49, %v3702_v63  ;;  %3713 = vadd.xlane.f32.xlu0 %v3712_v21 }
0x14ae   : > { %v3708_v25 = vmul.f32 %v3705_v23, %v3705_v23 }
0x14b0   : > { %v3715_v18 = vsel %vm847_vm3, %v3708_v25, 0.0 }
0x14b1   : > { %3716 = vadd.xlane.f32.xlu1 %v3715_v18 }
0x1531   : > { %v3711_v58 = vpop.xlane.xlu0 %3710 }
0x1532   : > { %v3718_v12 = vmul.f32 0.03125, %v3711_v58 }
0x1534   : > { %v3721_v30 = vadd.f32 1e-12, %v3718_v12 }
0x1535   : > { %v3714_v20 = vpop.xlane.xlu0 %3713 }
0x1536   : > { %5193 = vrsqrt.f32 %v3721_v30  ;;  %v3719_v22 = vmul.f32 0.03125, %v3714_v20 }
0x1538   : > { %v3722_v31 = vadd.f32 1e-12, %v3719_v22 }
0x153a   : > { %5195 = vrsqrt.f32 %v3722_v31  ;;  %v3717_v24 = vpop.xlane.xlu1 %3716 }
0x153b   : > { %v3720_v44 = vmul.f32 0.03125, %v3717_v24 }
0x153d   : > { %v3723_v11 = vadd.f32 1e-12, %v3720_v44 }
0x153f   : > { %5197 = vrsqrt.f32 %v3723_v11 }
0x1543   : > { %v5194_v26 = vpop.eup %5193 }
0x1544   : > { %v3727_v34 = vmul.f32 %v5194_v26, %v3703_v13 }
0x1546   : > { %v3736_v7 = vmul.f32 %v4404_v33, %v3727_v34 }
0x1547   : > { %v5196_v35 = vpop.eup %5195 }
0x1548   : > { %v3745_v37 = vadd.f32 %v4405_v29, %v3736_v7  ;;  %v3728_v38 = vmul.f32 %v5196_v35, %v3704_v17 }
0x154a   : > { %4968 = vmatmul.mubr.msk.f32.vlgmr.msra.gmra.mxu1 %vm847_vm3, %v3745_v37  ;;  %v3737_v39 = vmul.f32 %v4404_v33, %v3728_v38 }
0x154b   : > { %4970 = vmatprep.mubr.msk.f32.mxu1 %vm5274_vm4, %v5273_v2 }
0x154c   : > { %v5198_v40 = vpop.eup %5197  ;;  %v3746_v45 = vadd.f32 %v4405_v29, %v3737_v39 }
0x154d   : > { %v3729_v48 = vmul.f32 %v5198_v40, %v3705_v23 }
0x154e   : > { %4971 = vmatmul.mubr.msk.f32.gmra.mxu1 %vm847_vm3, %v3746_v45 }
0x154f   : > { %4973 = vmatprep.mubr.msk.f32.mxu1 %vm5274_vm4, %v5273_v2  ;;  %v3738_v47 = vmul.f32 %v4404_v33, %v3729_v48  ;;  %v4424_v33 = vld [vmem:[%s6710_s15 + $0x1] ss:$0 sm:$0xff] }
0x1551   : > { %v3747_v27 = vadd.f32 %v4405_v29, %v3738_v47 }
0x1553   : > { %4974 = vmatmul.mubr.msk.f32.gmra.mxu1 %vm847_vm3, %v3747_v27 }
0x160a   : > { %v3836_v61 = vpop.f32.mrf.mxu1 }
0x160b   : > { %v3837_v62 = vadd.f32 %v4411_v60, %v3836_v61 }
0x160c   : > { %v4969_v10 = vpop.f32.mrf.mxu1 }
0x160d   : > { %v3850_v32 = vmul.f32 %v3837_v62, %v3837_v62 }
0x160e   : > { %v3841_v1 = vpop.f32.mrf.mxu1 }
0x160f   : > { %v3853_v3 = vmul.f32 %v3850_v32, %v3837_v62  ;;  %v3842_v5 = vadd.f32 %v4411_v60, %v3841_v1 }
0x1610   : > { %v4972_v4 = vpop.f32.mrf.mxu1 }
0x1611   : > { %v3856_v43 = vmul.f32 0.044715, %v3853_v3  ;;  %v3851_v6 = vmul.f32 %v3842_v5, %v3842_v5 }
0x1613   : > { %v3859_v8 = vadd.f32 %v3856_v43, %v3837_v62  ;;  %v3854_v13 = vmul.f32 %v3851_v6, %v3842_v5  ;;  %v3846_v42 = vpop.f32.mrf.mxu1 }
0x1614   : > { %v3847_v15 = vadd.f32 %v4411_v60, %v3846_v42 }
0x1615   : > { %v3862_v9 = vmul.f32 0.7978846, %v3859_v8  ;;  %v3857_v17 = vmul.f32 0.044715, %v3854_v13  ;;  %v4975_v19 = vpop.f32.mrf.mxu1 }
0x1616   : > { %v3852_v50 = vmul.f32 %v3847_v15, %v3847_v15 }
0x1617   : > { %5199 = vtanh.f32 %v3862_v9  ;;  %v3860_v16 = vadd.f32 %v3857_v17, %v3842_v5  ;;  %v4429_v17 = vld [vmem:[%s6712_s17] ss:$0 sm:$0xff] }
0x1618   : > { %v3855_v63 = vmul.f32 %v3852_v50, %v3847_v15  ;;  %v4430_v50 = vld [vmem:[%s6713_s18] ss:$0 sm:$0xff] }
0x1619   : > { %v3863_v21 = vmul.f32 0.7978846, %v3860_v16 }
0x161a   : > { %v3858_v23 = vmul.f32 0.044715, %v3855_v63 }
0x161b   : > { %5201 = vtanh.f32 %v3863_v21 }
0x161c   : > { %v3861_v25 = vadd.f32 %v3858_v23, %v3847_v15 }
0x161e   : > { %v3864_v18 = vmul.f32 0.7978846, %v3861_v25 }
0x1620   : > { %5203 = vtanh.f32 %v3864_v18 }
0x1624   : > { %v5200_v53 = vpop.eup %5199 }
0x1625   : > { %v3868_v56 = vadd.f32 1.0, %v5200_v53 }
0x1627   : > { %v3871_v46 = vmul.f32 0.5, %v3868_v56 }
0x1628   : > { %v5202_v28 = vpop.eup %5201 }
0x1629   : > { %v3874_v58 = vmul.f32 %v3871_v46, %v3837_v62  ;;  %v3869_v12 = vadd.f32 1.0, %v5202_v28 }
0x162b   : > { %4993 = vmatmul.mubr.msk.f32.vlgmr.msra.gmra.mxu0 %vm714_vm0, %v3874_v58  ;;  %v3872_v30 = vmul.f32 0.5, %v3869_v12 }
0x162c   : > { %4995 = vmatprep.mubr.msk.f32.mxu0 %vm5274_vm4, %v5273_v2 }
0x162d   : > { %v5204_v20 = vpop.eup %5203  ;;  %v3875_v22 = vmul.f32 %v3872_v30, %v3842_v5 }
0x162e   : > { %v3870_v31 = vadd.f32 1.0, %v5204_v20 }
0x162f   : > { %4996 = vmatmul.mubr.msk.f32.gmra.mxu0 %vm714_vm0, %v3875_v22 }
0x1630   : > { %4998 = vmatprep.mubr.msk.f32.mxu0 %vm5274_vm4, %v5273_v2  ;;  %v3873_v24 = vmul.f32 0.5, %v3870_v31  ;;  %v5289_v31 = vmov 0  }
0x1631   : > { %5072 = vset.pattern.permute.xlu0 %v5289_v31  ;;  %5071 = vset.pattern.permute.xlu1 %v5289_v31 }
0x1632   : > { %v3876_v44 = vmul.f32 %v3873_v24, %v3847_v15  ;;  %v4428_v15 = vld [vmem:[%s6711_s16] ss:$0 sm:$0xff] }
0x1633   : > { %v4431_v24 = vld [vmem:[#allocation2] ss:$0 sm:$0xff] }
0x1634   : > { %4999 = vmatmul.mubr.msk.f32.gmra.mxu0 %vm714_vm0, %v3876_v44 }
0x16eb   : > { %v3969_v11 = vpop.f32.mrf.mxu0 }
0x16ec   : > { %v3970_v39 = vadd.f32 %v4424_v33, %v3969_v11 }
0x16ed   : > { %v4994_v26 = vpop.f32.mrf.mxu0 }
0x16ee   : > { %v3983_v48 = vadd.f32 %v3970_v39, %v6503_v52 }
0x16ef   : > { %v3974_v34 = vpop.f32.mrf.mxu0 }
0x16f0   : > { %v3975_v29 = vadd.f32 %v4424_v33, %v3974_v34  ;;  %v3988_v27 = vsel %vm847_vm3, %v3983_v48, 0.0 }
0x16f1   : > { %v4997_v7 = vpop.f32.mrf.mxu0 }
0x16f2   : > { %v3984_v35 = vadd.f32 %v3975_v29, %v6508_v0  ;;  %v4074_v7 = vld [vmem:[%s6715_s20] sm:$0xff] }
0x16f3   : > { %5007 = vmatprep.mubr.msk.f32.mxu1 %vm1116_vm7, %v4074_v7 }
0x16f4   : > { %v3979_v37 = vpop.f32.mrf.mxu0  ;;  %v3991_v38 = vsel %vm847_vm3, %v3984_v35, 0.0 }
0x16f5   : > { %v3980_v2 = vadd.f32 %v4424_v33, %v3979_v37  ;;  %3992 = vadd.xlane.f32.xlu1 %v3991_v38  ;;  %v4079_v37 = vld [vmem:[%s6716_s21 + $0x8] sm:$0xff] }
0x16f6   : > { %v5000_v40 = vpop.f32.mrf.mxu0 }
0x16f7   : > { %v3985_v45 = vadd.f32 %v3980_v2, %v6513_v49  ;;  %v4078_v40 = vld [vmem:[%s6716_s21] sm:$0xff] }
0x16f9   : > { %v3994_v47 = vsel %vm847_vm3, %v3985_v45, 0.0 }
0x16fa   : > { %3995 = vadd.xlane.f32.xlu0 %v3994_v47 }
0x16fe   : > { %3989 = vadd.xlane.f32.xlu0 %v3988_v27  ;;  %v4075_v27 = vld [vmem:[%s6715_s20 + $0x8] sm:$0xff] }
0x177e   : > { %v3993_v51 = vpop.xlane.xlu1 %3992 }
0x177f   : > { %v3998_v54 = vmul.f32 0.03125, %v3993_v51  ;;  %v4076_v51 = vld [vmem:[%s6715_s20 + $0x10] sm:$0xff] }
0x1781   : > { %v4001_v0 = vsub.f32 %v3984_v35, %v3998_v54  ;;  %v4080_v35 = vld [vmem:[%s6716_s21 + $0x10] sm:$0xff]  ;;  %v4077_v54 = vld [vmem:[%s6715_s20 + $0x18] sm:$0xff] }
0x1783   : > { %v3996_v14 = vpop.xlane.xlu0 %3995  ;;  %v4004_v55 = vmul.f32 %v4001_v0, %v4001_v0 }
0x1784   : > { %v3999_v36 = vmul.f32 0.03125, %v3996_v14 }
0x1785   : > { %v4009_v57 = vsel %vm847_vm3, %v4004_v55, 0.0 }
0x1786   : > { %v4002_v59 = vsub.f32 %v3985_v45, %v3999_v36  ;;  %4010 = vadd.xlane.f32.xlu0 %v4009_v57 }
0x1787   : > { %v3990_v41 = vpop.xlane.xlu0 %3989 }
0x1788   : > { %v3997_v49 = vmul.f32 0.03125, %v3990_v41  ;;  %v4005_v60 = vmul.f32 %v4002_v59, %v4002_v59 }
0x178a   : > { %v4000_v52 = vsub.f32 %v3983_v48, %v3997_v49  ;;  %v4012_v61 = vsel %vm847_vm3, %v4005_v60, 0.0 }
0x178b   : > { %4013 = vadd.xlane.f32.xlu1 %v4012_v61 }
0x178c   : > { %v4003_v62 = vmul.f32 %v4000_v52, %v4000_v52 }
0x178e   : > { %v4006_v10 = vsel %vm847_vm3, %v4003_v62, 0.0 }
0x178f   : > { %4007 = vadd.xlane.f32.xlu1 %v4006_v10 }
0x180f   : > { %v4011_v32 = vpop.xlane.xlu0 %4010 }
0x1810   : > { %v4016_v1 = vmul.f32 0.03125, %v4011_v32 }
0x1812   : > { %v4019_v3 = vadd.f32 1e-12, %v4016_v1 }
0x1814   : > { %5205 = vrsqrt.f32 %v4019_v3  ;;  %v4014_v5 = vpop.xlane.xlu1 %4013 }
0x1815   : > { %v4017_v4 = vmul.f32 0.03125, %v4014_v5 }
0x1817   : > { %v4020_v43 = vadd.f32 1e-12, %v4017_v4 }
0x1818   : > { %v4008_v6 = vpop.xlane.xlu1 %4007 }
0x1819   : > { %5207 = vrsqrt.f32 %v4020_v43  ;;  %v4015_v8 = vmul.f32 0.03125, %v4008_v6 }
0x181b   : > { %v4018_v13 = vadd.f32 1e-12, %v4015_v8 }
0x181d   : > { %5209 = vrsqrt.f32 %v4018_v13 }
0x1821   : > { %v5206_v42 = vpop.eup %5205 }
0x1822   : > { %v4025_v9 = vmul.f32 %v5206_v42, %v4001_v0 }
0x1824   : > { %v4034_v19 = vmul.f32 %v4428_v15, %v4025_v9 }
0x1826   : > { %v5208_v16 = vpop.eup %5207  ;;  %v4043_v63 = vadd.f32 %v4429_v17, %v4034_v19 }
0x1827   : > { %v4026_v21 = vmul.f32 %v5208_v16, %v4002_v59 }
0x1828   : > { %v4053_v23 = vmul.f32 %v4430_v50, %v4043_v63 }
0x1829   : > { %v4035_v25 = vmul.f32 %v4428_v15, %v4026_v21 }
0x182a   : > { %v5210_v18 = vpop.eup %5209  ;;  %v4058_v53 = vsel %vm847_vm3, %v4053_v23, 0.0 }
0x182b   : > { %4059 = vadd.xlane.f32.xlu1 %v4058_v53  ;;  %v4044_v56 = vadd.f32 %v4429_v17, %v4035_v25  ;;  %v4024_v46 = vmul.f32 %v5210_v18, %v4000_v52 }
0x182d   : > { %v4054_v28 = vmul.f32 %v4430_v50, %v4044_v56  ;;  %v4033_v58 = vmul.f32 %v4428_v15, %v4024_v46 }
0x182f   : > { %v4061_v12 = vsel %vm847_vm3, %v4054_v28, 0.0  ;;  %v4042_v30 = vadd.f32 %v4429_v17, %v4033_v58 }
0x1830   : > { %4062 = vadd.xlane.f32.xlu0 %v4061_v12 }
0x1831   : > { %v4052_v20 = vmul.f32 %v4430_v50, %v4042_v30 }
0x1833   : > { %v4055_v22 = vsel %vm847_vm3, %v4052_v20, 0.0 }
0x1834   : > { %4056 = vadd.xlane.f32.xlu0 %v4055_v22 }
0x18b4   : > { %v4060_v44 = vpop.xlane.xlu1 %4059 }
0x18b5   : > { %v4072_v11 = vadd.f32 %v4431_v24, %v4060_v44 }
0x18b7   : > { %4088 = vperm.xlu0 %5072, %v4072_v11  }
0x18b9   : > { %v4063_v26 = vpop.xlane.xlu0 %4062 }
0x18ba   : > { %v4073_v33 = vadd.f32 %v4431_v24, %v4063_v26 }
0x18bc   : > { %4093 = vperm.xlu1 %5071, %v4073_v33  }
0x18bd   : > { %v4057_v34 = vpop.xlane.xlu0 %4056 }
0x18be   : > { %v4071_v29 = vadd.f32 %v4431_v24, %v4057_v34 }
0x18c0   : > { %4083 = vperm.xlu1 %5071, %v4071_v29  }
0x1932   : > { %v4089_v38 = vpop.permute.xlu0 %4088 }
0x1933   : > { %v4097_v45 = vmul.f32 %v4089_v38, %v4079_v37 }
0x1937   : > { %v4094_v39 = vpop.permute.xlu1 %4093 }
0x1938   : > { %v4098_v2 = vmul.f32 %v4094_v39, %v4080_v35 }
0x193a   : > { %5001 = vmatprep.subr.mxu1 %v4098_v2 }
0x193b   : > { %5002 = vmatpush3.msra.mxu1 %v4098_v2  ;;  %v4084_v48 = vpop.permute.xlu1 %4083 }
0x193c   : > { %v4096_v47 = vmul.f32 %v4084_v48, %v4078_v40  ;;  %5003 = vmatprep.subr.mxu1 %v4097_v45 }
0x193d   : > { %5004 = vmatpush3.msra.mxu1 %v4097_v45 }
0x193e   : > { %5005 = vmatprep.subr.mxu1 %v4096_v47 }
0x193f   : > { %5006 = vmatpush3.msra.mxu1 %v4096_v47 }
0x1940   : > { %5008 = vmatmul.mubr.msk.f32.vlgmr.msra.gmra.mxu1 %vm1116_vm7, %v4075_v27 }
0x1941   : > { %5010 = vmatprep.mubr.msk.f32.mxu1 %vm1116_vm7, %v4076_v51 }
0x1944   : > { %5011 = vmatmul.mubr.msk.f32.gmra.mxu1 %vm1116_vm7, %v4077_v54 }
0x1a00   : > { %v5009_v0 = vpop.f32.mrf.mxu1 }
0x1a01   : > { %4197 = vst.msk [vmem:[%s678_s7 + $0x8] sm:$0xff] %vm847_vm3, %v5009_v0 }
0x1a02   : > { %v4177_v14 = vpop.f32.mrf.mxu1 }
0x1a03   : > { %4196 = vst.msk [vmem:[%s678_s7] sm:$0xff] %vm847_vm3, %v4177_v14 }
0x1a04   : > { %v5012_v55 = vpop.f32.mrf.mxu1 }
0x1a05   : > { %4199 = vst.msk [vmem:[%s678_s7 + $0x18] sm:$0xff] %vm847_vm3, %v5012_v55 }
0x1a06   : > { %v4187_v36 = vpop.f32.mrf.mxu1 }
0x1a07   : > { %4198 = vst.msk [vmem:[%s678_s7 + $0x10] sm:$0xff] %vm847_vm3, %v4187_v36 }
0x1a08   : > { %5224 = shalt.err (!%p5221_p3)
}
0x1a09   : > { %s5225_s3 = scalar_lea.hbm %s6651_s6, 512  ;;  %s5229_s8 = scalar_lea.hbm %s6717_s22, 1024 }
0x1a0a   : > { %p5226_p4 = scmp.ne.s32.totalorder %s6651_s6, %s5225_s3  ;;  %p5230_p9 = scmp.lt.s32.totalorder %s6651_s6, %s6717_s22 }
0x1a0b   : > { %p5231_p10 = scmp.lt.s32.totalorder %s5229_s8, %s5225_s3 }
0x1a0c   : > { %p5227_p7 = pnand %p5226_p4, %p5448_p5 }
0x1a0d   : > { %p5232_p11 = por %p5231_p10, %p5230_p9 }
0x1a0e   : > { %p5228_p8 = pneg %p5227_p7 }
0x1a10   : > { %p5233_p12 = pnand %p5232_p11, %p5228_p8 }
0x1a12   : > { %5236 = shalt.err (!%p5233_p12)
}
0x1a13   : > { %s5291_s9 = smov 128  }
0x1a14   : > { %5014 = dma.vmem_to_hbm [thread:$0]  (%p5448_p5), %s6645_s23, 512, %s6651_s6, %s6654_s2, %s5291_s9, %s5291_s9, %s6796_s4  }
0x1a15 PF: > { %p5020_p13 = scmp.ge.s32.totalorder %s5271_s0, 2  ;;  %s4229_s19 = sand.u32 1, %s5259_s29  }
0x1a16   : > { %s4230_s3 = scalar_lea.sflag [#allocation4], %s4229_s19 }
0x1a17   : > { %p5017_p0 = pnand %p5020_p13, %p5452_p6 }
0x1a19   : > { %p5018_p1 = pneg %p5017_p0 }
0x1a1b   : > { %5254 = dma.done.wait (%p5018_p1), %s4230_s3, 512  }
0x1a1c   : > { %5256 = vsyncadd (%p5018_p1), %s4230_s3, 4294966784  ;;  %s6800_s0 = sld [smem:[#allocation7_spill]]  ;;  %s6803_s29 = smov %s5263_s30 }
0x1a1d   : > { %s6801_s25 = sld [smem:[#allocation6_spill]] }
0x1a1e   : > { %s6802_s4 = sld [smem:[#allocation8_spill]] }
0x1a22   : > { %p34_p2 = scmp.ge.s32.totalorder %s6800_s0, 4  }
0x1a23   : > { %s6804_s30 = smov %s6801_s25 }
0x1a24   :  { %36 = sbr.rel (!%p34_p2) target bundleno = 15 (0xf), region = 155 }
0x1a29   :  { %4235 = vsyncpa [#allocation4], 1 }
0x1a2a   :  { %4237 = vsyncpa [#allocation4 + $0x1], 1 }

</bundles_post_ra>
